<compile_context>
chip_gen: v7x
topology: tpu7x:2x2x1
jax: 0.10.0
libtpu: 0.0.40
codegen_flags: <defaults>
</compile_context>

<pallas_src>
import jax
import jax.numpy as jnp
from jax.experimental import pallas as pl
from jax.experimental.pallas import tpu as pltpu


def _round_up(x, m):
    return ((x + m - 1) // m) * m


# ---------------------------------------------------------------------------
# Kernel 1: fused 2-layer GRU over the full (time-major) sequence.
# ---------------------------------------------------------------------------
def gru_kernel(
    emb_ref, z_ref, mask_ref,
    wih0_ref, whh0_ref, bi0_ref, bhn0_ref,
    wih1_ref, whh1_ref, bi1_ref, bhn1_ref,
    wz0_ref, bz0_ref, wz1_ref, bz1_ref,
    out_ref,                      # (T*Bp, Hp) bf16: masked layer-1 outputs
    gi_scr, h0_scr,
):
    TB = emb_ref.shape[0]
    Bp = z_ref.shape[0]
    Hp = whh0_ref.shape[0]
    T = TB // Bp

    def dot(a, b):
        return jnp.dot(a, b, preferred_element_type=jnp.float32)

    # ---- hoisted small weight/bias loads (big activations stay in refs) ----
    whh0 = whh0_ref[...]
    whh1 = whh1_ref[...]
    bhn0 = jnp.broadcast_to(bhn0_ref[...], (Bp, Hp))   # broadcast hoisted
    bhn1 = jnp.broadcast_to(bhn1_ref[...], (Bp, Hp))

    # ---- initial hidden states from z (z2h split per layer) ----
    zval = z_ref[...]
    h0 = dot(zval, wz0_ref[...]) + bz0_ref[...]
    h1 = dot(zval, wz1_ref[...]) + bz1_ref[...]

    # ---- layer 0: ONE fused (T*Bp, E) @ (E, 3Hp) bf16 input matmul ----
    gi_scr[...] = dot(emb_ref[...], wih0_ref[...]) + bi0_ref[...]

    def run_layer(whh, bhn, h, store):
        # Serial recurrence: one fused h @ (Hp, 3Hp) vmatmul per step; gate
        # slices are 128-lane aligned.  gi is ref-sliced from VMEM scratch per
        # step so vreg pressure stays low.
        for t in range(T):
            lo = t * Bp
            gi = gi_scr[lo:lo + Bp, :]
            gh = dot(h, whh)
            r = jax.nn.sigmoid(gi[:, 0:Hp] + gh[:, 0:Hp])
            u = jax.nn.sigmoid(gi[:, Hp:2 * Hp] + gh[:, Hp:2 * Hp])
            n = jnp.tanh(gi[:, 2 * Hp:3 * Hp] + r * (gh[:, 2 * Hp:3 * Hp] + bhn))
            h = (1.0 - u) * n + u * h
            store(lo, h)
        return h

    def store_l0(lo, h):
        h0_scr[lo:lo + Bp, :] = h.astype(h0_scr.dtype)

    run_layer(whh0, bhn0, h0, store_l0)

    # ---- layer 1: fused input matmul over layer-0 outputs (reuses gi_scr) ----
    gi_scr[...] = dot(h0_scr[...], wih1_ref[...]) + bi1_ref[...]

    def store_l1(lo, h):
        # packed-sequence mask fused into the store (pad_packed semantics)
        m = mask_ref[lo:lo + Bp, :]
        out_ref[lo:lo + Bp, :] = (h * m).astype(out_ref.dtype)

    run_layer(whh1, bhn1, h1, store_l1)
    # TODO(synk): for large T*B, stream emb / gate pre-activations in time
    # chunks (pltpu.emit_pipeline) instead of whole-sequence VMEM residency.


# ---------------------------------------------------------------------------
# Kernel 2: tiled outputs2vocab projection (auto-pipelined, megacore-parallel).
# ---------------------------------------------------------------------------
def vocab_proj_kernel(h_ref, wv_ref, bv_ref, out_ref):
    out_ref[...] = (
        jnp.dot(h_ref[...], wv_ref[...], preferred_element_type=jnp.float32)
        + bv_ref[...])


# ---------------------------------------------------------------------------
# Parameters.
# ---------------------------------------------------------------------------
def init_params(key, vocab_size, embedding_dim, hidden_dim, z_dim):
    """Deterministic synthetic parameters in PyTorch layout (nn.GRU/nn.Linear)."""
    def w(k, shape, scale=0.1):
        return (scale * jax.random.normal(k, shape)).astype(jnp.float32)

    E, H, Z, V = embedding_dim, hidden_dim, z_dim, vocab_size
    ks = jax.random.split(key, 16)
    return {
        "embedding":    w(ks[0], (V, E), 1.0),
        "weight_ih_l0": w(ks[1], (3 * H, E)),
        "weight_hh_l0": w(ks[2], (3 * H, H)),
        "bias_ih_l0":   w(ks[3], (3 * H,)),
        "bias_hh_l0":   w(ks[4], (3 * H,)),
        "weight_ih_l1": w(ks[5], (3 * H, H)),
        "weight_hh_l1": w(ks[6], (3 * H, H)),
        "bias_ih_l1":   w(ks[7], (3 * H,)),
        "bias_hh_l1":   w(ks[8], (3 * H,)),
        "z2h_w":        w(ks[9], (2 * H, Z)),
        "z2h_b":        w(ks[10], (2 * H,)),
        "out2vocab_w":  w(ks[11], (V, H)),
        "out2vocab_b":  w(ks[12], (V,)),
    }


def prepare_kernel_params(p, hidden_dim, lane=128):
    """One-time conversion: transpose, fuse gates [r,z,n] into one wide weight,
    fold r/z hidden biases, pad H and V to 128-lane multiples, bf16 weights."""
    H = hidden_dim
    Hp = _round_up(H, lane)
    E = p["weight_ih_l0"].shape[1]
    V = p["out2vocab_w"].shape[0]
    Vp = _round_up(V, lane)

    def fuse_w(w, in_dim, in_pad):
        # PyTorch (3H, in) -> per-gate transpose -> pad to (in_pad, Hp) -> concat
        blocks = []
        for g in range(3):
            wg = jnp.transpose(w[g * H:(g + 1) * H, :])             # (in, H)
            wg = jnp.pad(wg, ((0, in_pad - in_dim), (0, Hp - H)))
            blocks.append(wg)
        return jnp.concatenate(blocks, axis=1)                       # (in_pad, 3Hp)

    def fuse_b(parts):
        return jnp.concatenate(
            [jnp.pad(b, (0, Hp - H)) for b in parts]).reshape(1, 3 * Hp)

    kp = {"embedding": p["embedding"], "H": H, "Hp": Hp, "E": E, "V": V, "Vp": Vp}
    for l in (0, 1):
        in_dim = E if l == 0 else H
        in_pad = E if l == 0 else Hp
        wih = p[f"weight_ih_l{l}"]
        whh = p[f"weight_hh_l{l}"]
        bih = p[f"bias_ih_l{l}"]
        bhh = p[f"bias_hh_l{l}"]
        kp[f"wih{l}"] = fuse_w(wih, in_dim, in_pad).astype(jnp.bfloat16)
        kp[f"whh{l}"] = fuse_w(whh, H, Hp).astype(jnp.float32)
        # r/z: fold hidden bias into the batched input matmul; n keeps b_hn
        # inside tanh(gi_n + r * (h @ W_hn + b_hn)).
        kp[f"bi{l}"] = fuse_b([bih[0:H] + bhh[0:H],
                               bih[H:2 * H] + bhh[H:2 * H],
                               bih[2 * H:3 * H]]).astype(jnp.float32)
        kp[f"bhn{l}"] = jnp.pad(bhh[2 * H:3 * H], (0, Hp - H)).reshape(1, Hp)
    # z2h: hidden.view(B, 2, H) -> layer0 = rows [0:H], layer1 = rows [H:2H]
    kp["wz0"] = jnp.pad(jnp.transpose(p["z2h_w"][0:H, :]), ((0, 0), (0, Hp - H)))
    kp["wz1"] = jnp.pad(jnp.transpose(p["z2h_w"][H:2 * H, :]), ((0, 0), (0, Hp - H)))
    kp["bz0"] = jnp.pad(p["z2h_b"][0:H], (0, Hp - H)).reshape(1, Hp)
    kp["bz1"] = jnp.pad(p["z2h_b"][H:2 * H], (0, Hp - H)).reshape(1, Hp)
    # outputs2vocab: bf16 weights, lane-dense padded vocab
    wv = jnp.pad(jnp.transpose(p["out2vocab_w"]), ((0, Hp - H), (0, Vp - V)))
    kp["wv"] = wv.astype(jnp.bfloat16)
    kp["bv"] = jnp.pad(p["out2vocab_b"], (0, Vp - V)).reshape(1, Vp)
    return kp


# ---------------------------------------------------------------------------
# Forward wrapper (emulates ProgramDecoder.forward; returns (B, T, vocab)).
# ---------------------------------------------------------------------------
def program_decoder_forward(z, seq, length, kp, *, sos_idx, pad_idx, unk_idx,
                            word_dropout=0.5, dropout_key=None):
    B, T = seq.shape
    Hp, V, Vp = kp["Hp"], kp["V"], kp["Vp"]

    seq = seq.astype(jnp.int32)
    length = length.astype(jnp.int32)

    # --- word dropout: protect sos / pad tokens, drop the rest to unk ---
    if word_dropout > 0.0 and dropout_key is not None:
        prob = jax.random.uniform(dropout_key, seq.shape)
        protected = (seq == sos_idx) | (seq == pad_idx)
        prob = jnp.where(protected, 1.0, prob)
        seq = jnp.where(prob < word_dropout, jnp.int32(unk_idx), seq)

    # --- pad batch to 16 rows (bf16 sublane tile); padded rows get length 0 ---
    Bp = _round_up(B, 16)
    seq_p = jnp.pad(seq, ((0, Bp - B), (0, 0)), constant_values=pad_idx)
    len_p = jnp.pad(length, (0, Bp - B))
    z_p = jnp.pad(z.astype(jnp.float32), ((0, Bp - B), (0, 0)))

    # --- embedding gather with the time-major flatten folded into indices ---
    # TODO(synk): fuse this gather into the GRU kernel (scalar-prefetch token
    # ids + row DMA) to remove the extra HBM round trip at scale.
    flat_ids = jnp.reshape(jnp.transpose(seq_p), (-1,))              # (T*Bp,)
    emb = jnp.take(kp["embedding"], flat_ids, axis=0).astype(jnp.bfloat16)

    # --- packed-sequence validity mask (pad_packed zeros past each length) ---
    mask = (jnp.arange(T)[:, None] < len_p[None, :]).astype(jnp.float32)
    mask = mask.reshape(T * Bp, 1)

    TBp = T * Bp
    vmem = pl.BlockSpec(memory_space=pltpu.MemorySpace.VMEM)
    gru_inputs = (
        emb, z_p, mask,
        kp["wih0"], kp["whh0"], kp["bi0"], kp["bhn0"],
        kp["wih1"], kp["whh1"], kp["bi1"], kp["bhn1"],
        kp["wz0"], kp["bz0"], kp["wz1"], kp["bz1"],
    )
    h1_masked = pl.pallas_call(
        gru_kernel,
        out_shape=jax.ShapeDtypeStruct((TBp, Hp), jnp.bfloat16),
        in_specs=[vmem] * len(gru_inputs),
        out_specs=vmem,
        scratch_shapes=[
            pltpu.VMEM((TBp, 3 * Hp), jnp.float32),   # fused gate pre-acts
            pltpu.VMEM((TBp, Hp), jnp.bfloat16),      # layer-0 outputs
        ],
    )(*gru_inputs)

    # --- outputs2vocab: tiled, auto-pipelined projection; both grid axes
    #     parallel (sharded across v7x's 2 TensorCores, streamed everywhere) ---
    TR = TBp if TBp <= 256 else 256
    TV = Vp if Vp <= 512 else 512
    out_flat = pl.pallas_call(
        vocab_proj_kernel,
        out_shape=jax.ShapeDtypeStruct((TBp, Vp), jnp.float32),
        grid=(pl.cdiv(TBp, TR), pl.cdiv(Vp, TV)),
        in_specs=[
            pl.BlockSpec((TR, Hp), lambda i, j: (i, 0)),
            pl.BlockSpec((Hp, TV), lambda i, j: (0, j)),
            pl.BlockSpec((1, TV), lambda i, j: (0, j)),
        ],
        out_specs=pl.BlockSpec((TR, TV), lambda i, j: (i, j)),
        compiler_params=pltpu.CompilerParams(
            dimension_semantics=("parallel", "parallel")),
    )(h1_masked, kp["wv"], kp["bv"])

    # (B, T, V): no device->host sync here; caller may slice to max(length).
    out = out_flat.reshape(T, Bp, Vp).transpose(1, 0, 2)[:B, :, :V]
    return out


if __name__ == "__main__":
    # Small shapes consistent with the module.
    B, T = 2, 8
    vocab_size = 20
    embedding_dim = 32
    hidden_dim = 32
    z_dim = 16
    sos_idx, eos_idx, pad_idx, unk_idx = 1, 2, 0, 3
    word_dropout = 0.5

    root = jax.random.PRNGKey(0)
    k_param, k_seq, k_z, k_drop = jax.random.split(root, 4)

    params = init_params(k_param, vocab_size, embedding_dim, hidden_dim, z_dim)
    kparams = prepare_kernel_params(params, hidden_dim)

    seq = jax.random.randint(k_seq, (B, T), 0, vocab_size, dtype=jnp.int32)
    seq = seq.at[:, 0].set(sos_idx)
    length = jnp.array([T, 5], dtype=jnp.int32)        # ragged (packed) lengths
    z = (0.5 * jax.random.normal(k_z, (B, z_dim))).astype(jnp.float32)

    out = program_decoder_forward(
        z, seq, length, kparams,
        sos_idx=sos_idx, pad_idx=pad_idx, unk_idx=unk_idx,
        word_dropout=word_dropout, dropout_key=k_drop)
    out = jax.block_until_ready(out)

    assert out.shape == (B, T, vocab_size), out.shape
    assert bool(jnp.all(jnp.isfinite(out)))
    print("KERNEL_OK")
</pallas_src>

<mosaic_0001>
module attributes {stable_mosaic.version = 11 : i64} {
  func.func @gru_kernel(%arg0: memref<128x32xbf16, #tpu.memory_space<vmem>>, %arg1: memref<16x16xf32, #tpu.memory_space<vmem>>, %arg2: memref<128x1xf32, #tpu.memory_space<vmem>>, %arg3: memref<32x384xbf16, #tpu.memory_space<vmem>>, %arg4: memref<128x384xf32, #tpu.memory_space<vmem>>, %arg5: memref<1x384xf32, #tpu.memory_space<vmem>>, %arg6: memref<1x128xf32, #tpu.memory_space<vmem>>, %arg7: memref<128x384xbf16, #tpu.memory_space<vmem>>, %arg8: memref<128x384xf32, #tpu.memory_space<vmem>>, %arg9: memref<1x384xf32, #tpu.memory_space<vmem>>, %arg10: memref<1x128xf32, #tpu.memory_space<vmem>>, %arg11: memref<16x128xf32, #tpu.memory_space<vmem>>, %arg12: memref<1x128xf32, #tpu.memory_space<vmem>>, %arg13: memref<16x128xf32, #tpu.memory_space<vmem>>, %arg14: memref<1x128xf32, #tpu.memory_space<vmem>>, %arg15: memref<128x128xbf16, #tpu.memory_space<vmem>>, %arg16: memref<128x384xf32, #tpu.memory_space<vmem>>, %arg17: memref<128x128xbf16, #tpu.memory_space<vmem>>) attributes {dimension_semantics = [], scalar_prefetch = 0 : i64, scratch_operands = 2 : i64, tpu.core_type = #tpu.core_type<tc>} {
    %c0 = arith.constant 0 : index
    %c0_0 = arith.constant 0 : index
    %0 = vector.load %arg4[%c0, %c0_0] : memref<128x384xf32, #tpu.memory_space<vmem>>, vector<128x384xf32>
    %c0_1 = arith.constant 0 : index
    %c0_2 = arith.constant 0 : index
    %1 = vector.load %arg8[%c0_1, %c0_2] : memref<128x384xf32, #tpu.memory_space<vmem>>, vector<128x384xf32>
    %c0_3 = arith.constant 0 : index
    %c0_4 = arith.constant 0 : index
    %2 = vector.load %arg6[%c0_3, %c0_4] : memref<1x128xf32, #tpu.memory_space<vmem>>, vector<1x128xf32>
    %3 = vector.shape_cast %2 : vector<1x128xf32> to vector<1x128xf32>
    %4 = vector.broadcast %3 : vector<1x128xf32> to vector<16x128xf32>
    %c0_5 = arith.constant 0 : index
    %c0_6 = arith.constant 0 : index
    %5 = vector.load %arg10[%c0_5, %c0_6] : memref<1x128xf32, #tpu.memory_space<vmem>>, vector<1x128xf32>
    %6 = vector.shape_cast %5 : vector<1x128xf32> to vector<1x128xf32>
    %7 = vector.broadcast %6 : vector<1x128xf32> to vector<16x128xf32>
    %c0_7 = arith.constant 0 : index
    %c0_8 = arith.constant 0 : index
    %8 = vector.load %arg1[%c0_7, %c0_8] : memref<16x16xf32, #tpu.memory_space<vmem>>, vector<16x16xf32>
    %c0_9 = arith.constant 0 : index
    %c0_10 = arith.constant 0 : index
    %9 = vector.load %arg11[%c0_9, %c0_10] : memref<16x128xf32, #tpu.memory_space<vmem>>, vector<16x128xf32>
    %cst = arith.constant dense<0.000000e+00> : vector<16x128xf32>
    %10 = tpu.matmul %8, %9, %cst {dimension_numbers = #tpu.dot_dimension_numbers<[1], [0], [0], [1], [0, 0, 1, 1], [], []>} : vector<16x16xf32>, vector<16x128xf32>, vector<16x128xf32> -> vector<16x128xf32>
    %c0_11 = arith.constant 0 : index
    %c0_12 = arith.constant 0 : index
    %11 = vector.load %arg12[%c0_11, %c0_12] : memref<1x128xf32, #tpu.memory_space<vmem>>, vector<1x128xf32>
    %12 = vector.broadcast %11 : vector<1x128xf32> to vector<16x128xf32>
    %13 = arith.addf %10, %12 : vector<16x128xf32>
    %c0_13 = arith.constant 0 : index
    %c0_14 = arith.constant 0 : index
    %14 = vector.load %arg13[%c0_13, %c0_14] : memref<16x128xf32, #tpu.memory_space<vmem>>, vector<16x128xf32>
    %cst_15 = arith.constant dense<0.000000e+00> : vector<16x128xf32>
    %15 = tpu.matmul %8, %14, %cst_15 {dimension_numbers = #tpu.dot_dimension_numbers<[1], [0], [0], [1], [0, 0, 1, 1], [], []>} : vector<16x16xf32>, vector<16x128xf32>, vector<16x128xf32> -> vector<16x128xf32>
    %c0_16 = arith.constant 0 : index
    %c0_17 = arith.constant 0 : index
    %16 = vector.load %arg14[%c0_16, %c0_17] : memref<1x128xf32, #tpu.memory_space<vmem>>, vector<1x128xf32>
    %17 = vector.broadcast %16 : vector<1x128xf32> to vector<16x128xf32>
    %18 = arith.addf %15, %17 : vector<16x128xf32>
    %c0_18 = arith.constant 0 : index
    %c0_19 = arith.constant 0 : index
    %19 = vector.load %arg0[%c0_18, %c0_19] : memref<128x32xbf16, #tpu.memory_space<vmem>>, vector<128x32xbf16>
    %c0_20 = arith.constant 0 : index
    %c0_21 = arith.constant 0 : index
    %20 = vector.load %arg3[%c0_20, %c0_21] : memref<32x384xbf16, #tpu.memory_space<vmem>>, vector<32x384xbf16>
    %cst_22 = arith.constant dense<0.000000e+00> : vector<128x384xf32>
    %21 = tpu.matmul %19, %20, %cst_22 {dimension_numbers = #tpu.dot_dimension_numbers<[1], [0], [0], [1], [0, 0, 1, 1], [], []>} : vector<128x32xbf16>, vector<32x384xbf16>, vector<128x384xf32> -> vector<128x384xf32>
    %c0_23 = arith.constant 0 : index
    %c0_24 = arith.constant 0 : index
    %22 = vector.load %arg5[%c0_23, %c0_24] : memref<1x384xf32, #tpu.memory_space<vmem>>, vector<1x384xf32>
    %23 = vector.broadcast %22 : vector<1x384xf32> to vector<128x384xf32>
    %24 = arith.addf %21, %23 : vector<128x384xf32>
    %c0_25 = arith.constant 0 : index
    %c0_26 = arith.constant 0 : index
    %25 = vector.load %arg16[%c0_25, %c0_26] : memref<128x384xf32, #tpu.memory_space<vmem>>, vector<128x384xf32>
    tpu.vector_store %arg16[%c0_25, %c0_26], %24 {strides = array<i32>} : memref<128x384xf32, #tpu.memory_space<vmem>>, vector<128x384xf32>,
    %c0_27 = arith.constant 0 : index
    %c0_28 = arith.constant 0 : index
    %26 = vector.load %arg16[%c0_27, %c0_28] : memref<128x384xf32, #tpu.memory_space<vmem>>, vector<16x384xf32>
    %cst_29 = arith.constant dense<0.000000e+00> : vector<16x384xf32>
    %27 = tpu.matmul %13, %0, %cst_29 {dimension_numbers = #tpu.dot_dimension_numbers<[1], [0], [0], [1], [0, 0, 1, 1], [], []>} : vector<16x128xf32>, vector<128x384xf32>, vector<16x384xf32> -> vector<16x384xf32>
    %28 = vector.extract_strided_slice %26 {offsets = [0, 0], sizes = [16, 128], strides = [1, 1]} : vector<16x384xf32> to vector<16x128xf32>
    %29 = vector.extract_strided_slice %27 {offsets = [0, 0], sizes = [16, 128], strides = [1, 1]} : vector<16x384xf32> to vector<16x128xf32>
    %30 = arith.addf %28, %29 : vector<16x128xf32>
    %31 = arith.negf %30 : vector<16x128xf32>
    %32 = math.exp %31 : vector<16x128xf32>
    %cst_30 = arith.constant 1.000000e+00 : f32
    %33 = vector.broadcast %cst_30 : f32 to vector<16x128xf32>
    %34 = arith.addf %33, %32 : vector<16x128xf32>
    %35 = arith.divf %33, %34 : vector<16x128xf32>
    %36 = vector.extract_strided_slice %26 {offsets = [0, 128], sizes = [16, 128], strides = [1, 1]} : vector<16x384xf32> to vector<16x128xf32>
    %37 = vector.extract_strided_slice %27 {offsets = [0, 128], sizes = [16, 128], strides = [1, 1]} : vector<16x384xf32> to vector<16x128xf32>
    %38 = arith.addf %36, %37 : vector<16x128xf32>
    %39 = arith.negf %38 : vector<16x128xf32>
    %40 = math.exp %39 : vector<16x128xf32>
    %cst_31 = arith.constant 1.000000e+00 : f32
    %41 = vector.broadcast %cst_31 : f32 to vector<16x128xf32>
    %42 = arith.addf %41, %40 : vector<16x128xf32>
    %43 = arith.divf %41, %42 : vector<16x128xf32>
    %44 = vector.extract_strided_slice %26 {offsets = [0, 256], sizes = [16, 128], strides = [1, 1]} : vector<16x384xf32> to vector<16x128xf32>
    %45 = vector.extract_strided_slice %27 {offsets = [0, 256], sizes = [16, 128], strides = [1, 1]} : vector<16x384xf32> to vector<16x128xf32>
    %46 = arith.addf %45, %4 : vector<16x128xf32>
    %47 = arith.mulf %35, %46 : vector<16x128xf32>
    %48 = arith.addf %44, %47 : vector<16x128xf32>
    %49 = math.tanh %48 : vector<16x128xf32>
    %cst_32 = arith.constant 1.000000e+00 : f32
    %50 = vector.broadcast %cst_32 : f32 to vector<16x128xf32>
    %51 = arith.subf %50, %43 : vector<16x128xf32>
    %52 = arith.mulf %51, %49 : vector<16x128xf32>
    %53 = arith.mulf %43, %13 : vector<16x128xf32>
    %54 = arith.addf %52, %53 : vector<16x128xf32>
    %55 = arith.truncf %54 : vector<16x128xf32> to vector<16x128xbf16>
    %c0_33 = arith.constant 0 : index
    %c0_34 = arith.constant 0 : index
    %56 = vector.load %arg17[%c0_33, %c0_34] : memref<128x128xbf16, #tpu.memory_space<vmem>>, vector<16x128xbf16>
    tpu.vector_store %arg17[%c0_33, %c0_34], %55 {strides = array<i32>} : memref<128x128xbf16, #tpu.memory_space<vmem>>, vector<16x128xbf16>,
    %c16 = arith.constant 16 : index
    %c0_35 = arith.constant 0 : index
    %57 = vector.load %arg16[%c16, %c0_35] : memref<128x384xf32, #tpu.memory_space<vmem>>, vector<16x384xf32>
    %cst_36 = arith.constant dense<0.000000e+00> : vector<16x384xf32>
    %58 = tpu.matmul %54, %0, %cst_36 {dimension_numbers = #tpu.dot_dimension_numbers<[1], [0], [0], [1], [0, 0, 1, 1], [], []>} : vector<16x128xf32>, vector<128x384xf32>, vector<16x384xf32> -> vector<16x384xf32>
    %59 = vector.extract_strided_slice %57 {offsets = [0, 0], sizes = [16, 128], strides = [1, 1]} : vector<16x384xf32> to vector<16x128xf32>
    %60 = vector.extract_strided_slice %58 {offsets = [0, 0], sizes = [16, 128], strides = [1, 1]} : vector<16x384xf32> to vector<16x128xf32>
    %61 = arith.addf %59, %60 : vector<16x128xf32>
    %62 = arith.negf %61 : vector<16x128xf32>
    %63 = math.exp %62 : vector<16x128xf32>
    %cst_37 = arith.constant 1.000000e+00 : f32
    %64 = vector.broadcast %cst_37 : f32 to vector<16x128xf32>
    %65 = arith.addf %64, %63 : vector<16x128xf32>
    %66 = arith.divf %64, %65 : vector<16x128xf32>
    %67 = vector.extract_strided_slice %57 {offsets = [0, 128], sizes = [16, 128], strides = [1, 1]} : vector<16x384xf32> to vector<16x128xf32>
    %68 = vector.extract_strided_slice %58 {offsets = [0, 128], sizes = [16, 128], strides = [1, 1]} : vector<16x384xf32> to vector<16x128xf32>
    %69 = arith.addf %67, %68 : vector<16x128xf32>
    %70 = arith.negf %69 : vector<16x128xf32>
    %71 = math.exp %70 : vector<16x128xf32>
    %cst_38 = arith.constant 1.000000e+00 : f32
    %72 = vector.broadcast %cst_38 : f32 to vector<16x128xf32>
    %73 = arith.addf %72, %71 : vector<16x128xf32>
    %74 = arith.divf %72, %73 : vector<16x128xf32>
    %75 = vector.extract_strided_slice %57 {offsets = [0, 256], sizes = [16, 128], strides = [1, 1]} : vector<16x384xf32> to vector<16x128xf32>
    %76 = vector.extract_strided_slice %58 {offsets = [0, 256], sizes = [16, 128], strides = [1, 1]} : vector<16x384xf32> to vector<16x128xf32>
    %77 = arith.addf %76, %4 : vector<16x128xf32>
    %78 = arith.mulf %66, %77 : vector<16x128xf32>
    %79 = arith.addf %75, %78 : vector<16x128xf32>
    %80 = math.tanh %79 : vector<16x128xf32>
    %cst_39 = arith.constant 1.000000e+00 : f32
    %81 = vector.broadcast %cst_39 : f32 to vector<16x128xf32>
    %82 = arith.subf %81, %74 : vector<16x128xf32>
    %83 = arith.mulf %82, %80 : vector<16x128xf32>
    %84 = arith.mulf %74, %54 : vector<16x128xf32>
    %85 = arith.addf %83, %84 : vector<16x128xf32>
    %86 = arith.truncf %85 : vector<16x128xf32> to vector<16x128xbf16>
    %c16_40 = arith.constant 16 : index
    %c0_41 = arith.constant 0 : index
    %87 = vector.load %arg17[%c16_40, %c0_41] : memref<128x128xbf16, #tpu.memory_space<vmem>>, vector<16x128xbf16>
    tpu.vector_store %arg17[%c16_40, %c0_41], %86 {strides = array<i32>} : memref<128x128xbf16, #tpu.memory_space<vmem>>, vector<16x128xbf16>,
    %c32 = arith.constant 32 : index
    %c0_42 = arith.constant 0 : index
    %88 = vector.load %arg16[%c32, %c0_42] : memref<128x384xf32, #tpu.memory_space<vmem>>, vector<16x384xf32>
    %cst_43 = arith.constant dense<0.000000e+00> : vector<16x384xf32>
    %89 = tpu.matmul %85, %0, %cst_43 {dimension_numbers = #tpu.dot_dimension_numbers<[1], [0], [0], [1], [0, 0, 1, 1], [], []>} : vector<16x128xf32>, vector<128x384xf32>, vector<16x384xf32> -> vector<16x384xf32>
    %90 = vector.extract_strided_slice %88 {offsets = [0, 0], sizes = [16, 128], strides = [1, 1]} : vector<16x384xf32> to vector<16x128xf32>
    %91 = vector.extract_strided_slice %89 {offsets = [0, 0], sizes = [16, 128], strides = [1, 1]} : vector<16x384xf32> to vector<16x128xf32>
    %92 = arith.addf %90, %91 : vector<16x128xf32>
    %93 = arith.negf %92 : vector<16x128xf32>
    %94 = math.exp %93 : vector<16x128xf32>
    %cst_44 = arith.constant 1.000000e+00 : f32
    %95 = vector.broadcast %cst_44 : f32 to vector<16x128xf32>
    %96 = arith.addf %95, %94 : vector<16x128xf32>
    %97 = arith.divf %95, %96 : vector<16x128xf32>
    %98 = vector.extract_strided_slice %88 {offsets = [0, 128], sizes = [16, 128], strides = [1, 1]} : vector<16x384xf32> to vector<16x128xf32>
    %99 = vector.extract_strided_slice %89 {offsets = [0, 128], sizes = [16, 128], strides = [1, 1]} : vector<16x384xf32> to vector<16x128xf32>
    %100 = arith.addf %98, %99 : vector<16x128xf32>
    %101 = arith.negf %100 : vector<16x128xf32>
    %102 = math.exp %101 : vector<16x128xf32>
    %cst_45 = arith.constant 1.000000e+00 : f32
    %103 = vector.broadcast %cst_45 : f32 to vector<16x128xf32>
    %104 = arith.addf %103, %102 : vector<16x128xf32>
    %105 = arith.divf %103, %104 : vector<16x128xf32>
    %106 = vector.extract_strided_slice %88 {offsets = [0, 256], sizes = [16, 128], strides = [1, 1]} : vector<16x384xf32> to vector<16x128xf32>
    %107 = vector.extract_strided_slice %89 {offsets = [0, 256], sizes = [16, 128], strides = [1, 1]} : vector<16x384xf32> to vector<16x128xf32>
    %108 = arith.addf %107, %4 : vector<16x128xf32>
    %109 = arith.mulf %97, %108 : vector<16x128xf32>
    %110 = arith.addf %106, %109 : vector<16x128xf32>
    %111 = math.tanh %110 : vector<16x128xf32>
    %cst_46 = arith.constant 1.000000e+00 : f32
    %112 = vector.broadcast %cst_46 : f32 to vector<16x128xf32>
    %113 = arith.subf %112, %105 : vector<16x128xf32>
    %114 = arith.mulf %113, %111 : vector<16x128xf32>
    %115 = arith.mulf %105, %85 : vector<16x128xf32>
    %116 = arith.addf %114, %115 : vector<16x128xf32>
    %117 = arith.truncf %116 : vector<16x128xf32> to vector<16x128xbf16>
    %c32_47 = arith.constant 32 : index
    %c0_48 = arith.constant 0 : index
    %118 = vector.load %arg17[%c32_47, %c0_48] : memref<128x128xbf16, #tpu.memory_space<vmem>>, vector<16x128xbf16>
    tpu.vector_store %arg17[%c32_47, %c0_48], %117 {strides = array<i32>} : memref<128x128xbf16, #tpu.memory_space<vmem>>, vector<16x128xbf16>,
    %c48 = arith.constant 48 : index
    %c0_49 = arith.constant 0 : index
    %119 = vector.load %arg16[%c48, %c0_49] : memref<128x384xf32, #tpu.memory_space<vmem>>, vector<16x384xf32>
    %cst_50 = arith.constant dense<0.000000e+00> : vector<16x384xf32>
    %120 = tpu.matmul %116, %0, %cst_50 {dimension_numbers = #tpu.dot_dimension_numbers<[1], [0], [0], [1], [0, 0, 1, 1], [], []>} : vector<16x128xf32>, vector<128x384xf32>, vector<16x384xf32> -> vector<16x384xf32>
    %121 = vector.extract_strided_slice %119 {offsets = [0, 0], sizes = [16, 128], strides = [1, 1]} : vector<16x384xf32> to vector<16x128xf32>
    %122 = vector.extract_strided_slice %120 {offsets = [0, 0], sizes = [16, 128], strides = [1, 1]} : vector<16x384xf32> to vector<16x128xf32>
    %123 = arith.addf %121, %122 : vector<16x128xf32>
    %124 = arith.negf %123 : vector<16x128xf32>
    %125 = math.exp %124 : vector<16x128xf32>
    %cst_51 = arith.constant 1.000000e+00 : f32
    %126 = vector.broadcast %cst_51 : f32 to vector<16x128xf32>
    %127 = arith.addf %126, %125 : vector<16x128xf32>
    %128 = arith.divf %126, %127 : vector<16x128xf32>
    %129 = vector.extract_strided_slice %119 {offsets = [0, 128], sizes = [16, 128], strides = [1, 1]} : vector<16x384xf32> to vector<16x128xf32>
    %130 = vector.extract_strided_slice %120 {offsets = [0, 128], sizes = [16, 128], strides = [1, 1]} : vector<16x384xf32> to vector<16x128xf32>
    %131 = arith.addf %129, %130 : vector<16x128xf32>
    %132 = arith.negf %131 : vector<16x128xf32>
    %133 = math.exp %132 : vector<16x128xf32>
    %cst_52 = arith.constant 1.000000e+00 : f32
    %134 = vector.broadcast %cst_52 : f32 to vector<16x128xf32>
    %135 = arith.addf %134, %133 : vector<16x128xf32>
    %136 = arith.divf %134, %135 : vector<16x128xf32>
    %137 = vector.extract_strided_slice %119 {offsets = [0, 256], sizes = [16, 128], strides = [1, 1]} : vector<16x384xf32> to vector<16x128xf32>
    %138 = vector.extract_strided_slice %120 {offsets = [0, 256], sizes = [16, 128], strides = [1, 1]} : vector<16x384xf32> to vector<16x128xf32>
    %139 = arith.addf %138, %4 : vector<16x128xf32>
    %140 = arith.mulf %128, %139 : vector<16x128xf32>
    %141 = arith.addf %137, %140 : vector<16x128xf32>
    %142 = math.tanh %141 : vector<16x128xf32>
    %cst_53 = arith.constant 1.000000e+00 : f32
    %143 = vector.broadcast %cst_53 : f32 to vector<16x128xf32>
    %144 = arith.subf %143, %136 : vector<16x128xf32>
    %145 = arith.mulf %144, %142 : vector<16x128xf32>
    %146 = arith.mulf %136, %116 : vector<16x128xf32>
    %147 = arith.addf %145, %146 : vector<16x128xf32>
    %148 = arith.truncf %147 : vector<16x128xf32> to vector<16x128xbf16>
    %c48_54 = arith.constant 48 : index
    %c0_55 = arith.constant 0 : index
    %149 = vector.load %arg17[%c48_54, %c0_55] : memref<128x128xbf16, #tpu.memory_space<vmem>>, vector<16x128xbf16>
    tpu.vector_store %arg17[%c48_54, %c0_55], %148 {strides = array<i32>} : memref<128x128xbf16, #tpu.memory_space<vmem>>, vector<16x128xbf16>,
    %c64 = arith.constant 64 : index
    %c0_56 = arith.constant 0 : index
    %150 = vector.load %arg16[%c64, %c0_56] : memref<128x384xf32, #tpu.memory_space<vmem>>, vector<16x384xf32>
    %cst_57 = arith.constant dense<0.000000e+00> : vector<16x384xf32>
    %151 = tpu.matmul %147, %0, %cst_57 {dimension_numbers = #tpu.dot_dimension_numbers<[1], [0], [0], [1], [0, 0, 1, 1], [], []>} : vector<16x128xf32>, vector<128x384xf32>, vector<16x384xf32> -> vector<16x384xf32>
    %152 = vector.extract_strided_slice %150 {offsets = [0, 0], sizes = [16, 128], strides = [1, 1]} : vector<16x384xf32> to vector<16x128xf32>
    %153 = vector.extract_strided_slice %151 {offsets = [0, 0], sizes = [16, 128], strides = [1, 1]} : vector<16x384xf32> to vector<16x128xf32>
    %154 = arith.addf %152, %153 : vector<16x128xf32>
    %155 = arith.negf %154 : vector<16x128xf32>
    %156 = math.exp %155 : vector<16x128xf32>
    %cst_58 = arith.constant 1.000000e+00 : f32
    %157 = vector.broadcast %cst_58 : f32 to vector<16x128xf32>
    %158 = arith.addf %157, %156 : vector<16x128xf32>
    %159 = arith.divf %157, %158 : vector<16x128xf32>
    %160 = vector.extract_strided_slice %150 {offsets = [0, 128], sizes = [16, 128], strides = [1, 1]} : vector<16x384xf32> to vector<16x128xf32>
    %161 = vector.extract_strided_slice %151 {offsets = [0, 128], sizes = [16, 128], strides = [1, 1]} : vector<16x384xf32> to vector<16x128xf32>
    %162 = arith.addf %160, %161 : vector<16x128xf32>
    %163 = arith.negf %162 : vector<16x128xf32>
    %164 = math.exp %163 : vector<16x128xf32>
    %cst_59 = arith.constant 1.000000e+00 : f32
    %165 = vector.broadcast %cst_59 : f32 to vector<16x128xf32>
    %166 = arith.addf %165, %164 : vector<16x128xf32>
    %167 = arith.divf %165, %166 : vector<16x128xf32>
    %168 = vector.extract_strided_slice %150 {offsets = [0, 256], sizes = [16, 128], strides = [1, 1]} : vector<16x384xf32> to vector<16x128xf32>
    %169 = vector.extract_strided_slice %151 {offsets = [0, 256], sizes = [16, 128], strides = [1, 1]} : vector<16x384xf32> to vector<16x128xf32>
    %170 = arith.addf %169, %4 : vector<16x128xf32>
    %171 = arith.mulf %159, %170 : vector<16x128xf32>
    %172 = arith.addf %168, %171 : vector<16x128xf32>
    %173 = math.tanh %172 : vector<16x128xf32>
    %cst_60 = arith.constant 1.000000e+00 : f32
    %174 = vector.broadcast %cst_60 : f32 to vector<16x128xf32>
    %175 = arith.subf %174, %167 : vector<16x128xf32>
    %176 = arith.mulf %175, %173 : vector<16x128xf32>
    %177 = arith.mulf %167, %147 : vector<16x128xf32>
    %178 = arith.addf %176, %177 : vector<16x128xf32>
    %179 = arith.truncf %178 : vector<16x128xf32> to vector<16x128xbf16>
    %c64_61 = arith.constant 64 : index
    %c0_62 = arith.constant 0 : index
    %180 = vector.load %arg17[%c64_61, %c0_62] : memref<128x128xbf16, #tpu.memory_space<vmem>>, vector<16x128xbf16>
    tpu.vector_store %arg17[%c64_61, %c0_62], %179 {strides = array<i32>} : memref<128x128xbf16, #tpu.memory_space<vmem>>, vector<16x128xbf16>,
    %c80 = arith.constant 80 : index
    %c0_63 = arith.constant 0 : index
    %181 = vector.load %arg16[%c80, %c0_63] : memref<128x384xf32, #tpu.memory_space<vmem>>, vector<16x384xf32>
    %cst_64 = arith.constant dense<0.000000e+00> : vector<16x384xf32>
    %182 = tpu.matmul %178, %0, %cst_64 {dimension_numbers = #tpu.dot_dimension_numbers<[1], [0], [0], [1], [0, 0, 1, 1], [], []>} : vector<16x128xf32>, vector<128x384xf32>, vector<16x384xf32> -> vector<16x384xf32>
    %183 = vector.extract_strided_slice %181 {offsets = [0, 0], sizes = [16, 128], strides = [1, 1]} : vector<16x384xf32> to vector<16x128xf32>
    %184 = vector.extract_strided_slice %182 {offsets = [0, 0], sizes = [16, 128], strides = [1, 1]} : vector<16x384xf32> to vector<16x128xf32>
    %185 = arith.addf %183, %184 : vector<16x128xf32>
    %186 = arith.negf %185 : vector<16x128xf32>
    %187 = math.exp %186 : vector<16x128xf32>
    %cst_65 = arith.constant 1.000000e+00 : f32
    %188 = vector.broadcast %cst_65 : f32 to vector<16x128xf32>
    %189 = arith.addf %188, %187 : vector<16x128xf32>
    %190 = arith.divf %188, %189 : vector<16x128xf32>
    %191 = vector.extract_strided_slice %181 {offsets = [0, 128], sizes = [16, 128], strides = [1, 1]} : vector<16x384xf32> to vector<16x128xf32>
    %192 = vector.extract_strided_slice %182 {offsets = [0, 128], sizes = [16, 128], strides = [1, 1]} : vector<16x384xf32> to vector<16x128xf32>
    %193 = arith.addf %191, %192 : vector<16x128xf32>
    %194 = arith.negf %193 : vector<16x128xf32>
    %195 = math.exp %194 : vector<16x128xf32>
    %cst_66 = arith.constant 1.000000e+00 : f32
    %196 = vector.broadcast %cst_66 : f32 to vector<16x128xf32>
    %197 = arith.addf %196, %195 : vector<16x128xf32>
    %198 = arith.divf %196, %197 : vector<16x128xf32>
    %199 = vector.extract_strided_slice %181 {offsets = [0, 256], sizes = [16, 128], strides = [1, 1]} : vector<16x384xf32> to vector<16x128xf32>
    %200 = vector.extract_strided_slice %182 {offsets = [0, 256], sizes = [16, 128], strides = [1, 1]} : vector<16x384xf32> to vector<16x128xf32>
    %201 = arith.addf %200, %4 : vector<16x128xf32>
    %202 = arith.mulf %190, %201 : vector<16x128xf32>
    %203 = arith.addf %199, %202 : vector<16x128xf32>
    %204 = math.tanh %203 : vector<16x128xf32>
    %cst_67 = arith.constant 1.000000e+00 : f32
    %205 = vector.broadcast %cst_67 : f32 to vector<16x128xf32>
    %206 = arith.subf %205, %198 : vector<16x128xf32>
    %207 = arith.mulf %206, %204 : vector<16x128xf32>
    %208 = arith.mulf %198, %178 : vector<16x128xf32>
    %209 = arith.addf %207, %208 : vector<16x128xf32>
    %210 = arith.truncf %209 : vector<16x128xf32> to vector<16x128xbf16>
    %c80_68 = arith.constant 80 : index
    %c0_69 = arith.constant 0 : index
    %211 = vector.load %arg17[%c80_68, %c0_69] : memref<128x128xbf16, #tpu.memory_space<vmem>>, vector<16x128xbf16>
    tpu.vector_store %arg17[%c80_68, %c0_69], %210 {strides = array<i32>} : memref<128x128xbf16, #tpu.memory_space<vmem>>, vector<16x128xbf16>,
    %c96 = arith.constant 96 : index
    %c0_70 = arith.constant 0 : index
    %212 = vector.load %arg16[%c96, %c0_70] : memref<128x384xf32, #tpu.memory_space<vmem>>, vector<16x384xf32>
    %cst_71 = arith.constant dense<0.000000e+00> : vector<16x384xf32>
    %213 = tpu.matmul %209, %0, %cst_71 {dimension_numbers = #tpu.dot_dimension_numbers<[1], [0], [0], [1], [0, 0, 1, 1], [], []>} : vector<16x128xf32>, vector<128x384xf32>, vector<16x384xf32> -> vector<16x384xf32>
    %214 = vector.extract_strided_slice %212 {offsets = [0, 0], sizes = [16, 128], strides = [1, 1]} : vector<16x384xf32> to vector<16x128xf32>
    %215 = vector.extract_strided_slice %213 {offsets = [0, 0], sizes = [16, 128], strides = [1, 1]} : vector<16x384xf32> to vector<16x128xf32>
    %216 = arith.addf %214, %215 : vector<16x128xf32>
    %217 = arith.negf %216 : vector<16x128xf32>
    %218 = math.exp %217 : vector<16x128xf32>
    %cst_72 = arith.constant 1.000000e+00 : f32
    %219 = vector.broadcast %cst_72 : f32 to vector<16x128xf32>
    %220 = arith.addf %219, %218 : vector<16x128xf32>
    %221 = arith.divf %219, %220 : vector<16x128xf32>
    %222 = vector.extract_strided_slice %212 {offsets = [0, 128], sizes = [16, 128], strides = [1, 1]} : vector<16x384xf32> to vector<16x128xf32>
    %223 = vector.extract_strided_slice %213 {offsets = [0, 128], sizes = [16, 128], strides = [1, 1]} : vector<16x384xf32> to vector<16x128xf32>
    %224 = arith.addf %222, %223 : vector<16x128xf32>
    %225 = arith.negf %224 : vector<16x128xf32>
    %226 = math.exp %225 : vector<16x128xf32>
    %cst_73 = arith.constant 1.000000e+00 : f32
    %227 = vector.broadcast %cst_73 : f32 to vector<16x128xf32>
    %228 = arith.addf %227, %226 : vector<16x128xf32>
    %229 = arith.divf %227, %228 : vector<16x128xf32>
    %230 = vector.extract_strided_slice %212 {offsets = [0, 256], sizes = [16, 128], strides = [1, 1]} : vector<16x384xf32> to vector<16x128xf32>
    %231 = vector.extract_strided_slice %213 {offsets = [0, 256], sizes = [16, 128], strides = [1, 1]} : vector<16x384xf32> to vector<16x128xf32>
    %232 = arith.addf %231, %4 : vector<16x128xf32>
    %233 = arith.mulf %221, %232 : vector<16x128xf32>
    %234 = arith.addf %230, %233 : vector<16x128xf32>
    %235 = math.tanh %234 : vector<16x128xf32>
    %cst_74 = arith.constant 1.000000e+00 : f32
    %236 = vector.broadcast %cst_74 : f32 to vector<16x128xf32>
    %237 = arith.subf %236, %229 : vector<16x128xf32>
    %238 = arith.mulf %237, %235 : vector<16x128xf32>
    %239 = arith.mulf %229, %209 : vector<16x128xf32>
    %240 = arith.addf %238, %239 : vector<16x128xf32>
    %241 = arith.truncf %240 : vector<16x128xf32> to vector<16x128xbf16>
    %c96_75 = arith.constant 96 : index
    %c0_76 = arith.constant 0 : index
    %242 = vector.load %arg17[%c96_75, %c0_76] : memref<128x128xbf16, #tpu.memory_space<vmem>>, vector<16x128xbf16>
    tpu.vector_store %arg17[%c96_75, %c0_76], %241 {strides = array<i32>} : memref<128x128xbf16, #tpu.memory_space<vmem>>, vector<16x128xbf16>,
    %c112 = arith.constant 112 : index
    %c0_77 = arith.constant 0 : index
    %243 = vector.load %arg16[%c112, %c0_77] : memref<128x384xf32, #tpu.memory_space<vmem>>, vector<16x384xf32>
    %cst_78 = arith.constant dense<0.000000e+00> : vector<16x384xf32>
    %244 = tpu.matmul %240, %0, %cst_78 {dimension_numbers = #tpu.dot_dimension_numbers<[1], [0], [0], [1], [0, 0, 1, 1], [], []>} : vector<16x128xf32>, vector<128x384xf32>, vector<16x384xf32> -> vector<16x384xf32>
    %245 = vector.extract_strided_slice %243 {offsets = [0, 0], sizes = [16, 128], strides = [1, 1]} : vector<16x384xf32> to vector<16x128xf32>
    %246 = vector.extract_strided_slice %244 {offsets = [0, 0], sizes = [16, 128], strides = [1, 1]} : vector<16x384xf32> to vector<16x128xf32>
    %247 = arith.addf %245, %246 : vector<16x128xf32>
    %248 = arith.negf %247 : vector<16x128xf32>
    %249 = math.exp %248 : vector<16x128xf32>
    %cst_79 = arith.constant 1.000000e+00 : f32
    %250 = vector.broadcast %cst_79 : f32 to vector<16x128xf32>
    %251 = arith.addf %250, %249 : vector<16x128xf32>
    %252 = arith.divf %250, %251 : vector<16x128xf32>
    %253 = vector.extract_strided_slice %243 {offsets = [0, 128], sizes = [16, 128], strides = [1, 1]} : vector<16x384xf32> to vector<16x128xf32>
    %254 = vector.extract_strided_slice %244 {offsets = [0, 128], sizes = [16, 128], strides = [1, 1]} : vector<16x384xf32> to vector<16x128xf32>
    %255 = arith.addf %253, %254 : vector<16x128xf32>
    %256 = arith.negf %255 : vector<16x128xf32>
    %257 = math.exp %256 : vector<16x128xf32>
    %cst_80 = arith.constant 1.000000e+00 : f32
    %258 = vector.broadcast %cst_80 : f32 to vector<16x128xf32>
    %259 = arith.addf %258, %257 : vector<16x128xf32>
    %260 = arith.divf %258, %259 : vector<16x128xf32>
    %261 = vector.extract_strided_slice %243 {offsets = [0, 256], sizes = [16, 128], strides = [1, 1]} : vector<16x384xf32> to vector<16x128xf32>
    %262 = vector.extract_strided_slice %244 {offsets = [0, 256], sizes = [16, 128], strides = [1, 1]} : vector<16x384xf32> to vector<16x128xf32>
    %263 = arith.addf %262, %4 : vector<16x128xf32>
    %264 = arith.mulf %252, %263 : vector<16x128xf32>
    %265 = arith.addf %261, %264 : vector<16x128xf32>
    %266 = math.tanh %265 : vector<16x128xf32>
    %cst_81 = arith.constant 1.000000e+00 : f32
    %267 = vector.broadcast %cst_81 : f32 to vector<16x128xf32>
    %268 = arith.subf %267, %260 : vector<16x128xf32>
    %269 = arith.mulf %268, %266 : vector<16x128xf32>
    %270 = arith.mulf %260, %240 : vector<16x128xf32>
    %271 = arith.addf %269, %270 : vector<16x128xf32>
    %272 = arith.truncf %271 : vector<16x128xf32> to vector<16x128xbf16>
    %c112_82 = arith.constant 112 : index
    %c0_83 = arith.constant 0 : index
    %273 = vector.load %arg17[%c112_82, %c0_83] : memref<128x128xbf16, #tpu.memory_space<vmem>>, vector<16x128xbf16>
    tpu.vector_store %arg17[%c112_82, %c0_83], %272 {strides = array<i32>} : memref<128x128xbf16, #tpu.memory_space<vmem>>, vector<16x128xbf16>,
    %c0_84 = arith.constant 0 : index
    %c0_85 = arith.constant 0 : index
    %274 = vector.load %arg17[%c0_84, %c0_85] : memref<128x128xbf16, #tpu.memory_space<vmem>>, vector<128x128xbf16>
    %c0_86 = arith.constant 0 : index
    %c0_87 = arith.constant 0 : index
    %275 = vector.load %arg7[%c0_86, %c0_87] : memref<128x384xbf16, #tpu.memory_space<vmem>>, vector<128x384xbf16>
    %cst_88 = arith.constant dense<0.000000e+00> : vector<128x384xf32>
    %276 = tpu.matmul %274, %275, %cst_88 {dimension_numbers = #tpu.dot_dimension_numbers<[1], [0], [0], [1], [0, 0, 1, 1], [], []>} : vector<128x128xbf16>, vector<128x384xbf16>, vector<128x384xf32> -> vector<128x384xf32>
    %c0_89 = arith.constant 0 : index
    %c0_90 = arith.constant 0 : index
    %277 = vector.load %arg9[%c0_89, %c0_90] : memref<1x384xf32, #tpu.memory_space<vmem>>, vector<1x384xf32>
    %278 = vector.broadcast %277 : vector<1x384xf32> to vector<128x384xf32>
    %279 = arith.addf %276, %278 : vector<128x384xf32>
    %c0_91 = arith.constant 0 : index
    %c0_92 = arith.constant 0 : index
    %280 = vector.load %arg16[%c0_91, %c0_92] : memref<128x384xf32, #tpu.memory_space<vmem>>, vector<128x384xf32>
    tpu.vector_store %arg16[%c0_91, %c0_92], %279 {strides = array<i32>} : memref<128x384xf32, #tpu.memory_space<vmem>>, vector<128x384xf32>,
    %c0_93 = arith.constant 0 : index
    %c0_94 = arith.constant 0 : index
    %281 = vector.load %arg16[%c0_93, %c0_94] : memref<128x384xf32, #tpu.memory_space<vmem>>, vector<16x384xf32>
    %cst_95 = arith.constant dense<0.000000e+00> : vector<16x384xf32>
    %282 = tpu.matmul %18, %1, %cst_95 {dimension_numbers = #tpu.dot_dimension_numbers<[1], [0], [0], [1], [0, 0, 1, 1], [], []>} : vector<16x128xf32>, vector<128x384xf32>, vector<16x384xf32> -> vector<16x384xf32>
    %283 = vector.extract_strided_slice %281 {offsets = [0, 0], sizes = [16, 128], strides = [1, 1]} : vector<16x384xf32> to vector<16x128xf32>
    %284 = vector.extract_strided_slice %282 {offsets = [0, 0], sizes = [16, 128], strides = [1, 1]} : vector<16x384xf32> to vector<16x128xf32>
    %285 = arith.addf %283, %284 : vector<16x128xf32>
    %286 = arith.negf %285 : vector<16x128xf32>
    %287 = math.exp %286 : vector<16x128xf32>
    %cst_96 = arith.constant 1.000000e+00 : f32
    %288 = vector.broadcast %cst_96 : f32 to vector<16x128xf32>
    %289 = arith.addf %288, %287 : vector<16x128xf32>
    %290 = arith.divf %288, %289 : vector<16x128xf32>
    %291 = vector.extract_strided_slice %281 {offsets = [0, 128], sizes = [16, 128], strides = [1, 1]} : vector<16x384xf32> to vector<16x128xf32>
    %292 = vector.extract_strided_slice %282 {offsets = [0, 128], sizes = [16, 128], strides = [1, 1]} : vector<16x384xf32> to vector<16x128xf32>
    %293 = arith.addf %291, %292 : vector<16x128xf32>
    %294 = arith.negf %293 : vector<16x128xf32>
    %295 = math.exp %294 : vector<16x128xf32>
    %cst_97 = arith.constant 1.000000e+00 : f32
    %296 = vector.broadcast %cst_97 : f32 to vector<16x128xf32>
    %297 = arith.addf %296, %295 : vector<16x128xf32>
    %298 = arith.divf %296, %297 : vector<16x128xf32>
    %299 = vector.extract_strided_slice %281 {offsets = [0, 256], sizes = [16, 128], strides = [1, 1]} : vector<16x384xf32> to vector<16x128xf32>
    %300 = vector.extract_strided_slice %282 {offsets = [0, 256], sizes = [16, 128], strides = [1, 1]} : vector<16x384xf32> to vector<16x128xf32>
    %301 = arith.addf %300, %7 : vector<16x128xf32>
    %302 = arith.mulf %290, %301 : vector<16x128xf32>
    %303 = arith.addf %299, %302 : vector<16x128xf32>
    %304 = math.tanh %303 : vector<16x128xf32>
    %cst_98 = arith.constant 1.000000e+00 : f32
    %305 = vector.broadcast %cst_98 : f32 to vector<16x128xf32>
    %306 = arith.subf %305, %298 : vector<16x128xf32>
    %307 = arith.mulf %306, %304 : vector<16x128xf32>
    %308 = arith.mulf %298, %18 : vector<16x128xf32>
    %309 = arith.addf %307, %308 : vector<16x128xf32>
    %c0_99 = arith.constant 0 : index
    %c0_100 = arith.constant 0 : index
    %310 = vector.load %arg2[%c0_99, %c0_100] : memref<128x1xf32, #tpu.memory_space<vmem>>, vector<16x1xf32>
    %311 = vector.broadcast %310 : vector<16x1xf32> to vector<16x128xf32>
    %312 = arith.mulf %309, %311 : vector<16x128xf32>
    %313 = arith.truncf %312 : vector<16x128xf32> to vector<16x128xbf16>
    %c0_101 = arith.constant 0 : index
    %c0_102 = arith.constant 0 : index
    %314 = vector.load %arg15[%c0_101, %c0_102] : memref<128x128xbf16, #tpu.memory_space<vmem>>, vector<16x128xbf16>
    tpu.vector_store %arg15[%c0_101, %c0_102], %313 {strides = array<i32>} : memref<128x128xbf16, #tpu.memory_space<vmem>>, vector<16x128xbf16>,
    %c16_103 = arith.constant 16 : index
    %c0_104 = arith.constant 0 : index
    %315 = vector.load %arg16[%c16_103, %c0_104] : memref<128x384xf32, #tpu.memory_space<vmem>>, vector<16x384xf32>
    %cst_105 = arith.constant dense<0.000000e+00> : vector<16x384xf32>
    %316 = tpu.matmul %309, %1, %cst_105 {dimension_numbers = #tpu.dot_dimension_numbers<[1], [0], [0], [1], [0, 0, 1, 1], [], []>} : vector<16x128xf32>, vector<128x384xf32>, vector<16x384xf32> -> vector<16x384xf32>
    %317 = vector.extract_strided_slice %315 {offsets = [0, 0], sizes = [16, 128], strides = [1, 1]} : vector<16x384xf32> to vector<16x128xf32>
    %318 = vector.extract_strided_slice %316 {offsets = [0, 0], sizes = [16, 128], strides = [1, 1]} : vector<16x384xf32> to vector<16x128xf32>
    %319 = arith.addf %317, %318 : vector<16x128xf32>
    %320 = arith.negf %319 : vector<16x128xf32>
    %321 = math.exp %320 : vector<16x128xf32>
    %cst_106 = arith.constant 1.000000e+00 : f32
    %322 = vector.broadcast %cst_106 : f32 to vector<16x128xf32>
    %323 = arith.addf %322, %321 : vector<16x128xf32>
    %324 = arith.divf %322, %323 : vector<16x128xf32>
    %325 = vector.extract_strided_slice %315 {offsets = [0, 128], sizes = [16, 128], strides = [1, 1]} : vector<16x384xf32> to vector<16x128xf32>
    %326 = vector.extract_strided_slice %316 {offsets = [0, 128], sizes = [16, 128], strides = [1, 1]} : vector<16x384xf32> to vector<16x128xf32>
    %327 = arith.addf %325, %326 : vector<16x128xf32>
    %328 = arith.negf %327 : vector<16x128xf32>
    %329 = math.exp %328 : vector<16x128xf32>
    %cst_107 = arith.constant 1.000000e+00 : f32
    %330 = vector.broadcast %cst_107 : f32 to vector<16x128xf32>
    %331 = arith.addf %330, %329 : vector<16x128xf32>
    %332 = arith.divf %330, %331 : vector<16x128xf32>
    %333 = vector.extract_strided_slice %315 {offsets = [0, 256], sizes = [16, 128], strides = [1, 1]} : vector<16x384xf32> to vector<16x128xf32>
    %334 = vector.extract_strided_slice %316 {offsets = [0, 256], sizes = [16, 128], strides = [1, 1]} : vector<16x384xf32> to vector<16x128xf32>
    %335 = arith.addf %334, %7 : vector<16x128xf32>
    %336 = arith.mulf %324, %335 : vector<16x128xf32>
    %337 = arith.addf %333, %336 : vector<16x128xf32>
    %338 = math.tanh %337 : vector<16x128xf32>
    %cst_108 = arith.constant 1.000000e+00 : f32
    %339 = vector.broadcast %cst_108 : f32 to vector<16x128xf32>
    %340 = arith.subf %339, %332 : vector<16x128xf32>
    %341 = arith.mulf %340, %338 : vector<16x128xf32>
    %342 = arith.mulf %332, %309 : vector<16x128xf32>
    %343 = arith.addf %341, %342 : vector<16x128xf32>
    %c16_109 = arith.constant 16 : index
    %c0_110 = arith.constant 0 : index
    %344 = vector.load %arg2[%c16_109, %c0_110] : memref<128x1xf32, #tpu.memory_space<vmem>>, vector<16x1xf32>
    %345 = vector.broadcast %344 : vector<16x1xf32> to vector<16x128xf32>
    %346 = arith.mulf %343, %345 : vector<16x128xf32>
    %347 = arith.truncf %346 : vector<16x128xf32> to vector<16x128xbf16>
    %c16_111 = arith.constant 16 : index
    %c0_112 = arith.constant 0 : index
    %348 = vector.load %arg15[%c16_111, %c0_112] : memref<128x128xbf16, #tpu.memory_space<vmem>>, vector<16x128xbf16>
    tpu.vector_store %arg15[%c16_111, %c0_112], %347 {strides = array<i32>} : memref<128x128xbf16, #tpu.memory_space<vmem>>, vector<16x128xbf16>,
    %c32_113 = arith.constant 32 : index
    %c0_114 = arith.constant 0 : index
    %349 = vector.load %arg16[%c32_113, %c0_114] : memref<128x384xf32, #tpu.memory_space<vmem>>, vector<16x384xf32>
    %cst_115 = arith.constant dense<0.000000e+00> : vector<16x384xf32>
    %350 = tpu.matmul %343, %1, %cst_115 {dimension_numbers = #tpu.dot_dimension_numbers<[1], [0], [0], [1], [0, 0, 1, 1], [], []>} : vector<16x128xf32>, vector<128x384xf32>, vector<16x384xf32> -> vector<16x384xf32>
    %351 = vector.extract_strided_slice %349 {offsets = [0, 0], sizes = [16, 128], strides = [1, 1]} : vector<16x384xf32> to vector<16x128xf32>
    %352 = vector.extract_strided_slice %350 {offsets = [0, 0], sizes = [16, 128], strides = [1, 1]} : vector<16x384xf32> to vector<16x128xf32>
    %353 = arith.addf %351, %352 : vector<16x128xf32>
    %354 = arith.negf %353 : vector<16x128xf32>
    %355 = math.exp %354 : vector<16x128xf32>
    %cst_116 = arith.constant 1.000000e+00 : f32
    %356 = vector.broadcast %cst_116 : f32 to vector<16x128xf32>
    %357 = arith.addf %356, %355 : vector<16x128xf32>
    %358 = arith.divf %356, %357 : vector<16x128xf32>
    %359 = vector.extract_strided_slice %349 {offsets = [0, 128], sizes = [16, 128], strides = [1, 1]} : vector<16x384xf32> to vector<16x128xf32>
    %360 = vector.extract_strided_slice %350 {offsets = [0, 128], sizes = [16, 128], strides = [1, 1]} : vector<16x384xf32> to vector<16x128xf32>
    %361 = arith.addf %359, %360 : vector<16x128xf32>
    %362 = arith.negf %361 : vector<16x128xf32>
    %363 = math.exp %362 : vector<16x128xf32>
    %cst_117 = arith.constant 1.000000e+00 : f32
    %364 = vector.broadcast %cst_117 : f32 to vector<16x128xf32>
    %365 = arith.addf %364, %363 : vector<16x128xf32>
    %366 = arith.divf %364, %365 : vector<16x128xf32>
    %367 = vector.extract_strided_slice %349 {offsets = [0, 256], sizes = [16, 128], strides = [1, 1]} : vector<16x384xf32> to vector<16x128xf32>
    %368 = vector.extract_strided_slice %350 {offsets = [0, 256], sizes = [16, 128], strides = [1, 1]} : vector<16x384xf32> to vector<16x128xf32>
    %369 = arith.addf %368, %7 : vector<16x128xf32>
    %370 = arith.mulf %358, %369 : vector<16x128xf32>
    %371 = arith.addf %367, %370 : vector<16x128xf32>
    %372 = math.tanh %371 : vector<16x128xf32>
    %cst_118 = arith.constant 1.000000e+00 : f32
    %373 = vector.broadcast %cst_118 : f32 to vector<16x128xf32>
    %374 = arith.subf %373, %366 : vector<16x128xf32>
    %375 = arith.mulf %374, %372 : vector<16x128xf32>
    %376 = arith.mulf %366, %343 : vector<16x128xf32>
    %377 = arith.addf %375, %376 : vector<16x128xf32>
    %c32_119 = arith.constant 32 : index
    %c0_120 = arith.constant 0 : index
    %378 = vector.load %arg2[%c32_119, %c0_120] : memref<128x1xf32, #tpu.memory_space<vmem>>, vector<16x1xf32>
    %379 = vector.broadcast %378 : vector<16x1xf32> to vector<16x128xf32>
    %380 = arith.mulf %377, %379 : vector<16x128xf32>
    %381 = arith.truncf %380 : vector<16x128xf32> to vector<16x128xbf16>
    %c32_121 = arith.constant 32 : index
    %c0_122 = arith.constant 0 : index
    %382 = vector.load %arg15[%c32_121, %c0_122] : memref<128x128xbf16, #tpu.memory_space<vmem>>, vector<16x128xbf16>
    tpu.vector_store %arg15[%c32_121, %c0_122], %381 {strides = array<i32>} : memref<128x128xbf16, #tpu.memory_space<vmem>>, vector<16x128xbf16>,
    %c48_123 = arith.constant 48 : index
    %c0_124 = arith.constant 0 : index
    %383 = vector.load %arg16[%c48_123, %c0_124] : memref<128x384xf32, #tpu.memory_space<vmem>>, vector<16x384xf32>
    %cst_125 = arith.constant dense<0.000000e+00> : vector<16x384xf32>
    %384 = tpu.matmul %377, %1, %cst_125 {dimension_numbers = #tpu.dot_dimension_numbers<[1], [0], [0], [1], [0, 0, 1, 1], [], []>} : vector<16x128xf32>, vector<128x384xf32>, vector<16x384xf32> -> vector<16x384xf32>
    %385 = vector.extract_strided_slice %383 {offsets = [0, 0], sizes = [16, 128], strides = [1, 1]} : vector<16x384xf32> to vector<16x128xf32>
    %386 = vector.extract_strided_slice %384 {offsets = [0, 0], sizes = [16, 128], strides = [1, 1]} : vector<16x384xf32> to vector<16x128xf32>
    %387 = arith.addf %385, %386 : vector<16x128xf32>
    %388 = arith.negf %387 : vector<16x128xf32>
    %389 = math.exp %388 : vector<16x128xf32>
    %cst_126 = arith.constant 1.000000e+00 : f32
    %390 = vector.broadcast %cst_126 : f32 to vector<16x128xf32>
    %391 = arith.addf %390, %389 : vector<16x128xf32>
    %392 = arith.divf %390, %391 : vector<16x128xf32>
    %393 = vector.extract_strided_slice %383 {offsets = [0, 128], sizes = [16, 128], strides = [1, 1]} : vector<16x384xf32> to vector<16x128xf32>
    %394 = vector.extract_strided_slice %384 {offsets = [0, 128], sizes = [16, 128], strides = [1, 1]} : vector<16x384xf32> to vector<16x128xf32>
    %395 = arith.addf %393, %394 : vector<16x128xf32>
    %396 = arith.negf %395 : vector<16x128xf32>
    %397 = math.exp %396 : vector<16x128xf32>
    %cst_127 = arith.constant 1.000000e+00 : f32
    %398 = vector.broadcast %cst_127 : f32 to vector<16x128xf32>
    %399 = arith.addf %398, %397 : vector<16x128xf32>
    %400 = arith.divf %398, %399 : vector<16x128xf32>
    %401 = vector.extract_strided_slice %383 {offsets = [0, 256], sizes = [16, 128], strides = [1, 1]} : vector<16x384xf32> to vector<16x128xf32>
    %402 = vector.extract_strided_slice %384 {offsets = [0, 256], sizes = [16, 128], strides = [1, 1]} : vector<16x384xf32> to vector<16x128xf32>
    %403 = arith.addf %402, %7 : vector<16x128xf32>
    %404 = arith.mulf %392, %403 : vector<16x128xf32>
    %405 = arith.addf %401, %404 : vector<16x128xf32>
    %406 = math.tanh %405 : vector<16x128xf32>
    %cst_128 = arith.constant 1.000000e+00 : f32
    %407 = vector.broadcast %cst_128 : f32 to vector<16x128xf32>
    %408 = arith.subf %407, %400 : vector<16x128xf32>
    %409 = arith.mulf %408, %406 : vector<16x128xf32>
    %410 = arith.mulf %400, %377 : vector<16x128xf32>
    %411 = arith.addf %409, %410 : vector<16x128xf32>
    %c48_129 = arith.constant 48 : index
    %c0_130 = arith.constant 0 : index
    %412 = vector.load %arg2[%c48_129, %c0_130] : memref<128x1xf32, #tpu.memory_space<vmem>>, vector<16x1xf32>
    %413 = vector.broadcast %412 : vector<16x1xf32> to vector<16x128xf32>
    %414 = arith.mulf %411, %413 : vector<16x128xf32>
    %415 = arith.truncf %414 : vector<16x128xf32> to vector<16x128xbf16>
    %c48_131 = arith.constant 48 : index
    %c0_132 = arith.constant 0 : index
    %416 = vector.load %arg15[%c48_131, %c0_132] : memref<128x128xbf16, #tpu.memory_space<vmem>>, vector<16x128xbf16>
    tpu.vector_store %arg15[%c48_131, %c0_132], %415 {strides = array<i32>} : memref<128x128xbf16, #tpu.memory_space<vmem>>, vector<16x128xbf16>,
    %c64_133 = arith.constant 64 : index
    %c0_134 = arith.constant 0 : index
    %417 = vector.load %arg16[%c64_133, %c0_134] : memref<128x384xf32, #tpu.memory_space<vmem>>, vector<16x384xf32>
    %cst_135 = arith.constant dense<0.000000e+00> : vector<16x384xf32>
    %418 = tpu.matmul %411, %1, %cst_135 {dimension_numbers = #tpu.dot_dimension_numbers<[1], [0], [0], [1], [0, 0, 1, 1], [], []>} : vector<16x128xf32>, vector<128x384xf32>, vector<16x384xf32> -> vector<16x384xf32>
    %419 = vector.extract_strided_slice %417 {offsets = [0, 0], sizes = [16, 128], strides = [1, 1]} : vector<16x384xf32> to vector<16x128xf32>
    %420 = vector.extract_strided_slice %418 {offsets = [0, 0], sizes = [16, 128], strides = [1, 1]} : vector<16x384xf32> to vector<16x128xf32>
    %421 = arith.addf %419, %420 : vector<16x128xf32>
    %422 = arith.negf %421 : vector<16x128xf32>
    %423 = math.exp %422 : vector<16x128xf32>
    %cst_136 = arith.constant 1.000000e+00 : f32
    %424 = vector.broadcast %cst_136 : f32 to vector<16x128xf32>
    %425 = arith.addf %424, %423 : vector<16x128xf32>
    %426 = arith.divf %424, %425 : vector<16x128xf32>
    %427 = vector.extract_strided_slice %417 {offsets = [0, 128], sizes = [16, 128], strides = [1, 1]} : vector<16x384xf32> to vector<16x128xf32>
    %428 = vector.extract_strided_slice %418 {offsets = [0, 128], sizes = [16, 128], strides = [1, 1]} : vector<16x384xf32> to vector<16x128xf32>
    %429 = arith.addf %427, %428 : vector<16x128xf32>
    %430 = arith.negf %429 : vector<16x128xf32>
    %431 = math.exp %430 : vector<16x128xf32>
    %cst_137 = arith.constant 1.000000e+00 : f32
    %432 = vector.broadcast %cst_137 : f32 to vector<16x128xf32>
    %433 = arith.addf %432, %431 : vector<16x128xf32>
    %434 = arith.divf %432, %433 : vector<16x128xf32>
    %435 = vector.extract_strided_slice %417 {offsets = [0, 256], sizes = [16, 128], strides = [1, 1]} : vector<16x384xf32> to vector<16x128xf32>
    %436 = vector.extract_strided_slice %418 {offsets = [0, 256], sizes = [16, 128], strides = [1, 1]} : vector<16x384xf32> to vector<16x128xf32>
    %437 = arith.addf %436, %7 : vector<16x128xf32>
    %438 = arith.mulf %426, %437 : vector<16x128xf32>
    %439 = arith.addf %435, %438 : vector<16x128xf32>
    %440 = math.tanh %439 : vector<16x128xf32>
    %cst_138 = arith.constant 1.000000e+00 : f32
    %441 = vector.broadcast %cst_138 : f32 to vector<16x128xf32>
    %442 = arith.subf %441, %434 : vector<16x128xf32>
    %443 = arith.mulf %442, %440 : vector<16x128xf32>
    %444 = arith.mulf %434, %411 : vector<16x128xf32>
    %445 = arith.addf %443, %444 : vector<16x128xf32>
    %c64_139 = arith.constant 64 : index
    %c0_140 = arith.constant 0 : index
    %446 = vector.load %arg2[%c64_139, %c0_140] : memref<128x1xf32, #tpu.memory_space<vmem>>, vector<16x1xf32>
    %447 = vector.broadcast %446 : vector<16x1xf32> to vector<16x128xf32>
    %448 = arith.mulf %445, %447 : vector<16x128xf32>
    %449 = arith.truncf %448 : vector<16x128xf32> to vector<16x128xbf16>
    %c64_141 = arith.constant 64 : index
    %c0_142 = arith.constant 0 : index
    %450 = vector.load %arg15[%c64_141, %c0_142] : memref<128x128xbf16, #tpu.memory_space<vmem>>, vector<16x128xbf16>
    tpu.vector_store %arg15[%c64_141, %c0_142], %449 {strides = array<i32>} : memref<128x128xbf16, #tpu.memory_space<vmem>>, vector<16x128xbf16>,
    %c80_143 = arith.constant 80 : index
    %c0_144 = arith.constant 0 : index
    %451 = vector.load %arg16[%c80_143, %c0_144] : memref<128x384xf32, #tpu.memory_space<vmem>>, vector<16x384xf32>
    %cst_145 = arith.constant dense<0.000000e+00> : vector<16x384xf32>
    %452 = tpu.matmul %445, %1, %cst_145 {dimension_numbers = #tpu.dot_dimension_numbers<[1], [0], [0], [1], [0, 0, 1, 1], [], []>} : vector<16x128xf32>, vector<128x384xf32>, vector<16x384xf32> -> vector<16x384xf32>
    %453 = vector.extract_strided_slice %451 {offsets = [0, 0], sizes = [16, 128], strides = [1, 1]} : vector<16x384xf32> to vector<16x128xf32>
    %454 = vector.extract_strided_slice %452 {offsets = [0, 0], sizes = [16, 128], strides = [1, 1]} : vector<16x384xf32> to vector<16x128xf32>
    %455 = arith.addf %453, %454 : vector<16x128xf32>
    %456 = arith.negf %455 : vector<16x128xf32>
    %457 = math.exp %456 : vector<16x128xf32>
    %cst_146 = arith.constant 1.000000e+00 : f32
    %458 = vector.broadcast %cst_146 : f32 to vector<16x128xf32>
    %459 = arith.addf %458, %457 : vector<16x128xf32>
    %460 = arith.divf %458, %459 : vector<16x128xf32>
    %461 = vector.extract_strided_slice %451 {offsets = [0, 128], sizes = [16, 128], strides = [1, 1]} : vector<16x384xf32> to vector<16x128xf32>
    %462 = vector.extract_strided_slice %452 {offsets = [0, 128], sizes = [16, 128], strides = [1, 1]} : vector<16x384xf32> to vector<16x128xf32>
    %463 = arith.addf %461, %462 : vector<16x128xf32>
    %464 = arith.negf %463 : vector<16x128xf32>
    %465 = math.exp %464 : vector<16x128xf32>
    %cst_147 = arith.constant 1.000000e+00 : f32
    %466 = vector.broadcast %cst_147 : f32 to vector<16x128xf32>
    %467 = arith.addf %466, %465 : vector<16x128xf32>
    %468 = arith.divf %466, %467 : vector<16x128xf32>
    %469 = vector.extract_strided_slice %451 {offsets = [0, 256], sizes = [16, 128], strides = [1, 1]} : vector<16x384xf32> to vector<16x128xf32>
    %470 = vector.extract_strided_slice %452 {offsets = [0, 256], sizes = [16, 128], strides = [1, 1]} : vector<16x384xf32> to vector<16x128xf32>
    %471 = arith.addf %470, %7 : vector<16x128xf32>
    %472 = arith.mulf %460, %471 : vector<16x128xf32>
    %473 = arith.addf %469, %472 : vector<16x128xf32>
    %474 = math.tanh %473 : vector<16x128xf32>
    %cst_148 = arith.constant 1.000000e+00 : f32
    %475 = vector.broadcast %cst_148 : f32 to vector<16x128xf32>
    %476 = arith.subf %475, %468 : vector<16x128xf32>
    %477 = arith.mulf %476, %474 : vector<16x128xf32>
    %478 = arith.mulf %468, %445 : vector<16x128xf32>
    %479 = arith.addf %477, %478 : vector<16x128xf32>
    %c80_149 = arith.constant 80 : index
    %c0_150 = arith.constant 0 : index
    %480 = vector.load %arg2[%c80_149, %c0_150] : memref<128x1xf32, #tpu.memory_space<vmem>>, vector<16x1xf32>
    %481 = vector.broadcast %480 : vector<16x1xf32> to vector<16x128xf32>
    %482 = arith.mulf %479, %481 : vector<16x128xf32>
    %483 = arith.truncf %482 : vector<16x128xf32> to vector<16x128xbf16>
    %c80_151 = arith.constant 80 : index
    %c0_152 = arith.constant 0 : index
    %484 = vector.load %arg15[%c80_151, %c0_152] : memref<128x128xbf16, #tpu.memory_space<vmem>>, vector<16x128xbf16>
    tpu.vector_store %arg15[%c80_151, %c0_152], %483 {strides = array<i32>} : memref<128x128xbf16, #tpu.memory_space<vmem>>, vector<16x128xbf16>,
    %c96_153 = arith.constant 96 : index
    %c0_154 = arith.constant 0 : index
    %485 = vector.load %arg16[%c96_153, %c0_154] : memref<128x384xf32, #tpu.memory_space<vmem>>, vector<16x384xf32>
    %cst_155 = arith.constant dense<0.000000e+00> : vector<16x384xf32>
    %486 = tpu.matmul %479, %1, %cst_155 {dimension_numbers = #tpu.dot_dimension_numbers<[1], [0], [0], [1], [0, 0, 1, 1], [], []>} : vector<16x128xf32>, vector<128x384xf32>, vector<16x384xf32> -> vector<16x384xf32>
    %487 = vector.extract_strided_slice %485 {offsets = [0, 0], sizes = [16, 128], strides = [1, 1]} : vector<16x384xf32> to vector<16x128xf32>
    %488 = vector.extract_strided_slice %486 {offsets = [0, 0], sizes = [16, 128], strides = [1, 1]} : vector<16x384xf32> to vector<16x128xf32>
    %489 = arith.addf %487, %488 : vector<16x128xf32>
    %490 = arith.negf %489 : vector<16x128xf32>
    %491 = math.exp %490 : vector<16x128xf32>
    %cst_156 = arith.constant 1.000000e+00 : f32
    %492 = vector.broadcast %cst_156 : f32 to vector<16x128xf32>
    %493 = arith.addf %492, %491 : vector<16x128xf32>
    %494 = arith.divf %492, %493 : vector<16x128xf32>
    %495 = vector.extract_strided_slice %485 {offsets = [0, 128], sizes = [16, 128], strides = [1, 1]} : vector<16x384xf32> to vector<16x128xf32>
    %496 = vector.extract_strided_slice %486 {offsets = [0, 128], sizes = [16, 128], strides = [1, 1]} : vector<16x384xf32> to vector<16x128xf32>
    %497 = arith.addf %495, %496 : vector<16x128xf32>
    %498 = arith.negf %497 : vector<16x128xf32>
    %499 = math.exp %498 : vector<16x128xf32>
    %cst_157 = arith.constant 1.000000e+00 : f32
    %500 = vector.broadcast %cst_157 : f32 to vector<16x128xf32>
    %501 = arith.addf %500, %499 : vector<16x128xf32>
    %502 = arith.divf %500, %501 : vector<16x128xf32>
    %503 = vector.extract_strided_slice %485 {offsets = [0, 256], sizes = [16, 128], strides = [1, 1]} : vector<16x384xf32> to vector<16x128xf32>
    %504 = vector.extract_strided_slice %486 {offsets = [0, 256], sizes = [16, 128], strides = [1, 1]} : vector<16x384xf32> to vector<16x128xf32>
    %505 = arith.addf %504, %7 : vector<16x128xf32>
    %506 = arith.mulf %494, %505 : vector<16x128xf32>
    %507 = arith.addf %503, %506 : vector<16x128xf32>
    %508 = math.tanh %507 : vector<16x128xf32>
    %cst_158 = arith.constant 1.000000e+00 : f32
    %509 = vector.broadcast %cst_158 : f32 to vector<16x128xf32>
    %510 = arith.subf %509, %502 : vector<16x128xf32>
    %511 = arith.mulf %510, %508 : vector<16x128xf32>
    %512 = arith.mulf %502, %479 : vector<16x128xf32>
    %513 = arith.addf %511, %512 : vector<16x128xf32>
    %c96_159 = arith.constant 96 : index
    %c0_160 = arith.constant 0 : index
    %514 = vector.load %arg2[%c96_159, %c0_160] : memref<128x1xf32, #tpu.memory_space<vmem>>, vector<16x1xf32>
    %515 = vector.broadcast %514 : vector<16x1xf32> to vector<16x128xf32>
    %516 = arith.mulf %513, %515 : vector<16x128xf32>
    %517 = arith.truncf %516 : vector<16x128xf32> to vector<16x128xbf16>
    %c96_161 = arith.constant 96 : index
    %c0_162 = arith.constant 0 : index
    %518 = vector.load %arg15[%c96_161, %c0_162] : memref<128x128xbf16, #tpu.memory_space<vmem>>, vector<16x128xbf16>
    tpu.vector_store %arg15[%c96_161, %c0_162], %517 {strides = array<i32>} : memref<128x128xbf16, #tpu.memory_space<vmem>>, vector<16x128xbf16>,
    %c112_163 = arith.constant 112 : index
    %c0_164 = arith.constant 0 : index
    %519 = vector.load %arg16[%c112_163, %c0_164] : memref<128x384xf32, #tpu.memory_space<vmem>>, vector<16x384xf32>
    %cst_165 = arith.constant dense<0.000000e+00> : vector<16x384xf32>
    %520 = tpu.matmul %513, %1, %cst_165 {dimension_numbers = #tpu.dot_dimension_numbers<[1], [0], [0], [1], [0, 0, 1, 1], [], []>} : vector<16x128xf32>, vector<128x384xf32>, vector<16x384xf32> -> vector<16x384xf32>
    %521 = vector.extract_strided_slice %519 {offsets = [0, 0], sizes = [16, 128], strides = [1, 1]} : vector<16x384xf32> to vector<16x128xf32>
    %522 = vector.extract_strided_slice %520 {offsets = [0, 0], sizes = [16, 128], strides = [1, 1]} : vector<16x384xf32> to vector<16x128xf32>
    %523 = arith.addf %521, %522 : vector<16x128xf32>
    %524 = arith.negf %523 : vector<16x128xf32>
    %525 = math.exp %524 : vector<16x128xf32>
    %cst_166 = arith.constant 1.000000e+00 : f32
    %526 = vector.broadcast %cst_166 : f32 to vector<16x128xf32>
    %527 = arith.addf %526, %525 : vector<16x128xf32>
    %528 = arith.divf %526, %527 : vector<16x128xf32>
    %529 = vector.extract_strided_slice %519 {offsets = [0, 128], sizes = [16, 128], strides = [1, 1]} : vector<16x384xf32> to vector<16x128xf32>
    %530 = vector.extract_strided_slice %520 {offsets = [0, 128], sizes = [16, 128], strides = [1, 1]} : vector<16x384xf32> to vector<16x128xf32>
    %531 = arith.addf %529, %530 : vector<16x128xf32>
    %532 = arith.negf %531 : vector<16x128xf32>
    %533 = math.exp %532 : vector<16x128xf32>
    %cst_167 = arith.constant 1.000000e+00 : f32
    %534 = vector.broadcast %cst_167 : f32 to vector<16x128xf32>
    %535 = arith.addf %534, %533 : vector<16x128xf32>
    %536 = arith.divf %534, %535 : vector<16x128xf32>
    %537 = vector.extract_strided_slice %519 {offsets = [0, 256], sizes = [16, 128], strides = [1, 1]} : vector<16x384xf32> to vector<16x128xf32>
    %538 = vector.extract_strided_slice %520 {offsets = [0, 256], sizes = [16, 128], strides = [1, 1]} : vector<16x384xf32> to vector<16x128xf32>
    %539 = arith.addf %538, %7 : vector<16x128xf32>
    %540 = arith.mulf %528, %539 : vector<16x128xf32>
    %541 = arith.addf %537, %540 : vector<16x128xf32>
    %542 = math.tanh %541 : vector<16x128xf32>
    %cst_168 = arith.constant 1.000000e+00 : f32
    %543 = vector.broadcast %cst_168 : f32 to vector<16x128xf32>
    %544 = arith.subf %543, %536 : vector<16x128xf32>
    %545 = arith.mulf %544, %542 : vector<16x128xf32>
    %546 = arith.mulf %536, %513 : vector<16x128xf32>
    %547 = arith.addf %545, %546 : vector<16x128xf32>
    %c112_169 = arith.constant 112 : index
    %c0_170 = arith.constant 0 : index
    %548 = vector.load %arg2[%c112_169, %c0_170] : memref<128x1xf32, #tpu.memory_space<vmem>>, vector<16x1xf32>
    %549 = vector.broadcast %548 : vector<16x1xf32> to vector<16x128xf32>
    %550 = arith.mulf %547, %549 : vector<16x128xf32>
    %551 = arith.truncf %550 : vector<16x128xf32> to vector<16x128xbf16>
    %c112_171 = arith.constant 112 : index
    %c0_172 = arith.constant 0 : index
    %552 = vector.load %arg15[%c112_171, %c0_172] : memref<128x128xbf16, #tpu.memory_space<vmem>>, vector<16x128xbf16>
    tpu.vector_store %arg15[%c112_171, %c0_172], %551 {strides = array<i32>} : memref<128x128xbf16, #tpu.memory_space<vmem>>, vector<16x128xbf16>,
    return
  }
}

</mosaic_0001>

<bundles_post_ra>
// kernel: tpu_custom_call.1
= control target key start
LH: loop header
LB: loop body
LE: loop exit
PB: predicated region body
PF: predicated region fallthrough
CT: control target
= control target key end

     0   :  { %s9084_s0 = inlined_call_operand.vmem [shape: bf16[128,32], index: 0, kind: input, shape index: {}]   ;;  %s9085_s1 = inlined_call_operand.vmem [shape: f32[16,16], index: 1, kind: input, shape index: {}]   ;;  %s9086_s2 = inlined_call_operand.vmem [shape: f32[128,1], index: 2, kind: input, shape index: {}]   ;;  %s9087_s3 = inlined_call_operand.hbm [shape: bf16[32,384], index: 3, kind: input, shape index: {}]   ;;  %s9088_s4 = inlined_call_operand.hbm [shape: f32[128,384], index: 4, kind: input, shape index: {}]   ;;  %s9089_s5 = inlined_call_operand.vmem [shape: f32[1,384], index: 5, kind: input, shape index: {}]   ;;  %s9090_s6 = inlined_call_operand.hbm [shape: f32[1,128], index: 6, kind: input, shape index: {}]   ;;  %s9091_s7 = inlined_call_operand.vmem [shape: bf16[128,384], index: 7, kind: input, shape index: {}]   ;;  %s9092_s8 = inlined_call_operand.hbm [shape: f32[128,384], index: 8, kind: input, shape index: {}]   ;;  %s9093_s9 = inlined_call_operand.hbm [shape: f32[1,384], index: 9, kind: input, shape index: {}]   ;;  %s9094_s10 = inlined_call_operand.vmem [shape: f32[1,128], index: 10, kind: input, shape index: {}]   ;;  %s9095_s11 = inlined_call_operand.vmem [shape: f32[16,128], index: 11, kind: input, shape index: {}]   ;;  %s9096_s12 = inlined_call_operand.vmem [shape: f32[1,128], index: 12, kind: input, shape index: {}]   ;;  %s9097_s13 = inlined_call_operand.vmem [shape: f32[16,128], index: 13, kind: input, shape index: {}]   ;;  %s9098_s14 = inlined_call_operand.vmem [shape: f32[1,128], index: 14, kind: input, shape index: {}]   ;;  %s9099_s15 = inlined_call_operand.hbm [shape: bf16[128,128], index: 15, kind: output, shape index: {}]  }
   0x1   :  { %9110 = sst [smem:[#allocation49_spill]] %s9099_s15 }
   0x2   :  { %20 = vsyncpa [#allocation5], 0 }
   0x3   :  { %21 = vsyncpa [#allocation8], 0 }
   0x4   :  { %22 = vsyncpa [#allocation11], 0 }
   0x5   :  { %23 = vsyncpa [#allocation6], 0  ;;  %s7412_s18 = smov [#allocation7]   ;;  %s7272_s22 = scalar_lea.hbm %s9088_s4, 6144 }
   0x6   :  { %s47_s19 = sshll.u32 %s7412_s18, 4  ;;  %p7273_p0 = scmp.ne.s32.totalorder %s9088_s4, %s7272_s22  ;;  %s48_s19 = int_to_ptr.vmem [resolvable:$true] %s47_s19 }
   0x7   :  { %p7276_p1 = scmp.lt.u32.totalorder %s7272_s22, %s9088_s4 }
   0x9   :  { %p7278_p2 = pnand %p7276_p1, %p7273_p0 }
   0xb   :  { %7281 = shalt.err (!%p7278_p2)
}
   0xc   :  { %s7282_s27 = scalar_lea.vmem %s48_s19, 6144  ;;  %p7287_p4 = scmp.lt.s32.totalorder %s48_s19, %s48_s19 }
   0xd   :  { %p7283_p3 = scmp.ne.s32.totalorder %s48_s19, %s7282_s27  ;;  %p7288_p5 = scmp.lt.s32.totalorder %s7282_s27, %s7282_s27 }
   0xf   :  { %p7289_p6 = por %p7288_p5, %p7287_p4 }
  0x11   :  { %p7290_p7 = pnand %p7289_p6, %p7283_p3 }
  0x13   :  { %7293 = shalt.err (!%p7290_p7)
}
  0x14   :  { %s7413_s28 = smov 384   ;;  %s7414_s29 = smov 24  }
  0x15   :  { %53 = dma.hbm_to_vmem [thread:$0]  %s9088_s4, 6144, %s48_s19, [#allocation8], %s7413_s28, %s7413_s28, %s7414_s29  }
  0x16   :  { %s7415_s17 = smov [#allocation10]   ;;  %s7416_s20 = smov [#allocation4]  }
  0x17   :  { %s73_s18 = sshll.u32 %s7415_s17, 4  ;;  %s35_s21 = sshll.u32 %s7416_s20, 4  ;;  %s74_s18 = int_to_ptr.vmem [resolvable:$true] %s73_s18  ;;  %s36_s21 = int_to_ptr.vmem [resolvable:$true] %s35_s21 }
  0x18   :  { %s7294_s24 = scalar_lea.hbm %s9092_s8, 6144 }
  0x19   :  { %p7295_p8 = scmp.ne.s32.totalorder %s9092_s8, %s7294_s24  ;;  %p7298_p9 = scmp.lt.u32.totalorder %s7294_s24, %s9092_s8 }
  0x1b   :  { %p7300_p10 = pnand %p7298_p9, %p7295_p8 }
  0x1d   :  { %7303 = shalt.err (!%p7300_p10)
}
  0x1e   :  { %s7304_s4 = scalar_lea.vmem %s74_s18, 6144  ;;  %p7309_p12 = scmp.lt.s32.totalorder %s74_s18, %s74_s18 }
  0x1f   :  { %p7305_p11 = scmp.ne.s32.totalorder %s74_s18, %s7304_s4  ;;  %p7310_p13 = scmp.lt.s32.totalorder %s7304_s4, %s7304_s4 }
  0x21   :  { %p7311_p0 = por %p7310_p13, %p7309_p12 }
  0x23   :  { %p7312_p1 = pnand %p7311_p0, %p7305_p11 }
  0x25   :  { %7315 = shalt.err (!%p7312_p1)
}
  0x26   :  { %79 = dma.hbm_to_vmem [thread:$0]  %s9092_s8, 6144, %s74_s18, [#allocation11], %s7413_s28, %s7413_s28, %s7414_s29  }
  0x27   :  { %s7316_s20 = scalar_lea.hbm %s9087_s3, 768 }
  0x28   :  { %p7317_p2 = scmp.ne.s32.totalorder %s9087_s3, %s7316_s20  ;;  %p7320_p3 = scmp.lt.u32.totalorder %s7316_s20, %s9087_s3 }
  0x2a   :  { %p7322_p4 = pnand %p7320_p3, %p7317_p2 }
  0x2c   :  { %7325 = shalt.err (!%p7322_p4)
}
  0x2d   :  { %s7326_s25 = scalar_lea.vmem %s36_s21, 768  ;;  %p7331_p6 = scmp.lt.s32.totalorder %s36_s21, %s36_s21 }
  0x2e   :  { %p7327_p5 = scmp.ne.s32.totalorder %s36_s21, %s7326_s25  ;;  %p7332_p7 = scmp.lt.s32.totalorder %s7326_s25, %s7326_s25 }
  0x30   :  { %p7333_p8 = por %p7332_p7, %p7331_p6 }
  0x32   :  { %p7334_p9 = pnand %p7333_p8, %p7327_p5 }
  0x34   :  { %7337 = shalt.err (!%p7334_p9)
}
  0x35   :  { %s7417_s8 = smov 192   ;;  %s7418_s28 = smov 12  }
  0x36   :  { %41 = dma.hbm_to_vmem [thread:$0]  %s9087_s3, 768, %s36_s21, [#allocation5], %s7417_s8, %s7417_s8, %s7418_s28  }
  0x37   :  { %s7419_s26 = smov [#allocation9]   ;;  %s7420_s4 = smov [#allocation12]  }
  0x38   :  { %s62_s27 = sshll.u32 %s7419_s26, 4  ;;  %s86_s19 = sshll.u32 %s7420_s4, 4  ;;  %s63_s27 = int_to_ptr.vmem [resolvable:$true] %s62_s27  ;;  %s87_s19 = int_to_ptr.vmem [resolvable:$true] %s86_s19 }
  0x39   :  { %s7338_s17 = scalar_lea.hbm %s9090_s6, 16 }
  0x3a   :  { %p7339_p10 = scmp.ne.s32.totalorder %s9090_s6, %s7338_s17  ;;  %p7342_p11 = scmp.lt.u32.totalorder %s7338_s17, %s9090_s6 }
  0x3c   :  { %p7344_p12 = pnand %p7342_p11, %p7339_p10 }
  0x3e   :  { %7347 = shalt.err (!%p7344_p12)
}
  0x3f   :  { %s7348_s3 = scalar_lea.vmem %s63_s27, 16  ;;  %s7352_s21 = scalar_lea.vmem %s63_s27, 32 }
  0x40   :  { %p7349_p13 = scmp.ne.s32.totalorder %s63_s27, %s7348_s3  ;;  %p7353_p0 = scmp.lt.s32.totalorder %s63_s27, %s63_s27 }
  0x41   :  { %p7354_p1 = scmp.lt.s32.totalorder %s7352_s21, %s7348_s3 }
  0x43   :  { %p7355_p2 = por %p7354_p1, %p7353_p0 }
  0x45   :  { %p7356_p3 = pnand %p7355_p2, %p7349_p13 }
  0x47   :  { %7359 = shalt.err (!%p7356_p3)
}
  0x48   :  { %65 = dma.hbm_to_vmem [thread:$0]  %s9090_s6, 16, %s63_s27, [#allocation8]  }
  0x49   :  { %s7360_s29 = scalar_lea.hbm %s9093_s9, 48 }
  0x4a   :  { %p7361_p4 = scmp.ne.s32.totalorder %s9093_s9, %s7360_s29  ;;  %p7364_p5 = scmp.lt.u32.totalorder %s7360_s29, %s9093_s9 }
  0x4c   :  { %p7366_p6 = pnand %p7364_p5, %p7361_p4 }
  0x4e   :  { %7369 = shalt.err (!%p7366_p6)
}
  0x4f   :  { %s7370_s16 = scalar_lea.vmem %s87_s19, 48  ;;  %s7374_s17 = scalar_lea.vmem %s87_s19, 64 }
  0x50   :  { %p7371_p7 = scmp.ne.s32.totalorder %s87_s19, %s7370_s16  ;;  %p7375_p8 = scmp.lt.s32.totalorder %s87_s19, %s87_s19 }
  0x51   :  { %p7376_p9 = scmp.lt.s32.totalorder %s7374_s17, %s7370_s16 }
  0x53   :  { %p7377_p10 = por %p7376_p9, %p7375_p8 }
  0x55   :  { %p7378_p11 = pnand %p7377_p10, %p7371_p7 }
  0x57   :  { %7381 = shalt.err (!%p7378_p11)
}
  0x58   :  { %89 = dma.hbm_to_vmem [thread:$0]  %s9093_s9, 48, %s87_s19, [#allocation11]  }
  0x59   :  { %7404 = dma.done.wait [#allocation5], 768  }
  0x5a   :  { %7405 = vsyncadd [#allocation5], 4294966528 }
  0x5b   :  { %7406 = dma.done.wait [#allocation8], 6160  }
  0x5c   :  { %7407 = vsyncadd [#allocation8], 4294961136 }
  0x5d   :  { %7408 = dma.done.wait [#allocation11], 6192  }
  0x5e   :  { %7409 = vsyncadd [#allocation11], 4294961104  ;;  %v9104_v0 = vmov 0   ;;  %vm237_vm0 = vcmask 130048   ;;  %v228_v1 = vld [vmem:[%s9095_s11] sm:$0xff]  ;;  %v229_v2 = vld [vmem:[%s9095_s11 + $0x8] sm:$0xff] }
  0x5f   :  { %6900 = vset.pattern.permute.xlu0 %v9104_v0  ;;  %6901 = vset.pattern.permute.xlu1 %v9104_v0  ;;  %v226_v3 = vld [vmem:[%s9085_s1] sm:$0xff]  ;;  %v5854_v4 = vpack.c.bf16 %v229_v2, %v228_v1  ;;  %v227_v6 = vld [vmem:[%s9085_s1 + $0x8] sm:$0xff]  ;;  %v6902_v7 = vld [vmem:[#allocation4] ss:$12 sps:$4 sm:$0xff]   ;;  %vm516_vm1 = vcmask 261120  }
  0x60   :  { %5232 = vmatprep.mubr.msk.f32.mxu0 %vm237_vm0, %v226_v3  ;;  %5239 = vmatprep.mubr.msk.f32.mxu1 %vm237_vm0, %v226_v3  ;;  %v6904_v5 = vld [vmem:[#allocation4 + $0x4] ss:$12 sps:$4 sm:$0xff]   ;;  %v6907_v8 = vld [vmem:[#allocation4 + $0x1c] ss:$12 sps:$4 sm:$0xff]   ;;  %v6913_v18 = vld [vmem:[#allocation4 + $0x20] ss:$12 sps:$4 sm:$0xff]  }
  0x61   :  { %5855 = vmatprep.subr.bf16.mxu0 %v5854_v4  ;;  %v319_v9 = vld [vmem:[%s9097_s13] sm:$0xff]  ;;  %v320_v10 = vld [vmem:[%s9097_s13 + $0x8] sm:$0xff]  ;;  %v118_v14 = vld [vmem:[#allocation7 + $0x10] sm:$0xff] }
  0x62   :  { %5857 = vmatpush3.bf16.msra.mxu0 %v5854_v4  ;;  %v6905_v11 = vld [vmem:[#allocation4 + $0x18] ss:$12 sps:$4 sm:$0xff]   ;;  %v5858_v12 = vpack.c.bf16 %v320_v10, %v319_v9  ;;  %v6911_v13 = vld [vmem:[#allocation4 + $0x8] ss:$12 sps:$4 sm:$0xff]  }
  0x63   :  { %541 = vmatprep.subr.bf16.mxu0 %v6904_v5  ;;  %v121_v15 = vld [vmem:[#allocation7 + $0x28] sm:$0xff]  ;;  %v6908_v17 = vld [vmem:[%s9084_s0] sm:$0xff]   ;;  %v127_v22 = vld [vmem:[#allocation7 + $0x58] sm:$0xff] }
  0x64   :  { %5859 = vmatprep.subr.bf16.mxu1 %v5858_v12  ;;  %v7590_v16 = vpack.c.bf16 %v121_v15, %v118_v14  ;;  %v117_v19 = vld [vmem:[#allocation7 + $0x8] sm:$0xff]  ;;  %v120_v20 = vld [vmem:[#allocation7 + $0x20] sm:$0xff]  ;;  %v119_v26 = vld [vmem:[#allocation7 + $0x18] sm:$0xff] }
  0x65   :  { %5233 = vmatmul.mubr.msk.f32.vlgmr.msra.gmra.mrb[0].mxu0 %vm237_vm0, %v227_v6  ;;  %5861 = vmatpush3.bf16.msra.mxu1 %v5858_v12  ;;  %v124_v21 = vld [vmem:[#allocation7 + $0x40] sm:$0xff]  ;;  %v7601_v24 = vpack.c.bf16 %v120_v20, %v117_v19  ;;  %v123_v27 = vld [vmem:[#allocation7 + $0x38] sm:$0xff]  ;;  %v126_v28 = vld [vmem:[#allocation7 + $0x50] sm:$0xff] }
  0x66   :  { %542 = vmatpush1.bf16.msra.mxu0 %v6902_v7  ;;  %573 = vmatprep.mubr.bf16.mxu0 %v9104_v0  ;;  %v7598_v23 = vpack.c.bf16 %v127_v22, %v124_v21  ;;  %v116_v25 = vld [vmem:[#allocation7] sm:$0xff]  ;;  %v130_v29 = vld [vmem:[#allocation7 + $0x70] sm:$0xff]  ;;  %v133_v30 = vld [vmem:[#allocation7 + $0x88] sm:$0xff]  ;;  %v7617_v35 = vpack.c.bf16 %v126_v28, %v123_v27 }
  0x67   :  { %543 = vmatprep.subr.bf16.mxu0 %v6907_v8  ;;  %5242 = vmatprep.subr.bf16.mxu1 %v6911_v13  ;;  %v6909_v31 = vld [vmem:[%s9084_s0 + $0x8] sm:$0xff]   ;;  %v6910_v32 = vld [vmem:[%s9084_s0 + $0x10] sm:$0xff]   ;;  %v7612_v33 = vpack.c.bf16 %v119_v26, %v116_v25  ;;  %v7614_v34 = vpack.c.bf16 %v133_v30, %v130_v29  ;;  %v132_v39 = vld [vmem:[#allocation7 + $0x80] sm:$0xff] }
  0x68   :  { %5240 = vmatmul.mubr.msk.f32.vlgmr.msra.gmra.mrb[0].mxu1 %vm237_vm0, %v227_v6  ;;  %v122_v36 = vld [vmem:[#allocation7 + $0x30] sm:$0xff]  ;;  %v125_v37 = vld [vmem:[#allocation7 + $0x48] sm:$0xff]  ;;  %v136_v40 = vld [vmem:[#allocation7 + $0xa0] sm:$0xff] }
  0x69   :  { %5243 = vmatpush3.bf16.msra.mxu1 %v6911_v13  ;;  %5246 = vmatprep.mubr.msk.bf16.mxu1 %vm516_vm1, %v6908_v17  ;;  %v129_v38 = vld [vmem:[#allocation7 + $0x68] sm:$0xff]  ;;  %v139_v41 = vld [vmem:[#allocation7 + $0xb8] sm:$0xff]  ;;  %v7626_v43 = vpack.c.bf16 %v125_v37, %v122_v36  ;;  %v128_v44 = vld [vmem:[#allocation7 + $0x60] sm:$0xff] }
  0x6a   :  { %544 = vmatpush1.bf16.msra.mxu0 %v6905_v11  ;;  %5244 = vmatprep.subr.bf16.mxu1 %v6913_v18  ;;  %v7622_v42 = vpack.c.bf16 %v139_v41, %v136_v40  ;;  %v7630_v45 = vpack.c.bf16 %v132_v39, %v129_v38  ;;  %v131_v46 = vld [vmem:[#allocation7 + $0x78] sm:$0xff]  ;;  %v142_v47 = vld [vmem:[#allocation7 + $0xd0] sm:$0xff]  ;;  %v145_v48 = vld [vmem:[#allocation7 + $0xe8] sm:$0xff]  ;;  %v9106_v38 = vmov 0.0  }
  0x6b   :  { %5895 = vmatprep.subr.bf16.mxu0 %v7590_v16  ;;  %v135_v49 = vld [vmem:[#allocation7 + $0x98] sm:$0xff]  ;;  %v138_v50 = vld [vmem:[#allocation7 + $0xb0] sm:$0xff]  ;;  %v7635_v51 = vpack.c.bf16 %v145_v48, %v142_v47  ;;  %v7641_v53 = vpack.c.bf16 %v131_v46, %v128_v44  ;;  %v148_v54 = vld [vmem:[#allocation7 + $0x100] sm:$0xff]  ;;  %v429_v44 = vlaneseq }
  0x6c   :  { %v6912_v52 = vld [vmem:[%s9084_s0 + $0x18] sm:$0xff]   ;;  %v6914_v56 = vld [vmem:[%s9084_s0 + $0x20] sm:$0xff]   ;;  %v7647_v57 = vpack.c.bf16 %v138_v50, %v135_v49  ;;  %v134_v58 = vld [vmem:[#allocation7 + $0x90] sm:$0xff] }
  0x6d   :  { %4723 = vmatmul.mubr.msk.bf16.vlgmr.msra.gmra.mrb[4].mxu0 %vm516_vm1, %v6908_v17  ;;  %5245 = vmatpush3.bf16.msra.mxu1 %v6913_v18  ;;  %v151_v55 = vld [vmem:[#allocation7 + $0x118] sm:$0xff]  ;;  %v137_v59 = vld [vmem:[#allocation7 + $0xa8] sm:$0xff]  ;;  %v144_v61 = vld [vmem:[#allocation7 + $0xe0] sm:$0xff]  ;;  %v7732_v48 = vshrl.u32 %v429_v44, 7 }
  0x6e   :  { %583 = vmatprep.mubr.bf16.mxu0 %v9104_v0  ;;  %5897 = vmatpush3.bf16.msra.mxu0 %v7590_v16  ;;  %v141_v60 = vld [vmem:[#allocation7 + $0xc8] sm:$0xff]  ;;  %v154_v62 = vld [vmem:[#allocation7 + $0x130] sm:$0xff]  ;;  %v140_v63 = vld [vmem:[#allocation7 + $0xc0] sm:$0xff]  ;;  %v7652_v2 = vpack.c.bf16 %v151_v55, %v148_v54  ;;  %v7656_v4 = vpack.c.bf16 %v137_v59, %v134_v58 }
  0x6f   :  { %5899 = vmatprep.subr.bf16.mxu0 %v7598_v23  ;;  %5863 = vmatprep.subr.bf16.mxu1 %v7601_v24  ;;  %v143_v1 = vld [vmem:[#allocation7 + $0xd8] sm:$0xff]  ;;  %v157_v3 = vld [vmem:[#allocation7 + $0x148] sm:$0xff]  ;;  %v150_v6 = vld [vmem:[#allocation7 + $0x110] sm:$0xff]  ;;  %v7660_v7 = vpack.c.bf16 %v144_v61, %v141_v60  ;;  %9111 = vst [vmem:[#allocation18_spill] sm:$0xff] %v7732_v48  ;;  %v9103_v59 = vsub.s32 0, %v7732_v48 }
  0x70   :  { %5247 = vmatmul.mubr.msk.bf16.vlgmr.msra.gmra.mrb[4].mxu1 %vm516_vm1, %v6909_v31  ;;  %v147_v5 = vld [vmem:[#allocation7 + $0xf8] sm:$0xff]  ;;  %v6915_v8 = vld [vmem:[%s9084_s0 + $0x28] sm:$0xff]   ;;  %v146_v9 = vld [vmem:[#allocation7 + $0xf0] sm:$0xff]  ;;  %v7668_v11 = vpack.c.bf16 %v157_v3, %v154_v62  ;;  %v7671_v12 = vpack.c.bf16 %v143_v1, %v140_v63  ;;  %v9102_v62 = vsub.s32 1, %v7732_v48 }
  0x71   :  { %5865 = vmatpush1.bf16.msra.mxu1 %v7612_v33  ;;  %5250 = vmatprep.mubr.msk.bf16.mxu1 %vm516_vm1, %v6910_v32  ;;  %v149_v10 = vld [vmem:[#allocation7 + $0x108] sm:$0xff]  ;;  %v6916_v13 = vld [vmem:[%s9084_s0 + $0x30] sm:$0xff]   ;;  %v156_v15 = vld [vmem:[#allocation7 + $0x140] sm:$0xff]  ;;  %v7677_v17 = vpack.c.bf16 %v150_v6, %v147_v5 }
  0x72   :  { %5901 = vmatpush3.bf16.msra.mxu0 %v7598_v23  ;;  %5867 = vmatprep.subr.bf16.mxu1 %v7617_v35  ;;  %v153_v14 = vld [vmem:[#allocation7 + $0x128] sm:$0xff]  ;;  %v152_v18 = vld [vmem:[#allocation7 + $0x120] sm:$0xff]  ;;  %v155_v19 = vld [vmem:[#allocation7 + $0x138] sm:$0xff]  ;;  %v7684_v20 = vpack.c.bf16 %v149_v10, %v146_v9 }
  0x73   :  { %5903 = vmatprep.subr.bf16.mxu0 %v7614_v34  ;;  %v7688_v21 = vpack.c.bf16 %v156_v15, %v153_v14  ;;  %v159_v22 = vld [vmem:[#allocation7 + $0x158] sm:$0xff]  ;;  %v162_v25 = vld [vmem:[#allocation7 + $0x170] sm:$0xff]  ;;  %v7696_v27 = vpack.c.bf16 %v155_v19, %v152_v18  ;;  %v161_v30 = vld [vmem:[#allocation7 + $0x168] sm:$0xff] }
  0x74   :  { %v6917_v26 = vld [vmem:[%s9084_s0 + $0x38] sm:$0xff]   ;;  %v7699_v28 = vpack.c.bf16 %v162_v25, %v159_v22  ;;  %v158_v29 = vld [vmem:[#allocation7 + $0x150] sm:$0xff]  ;;  %v4703_v39 = vld [vmem:[%s9096_s12] ss:$0 sm:$0xff] }
  0x75   :  { %4724 = vmatmul.mubr.msk.bf16.gmra.mrb[8].mxu0 %vm516_vm1, %v6909_v31  ;;  %5869 = vmatpush1.bf16.msra.mxu1 %v7626_v43  ;;  %v160_v31 = vld [vmem:[#allocation7 + $0x160] sm:$0xff]  ;;  %v163_v36 = vld [vmem:[#allocation7 + $0x178] sm:$0xff] }
  0x76   :  { %593 = vmatprep.mubr.bf16.mxu0 %v9104_v0  ;;  %5905 = vmatpush3.bf16.msra.mxu0 %v7614_v34  ;;  %v7713_v37 = vpack.c.bf16 %v163_v36, %v160_v31 }
  0x77   :  { %5907 = vmatprep.subr.bf16.mxu0 %v7622_v42  ;;  %5871 = vmatprep.subr.bf16.mxu1 %v7630_v45 }
  0x78   :  { %5251 = vmatmul.mubr.msk.bf16.gmra.mrb[8].mxu1 %vm516_vm1, %v6912_v52 }
  0x79   :  { %5873 = vmatpush1.bf16.msra.mxu1 %v7641_v53  ;;  %5254 = vmatprep.mubr.msk.bf16.mxu1 %vm516_vm1, %v6914_v56 }
  0x7a   :  { %5909 = vmatpush3.bf16.msra.mxu0 %v7622_v42  ;;  %5875 = vmatprep.subr.bf16.mxu1 %v7647_v57 }
  0x7b   :  { %5911 = vmatprep.subr.bf16.mxu0 %v7635_v51 }
  0x7d   :  { %4725 = vmatmul.mubr.msk.bf16.gmra.mrb[12].mxu0 %vm516_vm1, %v6910_v32  ;;  %5877 = vmatpush1.bf16.msra.mxu1 %v7656_v4  ;;  %v7711_v32 = vpack.c.bf16 %v161_v30, %v158_v29 }
  0x7e   :  { %603 = vmatprep.mubr.bf16.mxu0 %v9104_v0  ;;  %5913 = vmatpush3.bf16.msra.mxu0 %v7635_v51 }
  0x7f   :  { %5915 = vmatprep.subr.bf16.mxu0 %v7652_v2  ;;  %5879 = vmatprep.subr.bf16.mxu1 %v7660_v7 }
  0x80   :  { %5255 = vmatmul.mubr.msk.bf16.gmra.mrb[12].mxu1 %vm516_vm1, %v6915_v8 }
  0x81   :  { %5881 = vmatpush1.bf16.msra.mxu1 %v7671_v12  ;;  %5258 = vmatprep.mubr.msk.bf16.mxu1 %vm516_vm1, %v6916_v13 }
  0x82   :  { %5917 = vmatpush3.bf16.msra.mxu0 %v7652_v2  ;;  %5883 = vmatprep.subr.bf16.mxu1 %v7677_v17 }
  0x83   :  { %5919 = vmatprep.subr.bf16.mxu0 %v7668_v11 }
  0x85   :  { %4726 = vmatmul.mubr.msk.bf16.gmra.mrb[16].mxu0 %vm516_vm1, %v6912_v52  ;;  %5885 = vmatpush1.bf16.msra.mxu1 %v7684_v20  ;;  %v9101_v52 = vsub.s32 2, %v7732_v48 }
  0x86   :  { %613 = vmatprep.mubr.bf16.mxu0 %v9104_v0  ;;  %5921 = vmatpush3.bf16.msra.mxu0 %v7668_v11 }
  0x87   :  { %5887 = vmatprep.subr.bf16.mxu1 %v7688_v21  ;;  %5923 = vmatprep.subr.bf16.mxu0 %v7713_v37 }
  0x88   :  { %5259 = vmatmul.mubr.msk.bf16.gmra.mrb[16].mxu1 %vm516_vm1, %v6917_v26 }
  0x89   :  { %5889 = vmatpush1.bf16.msra.mxu1 %v7696_v27  ;;  %869 = vmatprep.mubr.f32.mxu1 %v9106_v38 }
  0x8a   :  { %5891 = vmatprep.subr.bf16.mxu1 %v7699_v28  ;;  %5925 = vmatpush3.bf16.msra.mxu0 %v7713_v37 }
  0x8b   :  { %5959 = vmatprep.subr.bf16.mxu0 %v7590_v16 }
  0x8d   :  { %4727 = vmatmul.mubr.msk.bf16.gmra.mrb[20].mxu0 %vm516_vm1, %v6914_v56  ;;  %5893 = vmatpush1.bf16.msra.mxu1 %v7711_v32  ;;  %v427_v56 = vld [vmem:[%s9089_s5] sm:$0x7] }
  0x8e   :  { %623 = vmatprep.mubr.bf16.mxu0 %v9104_v0  ;;  %5927 = vmatprep.subr.bf16.mxu1 %v7601_v24  ;;  %v7761_v61 = vrot.slane %v427_v56, %v9101_v52  ;;  %v7770_v1 = vrot.slane %v427_v56, %v9103_v59  ;;  %v7781_v6 = vrot.slane %v427_v56, %v9102_v62 }
  0x95   :  { %4728 = vmatmul.mubr.msk.bf16.gmra.mrb[24].mxu0 %vm516_vm1, %v6915_v8 }
  0x96   :  { %633 = vmatprep.mubr.bf16.mxu0 %v9104_v0 }
  0x9d   :  { %4729 = vmatmul.mubr.msk.bf16.gmra.mrb[28].mxu0 %vm516_vm1, %v6916_v13 }
  0x9e   :  { %643 = vmatprep.mubr.bf16.mxu0 %v9104_v0 }
  0xa5   :  { %4730 = vmatmul.mubr.msk.bf16.gmra.mrb[32].mxu0 %vm516_vm1, %v6917_v26 }
 0x138   :  { %v5234_v40 = vpop.f32.mrb[0].mxu0 }
 0x139   :  { %v310_v41 = vpop.f32.mrb[1].mxu0  ;;  %v7726_v47 = vadd.f32 %v5234_v40, %v4703_v39 }
 0x13a   :  { %v7724_v46 = vadd.f32 %v4703_v39, %v310_v41 }
 0x13b   :  { %v7734_v49 = vpop.f32.mrb[0].mxu1 }
 0x13c   :  { %870 = vmatmul.mubr.f32.vlgmr.msra.gmra.mrb[2].mxu1 %v7724_v46  ;;  %5294 = vmatprep.mubr.f32.mxu0 %v7724_v46  ;;  %9112 = vst [vmem:[#allocation19_spill] sm:$0xff] %v7734_v49  ;;  %v7738_v50 = vpop.f32.mrb[1].mxu1 }
 0x13d   :  { %5295 = vmatmul.mubr.f32.vlgmr.msra.gmra.mrb[2].mxu0 %v7726_v47  ;;  %875 = vmatprep.mubr.f32.mxu1 %v9106_v38  ;;  %9113 = vst [vmem:[#allocation20_spill] sm:$0xff] %v7738_v50 }
 0x13e   :  { %5929 = vmatpush1.bf16.msra.mxu1 %v7612_v33  ;;  %5961 = vmatpush3.bf16.msra.mxu0 %v7590_v16 }
 0x13f   :  { %5931 = vmatprep.subr.bf16.mxu1 %v7617_v35  ;;  %5963 = vmatprep.subr.bf16.mxu0 %v7598_v23 }
 0x140   :  { %876 = vmatmul.mubr.f32.gmra.mrb[20].mxu1 %v7726_v47  ;;  %v7744_v54 = vpop.f32.mrb[4].mxu0 }
 0x141   :  { %v7746_v55 = vpop.f32.mrb[5].mxu0  ;;  %1073 = vmatprep.mubr.f32.mxu1 %v9106_v38 }
 0x142   :  { %v7752_v58 = vpop.f32.mrb[6].mxu0  ;;  %5933 = vmatpush1.bf16.msra.mxu1 %v7626_v43  ;;  %5965 = vmatpush3.bf16.msra.mxu0 %v7598_v23 }
 0x143   :  { %v7757_v60 = vpop.f32.mrb[7].mxu0  ;;  %5935 = vmatprep.subr.bf16.mxu1 %v7630_v45  ;;  %5967 = vmatprep.subr.bf16.mxu0 %v7614_v34  ;;  %v5248_v63 = vpop.f32.mrb[4].mxu1 }
 0x144   :  { %v7773_v3 = vadd.f32 %v5248_v63, %v7761_v61  ;;  %v7775_v5 = vpop.f32.mrb[5].mxu1 }
 0x145   :  { %v5249_v9 = vpop.f32.mrb[6].mxu1 }
 0x146   :  { %5937 = vmatpush1.bf16.msra.mxu1 %v7641_v53  ;;  %5969 = vmatpush3.bf16.msra.mxu0 %v7614_v34  ;;  %v7787_v14 = vadd.f32 %v5249_v9, %v7761_v61  ;;  %v7789_v15 = vpop.f32.mrb[7].mxu1 }
 0x147   :  { %5939 = vmatprep.subr.bf16.mxu1 %v7647_v57  ;;  %5971 = vmatprep.subr.bf16.mxu0 %v7622_v42 }
 0x148   :  { %v585_v8 = vpop.f32.mrb[8].mxu0 }
 0x149   :  { %v7784_v10 = vadd.f32 %v585_v8, %v7770_v1  ;;  %v587_v13 = vpop.f32.mrb[9].mxu0 }
 0x14a   :  { %v7792_v18 = vadd.f32 %v587_v13, %v7781_v6  ;;  %v589_v19 = vpop.f32.mrb[10].mxu0  ;;  %5941 = vmatpush1.bf16.msra.mxu1 %v7656_v4  ;;  %5973 = vmatpush3.bf16.msra.mxu0 %v7622_v42 }
 0x14b   :  { %v7797_v22 = vadd.f32 %v589_v19, %v7770_v1  ;;  %v591_v25 = vpop.f32.mrb[11].mxu0  ;;  %5943 = vmatprep.subr.bf16.mxu1 %v7660_v7  ;;  %5975 = vmatprep.subr.bf16.mxu0 %v7635_v51  ;;  %v5252_v29 = vpop.f32.mrb[8].mxu1 }
 0x14c   :  { %v7802_v26 = vadd.f32 %v591_v25, %v7781_v6  ;;  %v7807_v30 = vadd.f32 %v5252_v29, %v7761_v61  ;;  %v704_v31 = vpop.f32.mrb[9].mxu1 }
 0x14d   :  { %v7812_v39 = vadd.f32 %v704_v31, %v7761_v61  ;;  %v5253_v40 = vpop.f32.mrb[10].mxu1 }
 0x14e   :  { %5945 = vmatpush1.bf16.msra.mxu1 %v7671_v12  ;;  %5977 = vmatpush3.bf16.msra.mxu0 %v7635_v51  ;;  %9114 = vst [vmem:[#allocation21_spill] sm:$0xff] %v7807_v30  ;;  %v7818_v56 = vadd.f32 %v5253_v40, %v7761_v61  ;;  %v707_v63 = vpop.f32.mrb[11].mxu1 }
 0x14f   :  { %5947 = vmatprep.subr.bf16.mxu1 %v7677_v17  ;;  %5979 = vmatprep.subr.bf16.mxu0 %v7652_v2  ;;  %v7824_v13 = vadd.f32 %v707_v63, %v7761_v61 }
 0x150   :  { %v595_v36 = vpop.f32.mrb[12].mxu0  ;;  %9115 = vst [vmem:[#allocation22_spill] sm:$0xff] %v7818_v56 }
 0x151   :  { %v7815_v41 = vadd.f32 %v595_v36, %v7770_v1  ;;  %v597_v44 = vpop.f32.mrb[13].mxu0 }
 0x152   :  { %v7821_v8 = vadd.f32 %v597_v44, %v7781_v6  ;;  %v599_v9 = vpop.f32.mrb[14].mxu0  ;;  %5949 = vmatpush1.bf16.msra.mxu1 %v7684_v20  ;;  %5981 = vmatpush3.bf16.msra.mxu0 %v7652_v2 }
 0x153   :  { %v7829_v19 = vadd.f32 %v599_v9, %v7770_v1  ;;  %v601_v25 = vpop.f32.mrb[15].mxu0  ;;  %5951 = vmatprep.subr.bf16.mxu1 %v7688_v21  ;;  %5983 = vmatprep.subr.bf16.mxu0 %v7668_v11  ;;  %v5256_v31 = vpop.f32.mrb[12].mxu1 }
 0x154   :  { %v7834_v29 = vadd.f32 %v601_v25, %v7781_v6  ;;  %v7839_v36 = vadd.f32 %v5256_v31, %v7761_v61  ;;  %v720_v40 = vpop.f32.mrb[13].mxu1 }
 0x155   :  { %v7844_v63 = vadd.f32 %v720_v40, %v7761_v61  ;;  %v5257_v9 = vpop.f32.mrb[14].mxu1 }
 0x156   :  { %5953 = vmatpush1.bf16.msra.mxu1 %v7696_v27  ;;  %5985 = vmatpush3.bf16.msra.mxu0 %v7668_v11  ;;  %9116 = vst [vmem:[#allocation23_spill] sm:$0xff] %v7839_v36  ;;  %v7850_v62 = vadd.f32 %v5257_v9, %v7761_v61  ;;  %v723_v59 = vpop.f32.mrb[15].mxu1 }
 0x157   :  { %5955 = vmatprep.subr.bf16.mxu1 %v7699_v28  ;;  %5987 = vmatprep.subr.bf16.mxu0 %v7713_v37  ;;  %9117 = vst [vmem:[#allocation24_spill] sm:$0xff] %v7844_v63  ;;  %v7856_v38 = vadd.f32 %v723_v59, %v7761_v61 }
 0x158   :  { %v605_v44 = vpop.f32.mrb[16].mxu0  ;;  %9118 = vst [vmem:[#allocation25_spill] sm:$0xff] %v7850_v62 }
 0x159   :  { %v7847_v25 = vadd.f32 %v605_v44, %v7770_v1  ;;  %v607_v52 = vpop.f32.mrb[17].mxu0  ;;  %9119 = vst [vmem:[#allocation26_spill] sm:$0xff] %v7856_v38 }
 0x15a   :  { %v7853_v31 = vadd.f32 %v607_v52, %v7781_v6  ;;  %v609_v0 = vpop.f32.mrb[18].mxu0  ;;  %5957 = vmatpush1.bf16.msra.mxu1 %v7711_v32  ;;  %5989 = vmatpush3.bf16.msra.mxu0 %v7713_v37 }
 0x15b   :  { %v7861_v40 = vadd.f32 %v609_v0, %v7770_v1  ;;  %v611_v44 = vpop.f32.mrb[19].mxu0  ;;  %5991 = vmatprep.subr.bf16.mxu1 %v7601_v24  ;;  %6023 = vmatprep.subr.bf16.mxu0 %v7590_v16  ;;  %v5260_v52 = vpop.f32.mrb[16].mxu1 }
 0x15c   :  { %v7866_v9 = vadd.f32 %v611_v44, %v7781_v6  ;;  %v7869_v48 = vadd.f32 %v5260_v52, %v7761_v61  ;;  %v736_v59 = vpop.f32.mrb[17].mxu1 }
 0x15d   :  { %9120 = vst [vmem:[#allocation27_spill] sm:$0xff] %v7861_v40  ;;  %v7872_v50 = vadd.f32 %v736_v59, %v7761_v61  ;;  %v5261_v62 = vpop.f32.mrb[18].mxu1 }
 0x15e   :  { %9121 = vst [vmem:[#allocation28_spill] sm:$0xff] %v7866_v9  ;;  %9122 = vst [vmem:[#allocation29_spill] sm:$0xff] %v7869_v48  ;;  %v7878_v38 = vadd.f32 %v5261_v62, %v7761_v61  ;;  %v739_v63 = vpop.f32.mrb[19].mxu1 }
 0x15f   :  { %9123 = vst [vmem:[#allocation30_spill] sm:$0xff] %v7872_v50  ;;  %v7884_v52 = vadd.f32 %v739_v63, %v7761_v61 }
 0x160   :  { %v615_v49 = vpop.f32.mrb[20].mxu0  ;;  %9125 = vst [vmem:[#allocation32_spill] sm:$0xff] %v7878_v38 }
 0x161   :  { %v7875_v0 = vadd.f32 %v615_v49, %v7770_v1  ;;  %v617_v36 = vpop.f32.mrb[21].mxu0  ;;  %9127 = vst [vmem:[#allocation34_spill] sm:$0xff] %v7884_v52 }
 0x162   :  { %v7881_v44 = vadd.f32 %v617_v36, %v7781_v6  ;;  %v619_v56 = vpop.f32.mrb[22].mxu0 }
 0x163   :  { %9124 = vst [vmem:[#allocation31_spill] sm:$0xff] %v7875_v0  ;;  %v7887_v48 = vadd.f32 %v619_v56, %v7770_v1  ;;  %v621_v59 = vpop.f32.mrb[23].mxu0 }
 0x164   :  { %9126 = vst [vmem:[#allocation33_spill] sm:$0xff] %v7881_v44  ;;  %v7890_v50 = vadd.f32 %v621_v59, %v7781_v6 }
 0x165   :  { %9128 = vst [vmem:[#allocation35_spill] sm:$0xff] %v7887_v48 }
 0x166   :  { %9129 = vst [vmem:[#allocation36_spill] sm:$0xff] %v7890_v50 }
 0x168   :  { %v625_v49 = vpop.f32.mrb[24].mxu0 }
 0x169   :  { %v7893_v0 = vadd.f32 %v625_v49, %v7770_v1  ;;  %v627_v62 = vpop.f32.mrb[25].mxu0 }
 0x16a   :  { %v7896_v38 = vadd.f32 %v627_v62, %v7781_v6  ;;  %v629_v36 = vpop.f32.mrb[26].mxu0 }
 0x16b   :  { %9130 = vst [vmem:[#allocation37_spill] sm:$0xff] %v7893_v0  ;;  %v7899_v44 = vadd.f32 %v629_v36, %v7770_v1  ;;  %v631_v63 = vpop.f32.mrb[27].mxu0 }
 0x16c   :  { %9131 = vst [vmem:[#allocation38_spill] sm:$0xff] %v7896_v38  ;;  %v7902_v56 = vadd.f32 %v631_v63, %v7781_v6 }
 0x16d   :  { %9132 = vst [vmem:[#allocation39_spill] sm:$0xff] %v7899_v44 }
 0x16e   :  { %9133 = vst [vmem:[#allocation40_spill] sm:$0xff] %v7902_v56 }
 0x170   :  { %v635_v52 = vpop.f32.mrb[28].mxu0 }
 0x171   :  { %v7905_v59 = vadd.f32 %v635_v52, %v7770_v1  ;;  %v637_v50 = vpop.f32.mrb[29].mxu0 }
 0x172   :  { %v7908_v49 = vadd.f32 %v637_v50, %v7781_v6  ;;  %v639_v0 = vpop.f32.mrb[30].mxu0 }
 0x173   :  { %9134 = vst [vmem:[#allocation41_spill] sm:$0xff] %v7905_v59  ;;  %v7911_v62 = vadd.f32 %v639_v0, %v7770_v1  ;;  %v641_v38 = vpop.f32.mrb[31].mxu0 }
 0x174   :  { %9135 = vst [vmem:[#allocation42_spill] sm:$0xff] %v7908_v49  ;;  %v7914_v36 = vadd.f32 %v641_v38, %v7781_v6  ;;  %v576_v38 = vadd.f32 %v7744_v54, %v7770_v1 }
 0x175   :  { %9136 = vst [vmem:[#allocation43_spill] sm:$0xff] %v7911_v62 }
 0x176   :  { %9137 = vst [vmem:[#allocation44_spill] sm:$0xff] %v7914_v36  ;;  %v578_v36 = vadd.f32 %v7746_v55, %v7781_v6 }
 0x178   :  { %v645_v44 = vpop.f32.mrb[32].mxu0 }
 0x179   :  { %v7917_v63 = vadd.f32 %v645_v44, %v7770_v1  ;;  %v647_v56 = vpop.f32.mrb[33].mxu0 }
 0x17a   :  { %v7920_v52 = vadd.f32 %v647_v56, %v7781_v6  ;;  %v649_v59 = vpop.f32.mrb[34].mxu0 }
 0x17b   :  { %9138 = vst [vmem:[#allocation45_spill] sm:$0xff] %v7917_v63  ;;  %v7923_v50 = vadd.f32 %v649_v59, %v7770_v1  ;;  %v651_v49 = vpop.f32.mrb[35].mxu0  ;;  %v580_v59 = vadd.f32 %v7752_v58, %v7770_v1 }
 0x17c   :  { %9139 = vst [vmem:[#allocation46_spill] sm:$0xff] %v7920_v52  ;;  %v7926_v0 = vadd.f32 %v651_v49, %v7781_v6  ;;  %v582_v49 = vadd.f32 %v7757_v60, %v7781_v6 }
 0x17d   :  { %9140 = vst [vmem:[#allocation47_spill] sm:$0xff] %v7923_v50 }
 0x17e   :  { %9141 = vst [vmem:[#allocation48_spill] sm:$0xff] %v7926_v0 }
 0x20f   :  { %v871_v44 = vpop.f32.mrb[2].mxu1 }
 0x210   :  { %v957_v63 = vadd.f32 %v871_v44, %v576_v38  ;;  %v873_v62 = vpop.f32.mrb[3].mxu1  ;;  %v5296_v48 = vpop.f32.mrb[2].mxu0 }
 0x211   :  { %v971_v56 = vadd.f32 %v873_v62, %v578_v36  ;;  %v948_v52 = vpop.f32.mrb[3].mxu0 }
 0x212   :  { %v4739_v50 = vmul.f32 -1.442695, %v957_v63  ;;  %v7936_v63 = vld [vmem:[#allocation9] ss:$0 sm:$0xff] }
 0x213   :  { %v877_v0 = vpop.f32.mrb[20].mxu1  ;;  %v4741_v55 = vmul.f32 -1.442695, %v971_v56  ;;  %v986_v56 = vadd.f32 %v5296_v48, %v7936_v63 }
 0x214   :  { %6950 = vpow2.f32 %v4739_v50  ;;  %v958_v30 = vadd.f32 %v877_v0, %v580_v59  ;;  %v879_v54 = vpop.f32.mrb[21].mxu1  ;;  %v985_v50 = vadd.f32 %v7936_v63, %v948_v52 }
 0x215   :  { %v972_v9 = vadd.f32 %v879_v54, %v582_v49  ;;  %v692_v54 = vadd.f32 %v7789_v15, %v7761_v61 }
 0x216   :  { %v4740_v40 = vmul.f32 -1.442695, %v958_v30 }
 0x217   :  { %v4742_v38 = vmul.f32 -1.442695, %v972_v9 }
 0x218   :  { %6952 = vpow2.f32 %v4740_v40  ;;  %v689_v40 = vadd.f32 %v7775_v5, %v7761_v61 }
 0x219   :  { %6954 = vpow2.f32 %v4741_v55 }
 0x21a   :  { %6956 = vpow2.f32 %v4742_v38 }
 0x21e   :  { %v6951_v44 = vpop.eup %6950 }
 0x21f   :  { %v965_v62 = vadd.f32 1.0, %v6951_v44 }
 0x221   :  { %6958 = vrcp.f32 %v965_v62 }
 0x222   :  { %v6953_v36 = vpop.eup %6952 }
 0x223   :  { %v966_v58 = vadd.f32 1.0, %v6953_v36  ;;  %v6955_v1 = vpop.eup %6954 }
 0x224   :  { %v6957_v60 = vpop.eup %6956  ;;  %v979_v6 = vadd.f32 1.0, %v6955_v1 }
 0x225   :  { %6960 = vrcp.f32 %v966_v58  ;;  %v980_v30 = vadd.f32 1.0, %v6957_v60 }
 0x226   :  { %6962 = vrcp.f32 %v979_v6  ;;  %v9142_v6 = vmov 0.0  }
 0x227   :  { %6964 = vrcp.f32 %v980_v30 }
 0x22b   :  { %v6959_v0 = vpop.eup %6958 }
 0x22c   :  { %v987_v9 = vmul.f32 %v6959_v0, %v985_v50 }
 0x22e   :  { %v989_v59 = vadd.f32 %v987_v9, %v689_v40 }
 0x22f   :  { %v6961_v49 = vpop.eup %6960 }
 0x230   :  { %6966 = vtanh.f32 %v989_v59  ;;  %v988_v55 = vmul.f32 %v6961_v49, %v986_v56  ;;  %v6963_v52 = vpop.eup %6962 }
 0x231   :  { %v6965_v44 = vpop.eup %6964  ;;  %v993_v62 = vsub.f32 1.0, %v6963_v52  ;;  %v997_v5 = vmul.f32 %v6963_v52, %v7724_v46 }
 0x232   :  { %v990_v38 = vadd.f32 %v988_v55, %v692_v54  ;;  %v994_v48 = vsub.f32 1.0, %v6965_v44  ;;  %v998_v15 = vmul.f32 %v6965_v44, %v7726_v47 }
 0x234   :  { %6968 = vtanh.f32 %v990_v38 }
 0x23a   :  { %v6967_v36 = vpop.eup %6966 }
 0x23b   :  { %v995_v58 = vmul.f32 %v6967_v36, %v993_v62 }
 0x23d   :  { %v7945_v1 = vadd.f32 %v997_v5, %v995_v58 }
 0x23e   :  { %v6969_v60 = vpop.eup %6968 }
 0x23f   :  { %1074 = vmatmul.mubr.f32.vlgmr.msra.gmra.mrb[22].mxu1 %v7945_v1  ;;  %5329 = vmatprep.mubr.f32.mxu0 %v7945_v1  ;;  %v996_v61 = vmul.f32 %v6969_v60, %v994_v48 }
 0x240   :  { %1079 = vmatprep.mubr.f32.mxu1 %v9142_v6  ;;  %5993 = vmatpush1.bf16.msra.mxu1 %v7612_v33 }
 0x241   :  { %v7952_v50 = vadd.f32 %v998_v15, %v996_v61  ;;  %5995 = vmatprep.subr.bf16.mxu1 %v7617_v35 }
 0x243   :  { %1080 = vmatmul.mubr.f32.gmra.mrb[24].mxu1 %v7952_v50  ;;  %5330 = vmatmul.mubr.f32.vlgmr.msra.gmra.mrb[36].mxu0 %v7952_v50 }
 0x244   :  { %5997 = vmatpush1.bf16.msra.mxu1 %v7626_v43  ;;  %6025 = vmatpush3.bf16.msra.mxu0 %v7590_v16 }
 0x245   :  { %5999 = vmatprep.subr.bf16.mxu1 %v7630_v45  ;;  %6027 = vmatprep.subr.bf16.mxu0 %v7598_v23 }
 0x246   :  { %1277 = vmatprep.mubr.f32.mxu1 %v9142_v6 }
 0x248   :  { %6001 = vmatpush1.bf16.msra.mxu1 %v7641_v53  ;;  %6029 = vmatpush3.bf16.msra.mxu0 %v7598_v23 }
 0x249   :  { %6003 = vmatprep.subr.bf16.mxu1 %v7647_v57  ;;  %6031 = vmatprep.subr.bf16.mxu0 %v7614_v34 }
 0x24c   :  { %6005 = vmatpush1.bf16.msra.mxu1 %v7656_v4  ;;  %6033 = vmatpush3.bf16.msra.mxu0 %v7614_v34 }
 0x24d   :  { %6007 = vmatprep.subr.bf16.mxu1 %v7660_v7  ;;  %6035 = vmatprep.subr.bf16.mxu0 %v7622_v42 }
 0x250   :  { %6009 = vmatpush1.bf16.msra.mxu1 %v7671_v12  ;;  %6037 = vmatpush3.bf16.msra.mxu0 %v7622_v42 }
 0x251   :  { %6011 = vmatprep.subr.bf16.mxu1 %v7677_v17  ;;  %6039 = vmatprep.subr.bf16.mxu0 %v7635_v51 }
 0x254   :  { %6013 = vmatpush1.bf16.msra.mxu1 %v7684_v20  ;;  %6041 = vmatpush3.bf16.msra.mxu0 %v7635_v51 }
 0x255   :  { %6015 = vmatprep.subr.bf16.mxu1 %v7688_v21  ;;  %6043 = vmatprep.subr.bf16.mxu0 %v7652_v2 }
 0x258   :  { %6017 = vmatpush1.bf16.msra.mxu1 %v7696_v27  ;;  %6045 = vmatpush3.bf16.msra.mxu0 %v7652_v2 }
 0x259   :  { %6019 = vmatprep.subr.bf16.mxu1 %v7699_v28  ;;  %6047 = vmatprep.subr.bf16.mxu0 %v7668_v11 }
 0x25c   :  { %6021 = vmatpush1.bf16.msra.mxu1 %v7711_v32  ;;  %6049 = vmatpush3.bf16.msra.mxu0 %v7668_v11 }
 0x25d   :  { %6051 = vmatprep.subr.bf16.mxu0 %v7713_v37  ;;  %6055 = vmatprep.subr.bf16.mxu1 %v7601_v24 }
 0x260   :  { %6053 = vmatpush3.bf16.msra.mxu0 %v7713_v37 }
 0x261   :  { %6087 = vmatprep.subr.bf16.mxu0 %v7590_v16 }
 0x312   :  { %v1075_v46 = vpop.f32.mrb[22].mxu1 }
 0x313   :  { %v1161_v47 = vadd.f32 %v1075_v46, %v7784_v10  ;;  %v1077_v0 = vpop.f32.mrb[23].mxu1 }
 0x314   :  { %v1175_v30 = vadd.f32 %v1077_v0, %v7792_v18 }
 0x315   :  { %v4743_v40 = vmul.f32 -1.442695, %v1161_v47 }
 0x316   :  { %v1081_v9 = vpop.f32.mrb[24].mxu1  ;;  %v5331_v56 = vpop.f32.mrb[36].mxu0  ;;  %v4745_v52 = vmul.f32 -1.442695, %v1175_v30 }
 0x317   :  { %6970 = vpow2.f32 %v4743_v40  ;;  %v1162_v59 = vadd.f32 %v1081_v9, %v7797_v22  ;;  %v1083_v49 = vpop.f32.mrb[25].mxu1  ;;  %v1152_v54 = vpop.f32.mrb[37].mxu0  ;;  %v1190_v15 = vadd.f32 %v5331_v56, %v7936_v63 }
 0x318   :  { %v1176_v55 = vadd.f32 %v1083_v49, %v7802_v26  ;;  %v1189_v22 = vadd.f32 %v7936_v63, %v1152_v54 }
 0x319   :  { %v4744_v38 = vmul.f32 -1.442695, %v1162_v59 }
 0x31a   :  { %v4746_v44 = vmul.f32 -1.442695, %v1176_v55 }
 0x31b   :  { %6972 = vpow2.f32 %v4744_v38 }
 0x31c   :  { %6974 = vpow2.f32 %v4745_v52 }
 0x31d   :  { %6976 = vpow2.f32 %v4746_v44 }
 0x321   :  { %v6971_v62 = vpop.eup %6970 }
 0x322   :  { %v1169_v10 = vadd.f32 1.0, %v6971_v62 }
 0x324   :  { %6978 = vrcp.f32 %v1169_v10 }
 0x325   :  { %v6973_v18 = vpop.eup %6972 }
 0x326   :  { %v1170_v36 = vadd.f32 1.0, %v6973_v18  ;;  %v6975_v58 = vpop.eup %6974 }
 0x327   :  { %v6977_v5 = vpop.eup %6976  ;;  %v1183_v48 = vadd.f32 1.0, %v6975_v58 }
 0x328   :  { %6980 = vrcp.f32 %v1170_v36  ;;  %v1184_v61 = vadd.f32 1.0, %v6977_v5 }
 0x329   :  { %6982 = vrcp.f32 %v1183_v48 }
 0x32a   :  { %6984 = vrcp.f32 %v1184_v61 }
 0x32e   :  { %v6979_v60 = vpop.eup %6978 }
 0x32f   :  { %v1191_v26 = vmul.f32 %v6979_v60, %v1189_v22 }
 0x331   :  { %v1193_v46 = vadd.f32 %v1191_v26, %v7773_v3 }
 0x332   :  { %v6981_v47 = vpop.eup %6980 }
 0x333   :  { %v1192_v0 = vmul.f32 %v6981_v47, %v1190_v15  ;;  %6986 = vtanh.f32 %v1193_v46  ;;  %v6983_v40 = vpop.eup %6982 }
 0x334   :  { %v6985_v9 = vpop.eup %6984  ;;  %v1197_v59 = vsub.f32 1.0, %v6983_v40  ;;  %v1201_v55 = vmul.f32 %v6983_v40, %v7945_v1 }
 0x335   :  { %v1194_v30 = vadd.f32 %v1192_v0, %v7787_v14  ;;  %v1198_v52 = vsub.f32 1.0, %v6985_v9  ;;  %v1202_v44 = vmul.f32 %v6985_v9, %v7952_v50 }
 0x337   :  { %6988 = vtanh.f32 %v1194_v30 }
 0x33d   :  { %v6987_v49 = vpop.eup %6986 }
 0x33e   :  { %v1199_v54 = vmul.f32 %v6987_v49, %v1197_v59 }
 0x340   :  { %v7997_v38 = vadd.f32 %v1201_v55, %v1199_v54 }
 0x341   :  { %v6989_v56 = vpop.eup %6988 }
 0x342   :  { %1278 = vmatmul.mubr.f32.vlgmr.msra.gmra.mrb[26].mxu1 %v7997_v38  ;;  %5364 = vmatprep.mubr.f32.mxu0 %v7997_v38  ;;  %v1200_v3 = vmul.f32 %v6989_v56, %v1198_v52 }
 0x343   :  { %1283 = vmatprep.mubr.f32.mxu1 %v9142_v6  ;;  %6057 = vmatpush1.bf16.msra.mxu1 %v7612_v33 }
 0x344   :  { %v8004_v14 = vadd.f32 %v1202_v44, %v1200_v3  ;;  %6059 = vmatprep.subr.bf16.mxu1 %v7617_v35 }
 0x346   :  { %1284 = vmatmul.mubr.f32.gmra.mrb[28].mxu1 %v8004_v14  ;;  %5365 = vmatmul.mubr.f32.vlgmr.msra.gmra.mrb[38].mxu0 %v8004_v14 }
 0x347   :  { %6061 = vmatpush1.bf16.msra.mxu1 %v7626_v43  ;;  %6089 = vmatpush3.bf16.msra.mxu0 %v7590_v16 }
 0x348   :  { %6063 = vmatprep.subr.bf16.mxu1 %v7630_v45  ;;  %6091 = vmatprep.subr.bf16.mxu0 %v7598_v23 }
 0x349   :  { %1481 = vmatprep.mubr.f32.mxu1 %v9142_v6 }
 0x34b   :  { %6065 = vmatpush1.bf16.msra.mxu1 %v7641_v53  ;;  %6093 = vmatpush3.bf16.msra.mxu0 %v7598_v23 }
 0x34c   :  { %6067 = vmatprep.subr.bf16.mxu1 %v7647_v57  ;;  %6095 = vmatprep.subr.bf16.mxu0 %v7614_v34 }
 0x34f   :  { %6069 = vmatpush1.bf16.msra.mxu1 %v7656_v4  ;;  %6097 = vmatpush3.bf16.msra.mxu0 %v7614_v34 }
 0x350   :  { %6071 = vmatprep.subr.bf16.mxu1 %v7660_v7  ;;  %6099 = vmatprep.subr.bf16.mxu0 %v7622_v42 }
 0x353   :  { %6073 = vmatpush1.bf16.msra.mxu1 %v7671_v12  ;;  %6101 = vmatpush3.bf16.msra.mxu0 %v7622_v42 }
 0x354   :  { %6075 = vmatprep.subr.bf16.mxu1 %v7677_v17  ;;  %6103 = vmatprep.subr.bf16.mxu0 %v7635_v51 }
 0x357   :  { %6077 = vmatpush1.bf16.msra.mxu1 %v7684_v20  ;;  %6105 = vmatpush3.bf16.msra.mxu0 %v7635_v51 }
 0x358   :  { %6079 = vmatprep.subr.bf16.mxu1 %v7688_v21  ;;  %6107 = vmatprep.subr.bf16.mxu0 %v7652_v2 }
 0x35b   :  { %6081 = vmatpush1.bf16.msra.mxu1 %v7696_v27  ;;  %6109 = vmatpush3.bf16.msra.mxu0 %v7652_v2 }
 0x35c   :  { %6083 = vmatprep.subr.bf16.mxu1 %v7699_v28  ;;  %6111 = vmatprep.subr.bf16.mxu0 %v7668_v11 }
 0x35f   :  { %6085 = vmatpush1.bf16.msra.mxu1 %v7711_v32  ;;  %6113 = vmatpush3.bf16.msra.mxu0 %v7668_v11 }
 0x360   :  { %6115 = vmatprep.subr.bf16.mxu0 %v7713_v37  ;;  %6119 = vmatprep.subr.bf16.mxu1 %v7601_v24 }
 0x363   :  { %6117 = vmatpush3.bf16.msra.mxu0 %v7713_v37 }
 0x364   :  { %6151 = vmatprep.subr.bf16.mxu0 %v7590_v16 }
 0x415   :  { %v1279_v62 = vpop.f32.mrb[26].mxu1 }
 0x416   :  { %v1365_v10 = vadd.f32 %v1279_v62, %v7815_v41  ;;  %v1281_v18 = vpop.f32.mrb[27].mxu1 }
 0x417   :  { %v1379_v36 = vadd.f32 %v1281_v18, %v7821_v8 }
 0x418   :  { %v4747_v58 = vmul.f32 -1.442695, %v1365_v10 }
 0x419   :  { %v1285_v5 = vpop.f32.mrb[28].mxu1  ;;  %v5366_v48 = vpop.f32.mrb[38].mxu0  ;;  %v4749_v46 = vmul.f32 -1.442695, %v1379_v36 }
 0x41a   :  { %6990 = vpow2.f32 %v4747_v58  ;;  %v1366_v22 = vadd.f32 %v1285_v5, %v7829_v19  ;;  %v1287_v60 = vpop.f32.mrb[29].mxu1  ;;  %v1356_v61 = vpop.f32.mrb[39].mxu0  ;;  %v1394_v55 = vadd.f32 %v5366_v48, %v7936_v63 }
 0x41b   :  { %v1380_v26 = vadd.f32 %v1287_v60, %v7834_v29  ;;  %v1393_v19 = vadd.f32 %v7936_v63, %v1356_v61 }
 0x41c   :  { %v4748_v15 = vmul.f32 -1.442695, %v1366_v22 }
 0x41d   :  { %v4750_v47 = vmul.f32 -1.442695, %v1380_v26 }
 0x41e   :  { %6992 = vpow2.f32 %v4748_v15 }
 0x41f   :  { %6994 = vpow2.f32 %v4749_v46 }
 0x420   :  { %6996 = vpow2.f32 %v4750_v47 }
 0x424   :  { %v6991_v0 = vpop.eup %6990 }
 0x425   :  { %v1373_v41 = vadd.f32 1.0, %v6991_v0 }
 0x427   :  { %6998 = vrcp.f32 %v1373_v41 }
 0x428   :  { %v6993_v8 = vpop.eup %6992 }
 0x429   :  { %v1374_v30 = vadd.f32 1.0, %v6993_v8  ;;  %v6995_v40 = vpop.eup %6994 }
 0x42a   :  { %v6997_v9 = vpop.eup %6996  ;;  %v1387_v59 = vadd.f32 1.0, %v6995_v40 }
 0x42b   :  { %7000 = vrcp.f32 %v1374_v30  ;;  %v1388_v54 = vadd.f32 1.0, %v6997_v9  ;;  %v9143_v30 = vld [vmem:[#allocation27_spill] sm:$0xff] }
 0x42c   :  { %7002 = vrcp.f32 %v1387_v59 }
 0x42d   :  { %7004 = vrcp.f32 %v1388_v54 }
 0x431   :  { %v6999_v49 = vpop.eup %6998 }
 0x432   :  { %v1395_v29 = vmul.f32 %v6999_v49, %v1393_v19  ;;  %v9144_v19 = vld [vmem:[#allocation28_spill] sm:$0xff] }
 0x434   :  { %v1397_v52 = vadd.f32 %v1395_v29, %v7812_v39 }
 0x435   :  { %v7001_v56 = vpop.eup %7000 }
 0x436   :  { %v1396_v3 = vmul.f32 %v7001_v56, %v1394_v55  ;;  %7006 = vtanh.f32 %v1397_v52  ;;  %v7003_v62 = vpop.eup %7002 }
 0x437   :  { %v7005_v10 = vpop.eup %7004  ;;  %v1401_v18 = vsub.f32 1.0, %v7003_v62  ;;  %v1405_v5 = vmul.f32 %v7003_v62, %v7997_v38 }
 0x438   :  { %v1398_v44 = vadd.f32 %v1396_v3, %v7824_v13  ;;  %v1402_v60 = vsub.f32 1.0, %v7005_v10  ;;  %v1406_v61 = vmul.f32 %v7005_v10, %v8004_v14 }
 0x43a   :  { %7008 = vtanh.f32 %v1398_v44 }
 0x440   :  { %v7007_v36 = vpop.eup %7006 }
 0x441   :  { %v1403_v58 = vmul.f32 %v7007_v36, %v1401_v18 }
 0x443   :  { %v8049_v22 = vadd.f32 %v1405_v5, %v1403_v58 }
 0x444   :  { %v7009_v48 = vpop.eup %7008 }
 0x445   :  { %1482 = vmatmul.mubr.f32.vlgmr.msra.gmra.mrb[30].mxu1 %v8049_v22  ;;  %5399 = vmatprep.mubr.f32.mxu0 %v8049_v22  ;;  %v1404_v39 = vmul.f32 %v7009_v48, %v1402_v60  ;;  %v9145_v60 = vld [vmem:[#allocation21_spill] sm:$0xff] }
 0x446   :  { %1487 = vmatprep.mubr.f32.mxu1 %v9142_v6  ;;  %6121 = vmatpush1.bf16.msra.mxu1 %v7612_v33 }
 0x447   :  { %v8056_v13 = vadd.f32 %v1406_v61, %v1404_v39  ;;  %6123 = vmatprep.subr.bf16.mxu1 %v7617_v35 }
 0x449   :  { %1488 = vmatmul.mubr.f32.gmra.mrb[32].mxu1 %v8056_v13  ;;  %5400 = vmatmul.mubr.f32.vlgmr.msra.gmra.mrb[40].mxu0 %v8056_v13 }
 0x44a   :  { %6125 = vmatpush1.bf16.msra.mxu1 %v7626_v43  ;;  %6153 = vmatpush3.bf16.msra.mxu0 %v7590_v16 }
 0x44b   :  { %6127 = vmatprep.subr.bf16.mxu1 %v7630_v45  ;;  %6155 = vmatprep.subr.bf16.mxu0 %v7598_v23 }
 0x44c   :  { %1685 = vmatprep.mubr.f32.mxu1 %v9142_v6 }
 0x44e   :  { %6129 = vmatpush1.bf16.msra.mxu1 %v7641_v53  ;;  %6157 = vmatpush3.bf16.msra.mxu0 %v7598_v23 }
 0x44f   :  { %6131 = vmatprep.subr.bf16.mxu1 %v7647_v57  ;;  %6159 = vmatprep.subr.bf16.mxu0 %v7614_v34 }
 0x452   :  { %6133 = vmatpush1.bf16.msra.mxu1 %v7656_v4  ;;  %6161 = vmatpush3.bf16.msra.mxu0 %v7614_v34 }
 0x453   :  { %6135 = vmatprep.subr.bf16.mxu1 %v7660_v7  ;;  %6163 = vmatprep.subr.bf16.mxu0 %v7622_v42 }
 0x456   :  { %6137 = vmatpush1.bf16.msra.mxu1 %v7671_v12  ;;  %6165 = vmatpush3.bf16.msra.mxu0 %v7622_v42 }
 0x457   :  { %6139 = vmatprep.subr.bf16.mxu1 %v7677_v17  ;;  %6167 = vmatprep.subr.bf16.mxu0 %v7635_v51 }
 0x45a   :  { %6141 = vmatpush1.bf16.msra.mxu1 %v7684_v20  ;;  %6169 = vmatpush3.bf16.msra.mxu0 %v7635_v51 }
 0x45b   :  { %6143 = vmatprep.subr.bf16.mxu1 %v7688_v21  ;;  %6171 = vmatprep.subr.bf16.mxu0 %v7652_v2 }
 0x45e   :  { %6145 = vmatpush1.bf16.msra.mxu1 %v7696_v27  ;;  %6173 = vmatpush3.bf16.msra.mxu0 %v7652_v2 }
 0x45f   :  { %6147 = vmatprep.subr.bf16.mxu1 %v7699_v28  ;;  %6175 = vmatprep.subr.bf16.mxu0 %v7668_v11 }
 0x462   :  { %6149 = vmatpush1.bf16.msra.mxu1 %v7711_v32  ;;  %6177 = vmatpush3.bf16.msra.mxu0 %v7668_v11 }
 0x463   :  { %6179 = vmatprep.subr.bf16.mxu0 %v7713_v37  ;;  %6183 = vmatprep.subr.bf16.mxu1 %v7601_v24 }
 0x466   :  { %6181 = vmatpush3.bf16.msra.mxu0 %v7713_v37 }
 0x467   :  { %6215 = vmatprep.subr.bf16.mxu0 %v7590_v16 }
 0x518   :  { %v1483_v26 = vpop.f32.mrb[30].mxu1 }
 0x519   :  { %v1569_v15 = vadd.f32 %v1483_v26, %v7847_v25  ;;  %v1485_v46 = vpop.f32.mrb[31].mxu1  ;;  %v9146_v26 = vld [vmem:[#allocation22_spill] sm:$0xff] }
 0x51a   :  { %v1583_v47 = vadd.f32 %v1485_v46, %v7853_v31 }
 0x51b   :  { %v4751_v0 = vmul.f32 -1.442695, %v1569_v15 }
 0x51c   :  { %v1489_v41 = vpop.f32.mrb[32].mxu1  ;;  %v5401_v8 = vpop.f32.mrb[40].mxu0  ;;  %v4753_v29 = vmul.f32 -1.442695, %v1583_v47 }
 0x51d   :  { %7010 = vpow2.f32 %v4751_v0  ;;  %v1570_v40 = vadd.f32 %v1489_v41, %v9143_v30  ;;  %v1491_v9 = vpop.f32.mrb[33].mxu1  ;;  %v1560_v59 = vpop.f32.mrb[41].mxu0  ;;  %v1598_v5 = vadd.f32 %v5401_v8, %v7936_v63 }
 0x51e   :  { %v1584_v49 = vadd.f32 %v1491_v9, %v9144_v19  ;;  %v1597_v10 = vadd.f32 %v7936_v63, %v1560_v59 }
 0x51f   :  { %v4752_v54 = vmul.f32 -1.442695, %v1570_v40 }
 0x520   :  { %v4754_v55 = vmul.f32 -1.442695, %v1584_v49 }
 0x521   :  { %7012 = vpow2.f32 %v4752_v54 }
 0x522   :  { %7014 = vpow2.f32 %v4753_v29 }
 0x523   :  { %7016 = vpow2.f32 %v4754_v55  ;;  %v9147_v55 = vld [vmem:[#allocation31_spill] sm:$0xff] }
 0x527   :  { %v7011_v52 = vpop.eup %7010 }
 0x528   :  { %v1577_v25 = vadd.f32 1.0, %v7011_v52 }
 0x52a   :  { %7018 = vrcp.f32 %v1577_v25 }
 0x52b   :  { %v7013_v31 = vpop.eup %7012 }
 0x52c   :  { %v1578_v56 = vadd.f32 1.0, %v7013_v31  ;;  %v7015_v3 = vpop.eup %7014  ;;  %v9148_v31 = vld [vmem:[#allocation33_spill] sm:$0xff] }
 0x52d   :  { %v7017_v44 = vpop.eup %7016  ;;  %v1591_v62 = vadd.f32 1.0, %v7015_v3 }
 0x52e   :  { %7020 = vrcp.f32 %v1578_v56  ;;  %v1592_v36 = vadd.f32 1.0, %v7017_v44 }
 0x52f   :  { %7022 = vrcp.f32 %v1591_v62 }
 0x530   :  { %7024 = vrcp.f32 %v1592_v36 }
 0x534   :  { %v7019_v18 = vpop.eup %7018 }
 0x535   :  { %v1599_v58 = vmul.f32 %v7019_v18, %v1597_v10  ;;  %v9149_v10 = vld [vmem:[#allocation35_spill] sm:$0xff] }
 0x537   :  { %v1601_v48 = vadd.f32 %v1599_v58, %v9145_v60 }
 0x538   :  { %v7021_v39 = vpop.eup %7020 }
 0x539   :  { %v1600_v61 = vmul.f32 %v7021_v39, %v1598_v5  ;;  %7026 = vtanh.f32 %v1601_v48  ;;  %v7023_v46 = vpop.eup %7022  ;;  %v9150_v5 = vld [vmem:[#allocation36_spill] sm:$0xff] }
 0x53a   :  { %v7025_v47 = vpop.eup %7024  ;;  %v1605_v0 = vsub.f32 1.0, %v7023_v46  ;;  %v1609_v40 = vmul.f32 %v7023_v46, %v8049_v22 }
 0x53b   :  { %v1602_v15 = vadd.f32 %v1600_v61, %v9146_v26  ;;  %v1606_v59 = vsub.f32 1.0, %v7025_v47  ;;  %v1610_v49 = vmul.f32 %v7025_v47, %v8056_v13 }
 0x53d   :  { %7028 = vtanh.f32 %v1602_v15 }
 0x543   :  { %v7027_v41 = vpop.eup %7026 }
 0x544   :  { %v1607_v30 = vmul.f32 %v7027_v41, %v1605_v0 }
 0x546   :  { %v8101_v9 = vadd.f32 %v1609_v40, %v1607_v30 }
 0x547   :  { %v7029_v8 = vpop.eup %7028 }
 0x548   :  { %1686 = vmatmul.mubr.f32.vlgmr.msra.gmra.mrb[34].mxu1 %v8101_v9  ;;  %5434 = vmatprep.mubr.f32.mxu0 %v8101_v9  ;;  %v1608_v19 = vmul.f32 %v7029_v8, %v1606_v59 }
 0x549   :  { %1691 = vmatprep.mubr.f32.mxu1 %v9142_v6  ;;  %6185 = vmatpush1.bf16.msra.mxu1 %v7612_v33 }
 0x54a   :  { %v8108_v54 = vadd.f32 %v1610_v49, %v1608_v19  ;;  %6187 = vmatprep.subr.bf16.mxu1 %v7617_v35 }
 0x54c   :  { %1692 = vmatmul.mubr.f32.gmra.mrb[36].mxu1 %v8108_v54  ;;  %5435 = vmatmul.mubr.f32.vlgmr.msra.gmra.mrb[42].mxu0 %v8108_v54 }
 0x54d   :  { %6189 = vmatpush1.bf16.msra.mxu1 %v7626_v43  ;;  %6217 = vmatpush3.bf16.msra.mxu0 %v7590_v16 }
 0x54e   :  { %6191 = vmatprep.subr.bf16.mxu1 %v7630_v45  ;;  %6219 = vmatprep.subr.bf16.mxu0 %v7598_v23 }
 0x54f   :  { %1889 = vmatprep.mubr.f32.mxu1 %v9142_v6 }
 0x551   :  { %6193 = vmatpush1.bf16.msra.mxu1 %v7641_v53  ;;  %6221 = vmatpush3.bf16.msra.mxu0 %v7598_v23 }
 0x552   :  { %6195 = vmatprep.subr.bf16.mxu1 %v7647_v57  ;;  %6223 = vmatprep.subr.bf16.mxu0 %v7614_v34 }
 0x555   :  { %6197 = vmatpush1.bf16.msra.mxu1 %v7656_v4  ;;  %6225 = vmatpush3.bf16.msra.mxu0 %v7614_v34 }
 0x556   :  { %6199 = vmatprep.subr.bf16.mxu1 %v7660_v7  ;;  %6227 = vmatprep.subr.bf16.mxu0 %v7622_v42 }
 0x559   :  { %6201 = vmatpush1.bf16.msra.mxu1 %v7671_v12  ;;  %6229 = vmatpush3.bf16.msra.mxu0 %v7622_v42 }
 0x55a   :  { %6203 = vmatprep.subr.bf16.mxu1 %v7677_v17  ;;  %6231 = vmatprep.subr.bf16.mxu0 %v7635_v51 }
 0x55d   :  { %6205 = vmatpush1.bf16.msra.mxu1 %v7684_v20  ;;  %6233 = vmatpush3.bf16.msra.mxu0 %v7635_v51 }
 0x55e   :  { %6207 = vmatprep.subr.bf16.mxu1 %v7688_v21  ;;  %6235 = vmatprep.subr.bf16.mxu0 %v7652_v2 }
 0x561   :  { %6209 = vmatpush1.bf16.msra.mxu1 %v7696_v27  ;;  %6237 = vmatpush3.bf16.msra.mxu0 %v7652_v2 }
 0x562   :  { %6211 = vmatprep.subr.bf16.mxu1 %v7699_v28  ;;  %6239 = vmatprep.subr.bf16.mxu0 %v7668_v11 }
 0x565   :  { %6213 = vmatpush1.bf16.msra.mxu1 %v7711_v32  ;;  %6241 = vmatpush3.bf16.msra.mxu0 %v7668_v11 }
 0x566   :  { %6243 = vmatprep.subr.bf16.mxu0 %v7713_v37  ;;  %6247 = vmatprep.subr.bf16.mxu1 %v7601_v24 }
 0x569   :  { %6245 = vmatpush3.bf16.msra.mxu0 %v7713_v37 }
 0x56a   :  { %6279 = vmatprep.subr.bf16.mxu0 %v7590_v16 }
 0x61b   :  { %v1687_v29 = vpop.f32.mrb[34].mxu1 }
 0x61c   :  { %v1773_v52 = vadd.f32 %v1687_v29, %v9147_v55  ;;  %v1689_v25 = vpop.f32.mrb[35].mxu1  ;;  %v9151_v29 = vld [vmem:[#allocation24_spill] sm:$0xff] }
 0x61d   :  { %v1787_v56 = vadd.f32 %v1689_v25, %v9148_v31  ;;  %v9152_v31 = vld [vmem:[#allocation26_spill] sm:$0xff] }
 0x61e   :  { %v4755_v3 = vmul.f32 -1.442695, %v1773_v52 }
 0x61f   :  { %v1693_v44 = vpop.f32.mrb[36].mxu1  ;;  %v5436_v62 = vpop.f32.mrb[42].mxu0  ;;  %v4757_v39 = vmul.f32 -1.442695, %v1787_v56 }
 0x620   :  { %7030 = vpow2.f32 %v4755_v3  ;;  %v1774_v18 = vadd.f32 %v1693_v44, %v9149_v10  ;;  %v1695_v36 = vpop.f32.mrb[37].mxu1  ;;  %v1764_v58 = vpop.f32.mrb[43].mxu0  ;;  %v1802_v49 = vadd.f32 %v5436_v62, %v7936_v63 }
 0x621   :  { %v1788_v60 = vadd.f32 %v1695_v36, %v9150_v5  ;;  %v1801_v40 = vadd.f32 %v7936_v63, %v1764_v58 }
 0x622   :  { %v4756_v48 = vmul.f32 -1.442695, %v1774_v18 }
 0x623   :  { %v4758_v61 = vmul.f32 -1.442695, %v1788_v60 }
 0x624   :  { %7032 = vpow2.f32 %v4756_v48 }
 0x625   :  { %7034 = vpow2.f32 %v4757_v39 }
 0x626   :  { %7036 = vpow2.f32 %v4758_v61 }
 0x62a   :  { %v7031_v26 = vpop.eup %7030 }
 0x62b   :  { %v1781_v15 = vadd.f32 1.0, %v7031_v26 }
 0x62d   :  { %7038 = vrcp.f32 %v1781_v15  ;;  %v9153_v15 = vld [vmem:[#allocation37_spill] sm:$0xff] }
 0x62e   :  { %v7033_v46 = vpop.eup %7032 }
 0x62f   :  { %v1782_v47 = vadd.f32 1.0, %v7033_v46  ;;  %v7035_v0 = vpop.eup %7034 }
 0x630   :  { %v7037_v41 = vpop.eup %7036  ;;  %v1795_v30 = vadd.f32 1.0, %v7035_v0  ;;  %v9154_v0 = vld [vmem:[#allocation38_spill] sm:$0xff] }
 0x631   :  { %7040 = vrcp.f32 %v1782_v47  ;;  %v1796_v8 = vadd.f32 1.0, %v7037_v41 }
 0x632   :  { %7042 = vrcp.f32 %v1795_v30 }
 0x633   :  { %7044 = vrcp.f32 %v1796_v8  ;;  %v9155_v8 = vld [vmem:[#allocation39_spill] sm:$0xff] }
 0x637   :  { %v7039_v59 = vpop.eup %7038 }
 0x638   :  { %v1803_v19 = vmul.f32 %v7039_v59, %v1801_v40 }
 0x63a   :  { %v1805_v55 = vadd.f32 %v1803_v19, %v9151_v29 }
 0x63b   :  { %v7041_v52 = vpop.eup %7040 }
 0x63c   :  { %v1804_v25 = vmul.f32 %v7041_v52, %v1802_v49  ;;  %7046 = vtanh.f32 %v1805_v55  ;;  %v7043_v3 = vpop.eup %7042  ;;  %v9156_v55 = vld [vmem:[#allocation40_spill] sm:$0xff] }
 0x63d   :  { %v7045_v44 = vpop.eup %7044  ;;  %v1809_v10 = vsub.f32 1.0, %v7043_v3  ;;  %v1813_v58 = vmul.f32 %v7043_v3, %v8101_v9 }
 0x63e   :  { %v1806_v56 = vadd.f32 %v1804_v25, %v9152_v31  ;;  %v1810_v60 = vsub.f32 1.0, %v7045_v44  ;;  %v1814_v39 = vmul.f32 %v7045_v44, %v8108_v54 }
 0x640   :  { %7048 = vtanh.f32 %v1806_v56 }
 0x646   :  { %v7047_v18 = vpop.eup %7046 }
 0x647   :  { %v1811_v36 = vmul.f32 %v7047_v18, %v1809_v10 }
 0x649   :  { %v8153_v5 = vadd.f32 %v1813_v58, %v1811_v36 }
 0x64a   :  { %v7049_v62 = vpop.eup %7048 }
 0x64b   :  { %1890 = vmatmul.mubr.f32.vlgmr.msra.gmra.mrb[38].mxu1 %v8153_v5  ;;  %5469 = vmatprep.mubr.f32.mxu0 %v8153_v5  ;;  %v1812_v48 = vmul.f32 %v7049_v62, %v1810_v60 }
 0x64c   :  { %1895 = vmatprep.mubr.f32.mxu1 %v9142_v6  ;;  %6249 = vmatpush1.bf16.msra.mxu1 %v7612_v33 }
 0x64d   :  { %v8160_v61 = vadd.f32 %v1814_v39, %v1812_v48  ;;  %6251 = vmatprep.subr.bf16.mxu1 %v7617_v35 }
 0x64f   :  { %1896 = vmatmul.mubr.f32.gmra.mrb[40].mxu1 %v8160_v61  ;;  %5470 = vmatmul.mubr.f32.vlgmr.msra.gmra.mrb[44].mxu0 %v8160_v61 }
 0x650   :  { %6253 = vmatpush1.bf16.msra.mxu1 %v7626_v43  ;;  %6281 = vmatpush3.bf16.msra.mxu0 %v7590_v16 }
 0x651   :  { %6255 = vmatprep.subr.bf16.mxu1 %v7630_v45  ;;  %6283 = vmatprep.subr.bf16.mxu0 %v7598_v23 }
 0x652   :  { %2093 = vmatprep.mubr.f32.mxu1 %v9142_v6 }
 0x654   :  { %6257 = vmatpush1.bf16.msra.mxu1 %v7641_v53  ;;  %6285 = vmatpush3.bf16.msra.mxu0 %v7598_v23 }
 0x655   :  { %6259 = vmatprep.subr.bf16.mxu1 %v7647_v57  ;;  %6287 = vmatprep.subr.bf16.mxu0 %v7614_v34 }
 0x658   :  { %6261 = vmatpush1.bf16.msra.mxu1 %v7656_v4  ;;  %6289 = vmatpush3.bf16.msra.mxu0 %v7614_v34 }
 0x659   :  { %6263 = vmatprep.subr.bf16.mxu1 %v7660_v7  ;;  %6291 = vmatprep.subr.bf16.mxu0 %v7622_v42 }
 0x65c   :  { %6265 = vmatpush1.bf16.msra.mxu1 %v7671_v12  ;;  %6293 = vmatpush3.bf16.msra.mxu0 %v7622_v42 }
 0x65d   :  { %6267 = vmatprep.subr.bf16.mxu1 %v7677_v17  ;;  %6295 = vmatprep.subr.bf16.mxu0 %v7635_v51 }
 0x660   :  { %6269 = vmatpush1.bf16.msra.mxu1 %v7684_v20  ;;  %6297 = vmatpush3.bf16.msra.mxu0 %v7635_v51 }
 0x661   :  { %6271 = vmatprep.subr.bf16.mxu1 %v7688_v21  ;;  %6299 = vmatprep.subr.bf16.mxu0 %v7652_v2 }
 0x664   :  { %6273 = vmatpush1.bf16.msra.mxu1 %v7696_v27  ;;  %6301 = vmatpush3.bf16.msra.mxu0 %v7652_v2 }
 0x665   :  { %6275 = vmatprep.subr.bf16.mxu1 %v7699_v28  ;;  %6303 = vmatprep.subr.bf16.mxu0 %v7668_v11 }
 0x668   :  { %6277 = vmatpush1.bf16.msra.mxu1 %v7711_v32  ;;  %6305 = vmatpush3.bf16.msra.mxu0 %v7668_v11 }
 0x669   :  { %6307 = vmatprep.subr.bf16.mxu0 %v7713_v37  ;;  %6311 = vmatprep.subr.bf16.mxu1 %v7601_v24 }
 0x66c   :  { %6309 = vmatpush3.bf16.msra.mxu0 %v7713_v37 }
 0x66d   :  { %6343 = vmatprep.subr.bf16.mxu0 %v7590_v16 }
 0x71e   :  { %v1891_v26 = vpop.f32.mrb[38].mxu1 }
 0x71f   :  { %v1977_v46 = vadd.f32 %v1891_v26, %v9153_v15  ;;  %v1893_v47 = vpop.f32.mrb[39].mxu1  ;;  %v9157_v15 = vld [vmem:[#allocation23_spill] sm:$0xff] }
 0x720   :  { %v1991_v41 = vadd.f32 %v1893_v47, %v9154_v0 }
 0x721   :  { %v4759_v30 = vmul.f32 -1.442695, %v1977_v46 }
 0x722   :  { %v1897_v40 = vpop.f32.mrb[40].mxu1  ;;  %v5471_v59 = vpop.f32.mrb[44].mxu0  ;;  %v4761_v25 = vmul.f32 -1.442695, %v1991_v41  ;;  %v9158_v41 = vld [vmem:[#allocation25_spill] sm:$0xff] }
 0x723   :  { %7050 = vpow2.f32 %v4759_v30  ;;  %v1978_v19 = vadd.f32 %v1897_v40, %v9155_v8  ;;  %v1899_v49 = vpop.f32.mrb[41].mxu1  ;;  %v1968_v29 = vpop.f32.mrb[45].mxu0  ;;  %v2006_v26 = vadd.f32 %v5471_v59, %v7936_v63 }
 0x724   :  { %v1992_v24 = vadd.f32 %v1899_v49, %v9156_v55  ;;  %v2005_v60 = vadd.f32 %v7936_v63, %v1968_v29 }
 0x725   :  { %v4760_v52 = vmul.f32 -1.442695, %v1978_v19 }
 0x726   :  { %v4762_v31 = vmul.f32 -1.442695, %v1992_v24 }
 0x727   :  { %7052 = vpow2.f32 %v4760_v52 }
 0x728   :  { %7054 = vpow2.f32 %v4761_v25 }
 0x729   :  { %7056 = vpow2.f32 %v4762_v31 }
 0x72d   :  { %v7051_v56 = vpop.eup %7050 }
 0x72e   :  { %v1985_v3 = vadd.f32 1.0, %v7051_v56 }
 0x730   :  { %7058 = vrcp.f32 %v1985_v3 }
 0x731   :  { %v7053_v44 = vpop.eup %7052 }
 0x732   :  { %v1986_v10 = vadd.f32 1.0, %v7053_v44  ;;  %v7055_v18 = vpop.eup %7054 }
 0x733   :  { %v7057_v36 = vpop.eup %7056  ;;  %v1999_v58 = vadd.f32 1.0, %v7055_v18  ;;  %v8259_v18 = vld [vmem:[#allocation9] ss:$0 sm:$0xff] }
 0x734   :  { %7060 = vrcp.f32 %v1986_v10  ;;  %v2000_v48 = vadd.f32 1.0, %v7057_v36 }
 0x735   :  { %7062 = vrcp.f32 %v1999_v58 }
 0x736   :  { %7064 = vrcp.f32 %v2000_v48 }
 0x73a   :  { %v7059_v62 = vpop.eup %7058 }
 0x73b   :  { %v2007_v39 = vmul.f32 %v7059_v62, %v2005_v60 }
 0x73d   :  { %v2009_v46 = vadd.f32 %v2007_v39, %v9157_v15  ;;  %v9163_v39 = vld [vmem:[#allocation30_spill] sm:$0xff] }
 0x73e   :  { %v7061_v47 = vpop.eup %7060 }
 0x73f   :  { %v2008_v0 = vmul.f32 %v7061_v47, %v2006_v26  ;;  %7066 = vtanh.f32 %v2009_v46  ;;  %v7063_v40 = vpop.eup %7062  ;;  %v9164_v47 = vld [vmem:[#allocation34_spill] sm:$0xff] }
 0x740   :  { %v7065_v8 = vpop.eup %7064  ;;  %v2013_v19 = vsub.f32 1.0, %v7063_v40  ;;  %v2017_v55 = vmul.f32 %v7063_v40, %v8153_v5 }
 0x741   :  { %v2010_v30 = vadd.f32 %v2008_v0, %v9158_v41  ;;  %v2014_v52 = vsub.f32 1.0, %v7065_v8  ;;  %v2018_v25 = vmul.f32 %v7065_v8, %v8160_v61 }
 0x743   :  { %7068 = vtanh.f32 %v2010_v30 }
 0x749   :  { %v7067_v49 = vpop.eup %7066 }
 0x74a   :  { %v2015_v29 = vmul.f32 %v7067_v49, %v2013_v19 }
 0x74c   :  { %v8205_v24 = vadd.f32 %v2017_v55, %v2015_v29  ;;  %v6918_v29 = vld [vmem:[%s9091_s7] ss:$12 sps:$4 sm:$0xff]  }
 0x74d   :  { %v7069_v63 = vpop.eup %7068 }
 0x74e   :  { %2094 = vmatmul.mubr.f32.vlgmr.msra.gmra.mrb[42].mxu1 %v8205_v24  ;;  %5504 = vmatprep.mubr.f32.mxu0 %v8205_v24  ;;  %v2016_v59 = vmul.f32 %v7069_v63, %v2014_v52  ;;  %v6923_v52 = vld [vmem:[%s9091_s7 + $0x1c] ss:$12 sps:$4 sm:$0xff]  }
 0x74f   :  { %2099 = vmatprep.mubr.f32.mxu1 %v9142_v6  ;;  %6313 = vmatpush1.bf16.msra.mxu1 %v7612_v33 }
 0x750   :  { %v8212_v31 = vadd.f32 %v2018_v25, %v2016_v59  ;;  %6315 = vmatprep.subr.bf16.mxu1 %v7617_v35 }
 0x752   :  { %2100 = vmatmul.mubr.f32.gmra.mrb[44].mxu1 %v8212_v31  ;;  %5505 = vmatmul.mubr.f32.vlgmr.msra.gmra.mrb[46].mxu0 %v8212_v31 }
 0x753   :  { %6317 = vmatpush1.bf16.msra.mxu1 %v7626_v43  ;;  %6345 = vmatpush3.bf16.msra.mxu0 %v7590_v16  ;;  %v6920_v16 = vld [vmem:[%s9091_s7 + $0x4] ss:$12 sps:$4 sm:$0xff]  }
 0x754   :  { %6319 = vmatprep.subr.bf16.mxu1 %v7630_v45  ;;  %6347 = vmatprep.subr.bf16.mxu0 %v7598_v23  ;;  %v9160_v43 = vld [vmem:[#allocation42_spill] sm:$0xff] }
 0x755   :  { %2297 = vmatprep.mubr.f32.mxu1 %v9142_v6 }
 0x757   :  { %6321 = vmatpush1.bf16.msra.mxu1 %v7641_v53  ;;  %6349 = vmatpush3.bf16.msra.mxu0 %v7598_v23  ;;  %v8252_v23 = vld [vmem:[%s9091_s7 + $0x8] ss:$12 sps:$4 sm:$0xff]  }
 0x758   :  { %6323 = vmatprep.subr.bf16.mxu1 %v7647_v57  ;;  %6351 = vmatprep.subr.bf16.mxu0 %v7614_v34 }
 0x75b   :  { %6325 = vmatpush1.bf16.msra.mxu1 %v7656_v4  ;;  %6353 = vmatpush3.bf16.msra.mxu0 %v7614_v34  ;;  %v9159_v34 = vld [vmem:[#allocation41_spill] sm:$0xff] }
 0x75c   :  { %6327 = vmatprep.subr.bf16.mxu1 %v7660_v7  ;;  %6355 = vmatprep.subr.bf16.mxu0 %v7622_v42 }
 0x75f   :  { %6329 = vmatpush1.bf16.msra.mxu1 %v7671_v12  ;;  %6357 = vmatpush3.bf16.msra.mxu0 %v7622_v42  ;;  %v9162_v12 = vld [vmem:[#allocation44_spill] sm:$0xff] }
 0x760   :  { %6331 = vmatprep.subr.bf16.mxu1 %v7677_v17  ;;  %6359 = vmatprep.subr.bf16.mxu0 %v7635_v51 }
 0x763   :  { %6333 = vmatpush1.bf16.msra.mxu1 %v7684_v20  ;;  %6361 = vmatpush3.bf16.msra.mxu0 %v7635_v51 }
 0x764   :  { %6335 = vmatprep.subr.bf16.mxu1 %v7688_v21  ;;  %6363 = vmatprep.subr.bf16.mxu0 %v7652_v2 }
 0x767   :  { %6337 = vmatpush1.bf16.msra.mxu1 %v7696_v27  ;;  %6365 = vmatpush3.bf16.msra.mxu0 %v7652_v2  ;;  %v9161_v2 = vld [vmem:[#allocation43_spill] sm:$0xff] }
 0x768   :  { %6339 = vmatprep.subr.bf16.mxu1 %v7699_v28  ;;  %6367 = vmatprep.subr.bf16.mxu0 %v7668_v11 }
 0x76b   :  { %6341 = vmatpush1.bf16.msra.mxu1 %v7711_v32  ;;  %6369 = vmatpush3.bf16.msra.mxu0 %v7668_v11 }
 0x76c   :  { %6371 = vmatprep.subr.bf16.mxu0 %v7713_v37  ;;  %2616 = vmatprep.subr.bf16.mxu1 %v6920_v16 }
 0x76f   :  { %6373 = vmatpush3.bf16.msra.mxu0 %v7713_v37 }
 0x770   :  { %5542 = vmatprep.subr.bf16.mxu0 %v8252_v23 }
 0x821   :  { %v2095_v33 = vpop.f32.mrb[42].mxu1 }
 0x822   :  { %v2181_v35 = vadd.f32 %v2095_v33, %v9159_v34  ;;  %v2097_v42 = vpop.f32.mrb[43].mxu1  ;;  %v6921_v33 = vld [vmem:[%s9091_s7 + $0x18] ss:$12 sps:$4 sm:$0xff]  }
 0x823   :  { %v2195_v45 = vadd.f32 %v2097_v42, %v9160_v43  ;;  %v6928_v42 = vld [vmem:[%s9091_s7 + $0x20] ss:$12 sps:$4 sm:$0xff]   ;;  %v1001_v43 = vpack.c.bf16 %v7952_v50, %v7945_v1  ;;  %v6929_v1 = vld [vmem:[%s9091_s7 + $0x48] ss:$12 sps:$4 sm:$0xff]   ;;  %v6935_v50 = vld [vmem:[%s9091_s7 + $0x64] ss:$12 sps:$4 sm:$0xff]  }
 0x824   :  { %v4763_v51 = vmul.f32 -1.442695, %v2181_v35  ;;  %v6927_v35 = vld [vmem:[%s9091_s7 + $0x34] ss:$12 sps:$4 sm:$0xff]  }
 0x825   :  { %v2101_v53 = vpop.f32.mrb[44].mxu1  ;;  %v5506_v57 = vpop.f32.mrb[46].mxu0  ;;  %v4765_v21 = vmul.f32 -1.442695, %v2195_v45  ;;  %v6925_v45 = vld [vmem:[%s9091_s7 + $0x30] ss:$12 sps:$4 sm:$0xff]  }
 0x826   :  { %7070 = vpow2.f32 %v4763_v51  ;;  %v2182_v4 = vadd.f32 %v2101_v53, %v9161_v2  ;;  %v2103_v7 = vpop.f32.mrb[45].mxu1  ;;  %v2172_v11 = vpop.f32.mrb[47].mxu0  ;;  %v2210_v48 = vadd.f32 %v8259_v18, %v5506_v57  ;;  %v6931_v51 = vld [vmem:[%s9091_s7 + $0x4c] ss:$12 sps:$4 sm:$0xff]   ;;  %v9165_v57 = vmov 0  }
 0x827   :  { %v2196_v17 = vadd.f32 %v2103_v7, %v9162_v12  ;;  %v2209_v36 = vadd.f32 %v8259_v18, %v2172_v11  ;;  %v6932_v53 = vld [vmem:[%s9091_s7 + $0x38] ss:$12 sps:$4 sm:$0xff]   ;;  %v6933_v2 = vld [vmem:[%s9091_s7 + $0x60] ss:$12 sps:$4 sm:$0xff]   ;;  %v6940_v7 = vld [vmem:[%s9091_s7 + $0x68] ss:$12 sps:$4 sm:$0xff]  }
 0x828   :  { %v4764_v20 = vmul.f32 -1.442695, %v2182_v4  ;;  %v6939_v4 = vld [vmem:[%s9091_s7 + $0x7c] ss:$12 sps:$4 sm:$0xff]   ;;  %v6937_v11 = vld [vmem:[%s9091_s7 + $0x78] ss:$12 sps:$4 sm:$0xff]  }
 0x829   :  { %v4766_v27 = vmul.f32 -1.442695, %v2196_v17  ;;  %v6943_v12 = vld [vmem:[%s9091_s7 + $0x94] ss:$12 sps:$4 sm:$0xff]  }
 0x82a   :  { %7072 = vpow2.f32 %v4764_v20  ;;  %v6944_v17 = vld [vmem:[%s9091_s7 + $0x80] ss:$12 sps:$4 sm:$0xff]   ;;  %v6941_v20 = vld [vmem:[%s9091_s7 + $0x90] ss:$12 sps:$4 sm:$0xff]  }
 0x82b   :  { %7074 = vpow2.f32 %v4765_v21  ;;  %v6947_v21 = vld [vmem:[%s9091_s7 + $0xac] ss:$12 sps:$4 sm:$0xff]  }
 0x82c   :  { %7076 = vpow2.f32 %v4766_v27  ;;  %v6948_v27 = vld [vmem:[%s9091_s7 + $0x98] ss:$12 sps:$4 sm:$0xff]  }
 0x830   :  { %v7071_v28 = vpop.eup %7070 }
 0x831   :  { %v2189_v32 = vadd.f32 1.0, %v7071_v28  ;;  %v6945_v28 = vld [vmem:[%s9091_s7 + $0xa8] ss:$12 sps:$4 sm:$0xff]  }
 0x833   :  { %7078 = vrcp.f32 %v2189_v32  ;;  %v6949_v32 = vld [vmem:[%s9091_s7 + $0xb0] ss:$12 sps:$4 sm:$0xff]  }
 0x834   :  { %v7073_v37 = vpop.eup %7072 }
 0x835   :  { %v2190_v56 = vadd.f32 1.0, %v7073_v37  ;;  %v7075_v3 = vpop.eup %7074  ;;  %v1205_v37 = vpack.c.bf16 %v8004_v14, %v7997_v38  ;;  %v2021_v38 = vpack.c.bf16 %v8212_v31, %v8205_v24 }
 0x836   :  { %v7077_v44 = vpop.eup %7076  ;;  %v2203_v10 = vadd.f32 1.0, %v7075_v3  ;;  %v1613_v3 = vpack.c.bf16 %v8108_v54, %v8101_v9  ;;  %v165_v9 = vld [vmem:[#allocation10 + $0x8] sm:$0xff] }
 0x837   :  { %7080 = vrcp.f32 %v2190_v56  ;;  %v2204_v60 = vadd.f32 1.0, %v7077_v44  ;;  %v1409_v56 = vpack.c.bf16 %v8056_v13, %v8049_v22  ;;  %v1817_v44 = vpack.c.bf16 %v8160_v61, %v8153_v5  ;;  %v166_v22 = vld [vmem:[#allocation10 + $0x10] sm:$0xff]  ;;  %v169_v13 = vld [vmem:[#allocation10 + $0x28] sm:$0xff]  ;;  %v168_v5 = vld [vmem:[#allocation10 + $0x20] sm:$0xff] }
 0x838   :  { %7082 = vrcp.f32 %v2203_v10  ;;  %v8365_v54 = vpack.c.bf16 %v169_v13, %v166_v22  ;;  %v164_v61 = vld [vmem:[#allocation10] sm:$0xff]  ;;  %v205_v22 = vld [vmem:[#allocation10 + $0x148] sm:$0xff] }
 0x839   :  { %7084 = vrcp.f32 %v2204_v60  ;;  %v171_v60 = vld [vmem:[#allocation10 + $0x38] sm:$0xff] }
 0x83d   :  { %v7079_v58 = vpop.eup %7078 }
 0x83e   :  { %v2211_v62 = vmul.f32 %v7079_v58, %v2209_v36  ;;  %v172_v36 = vld [vmem:[#allocation10 + $0x40] sm:$0xff]  ;;  %v175_v58 = vld [vmem:[#allocation10 + $0x58] sm:$0xff] }
 0x840   :  { %v2213_v26 = vadd.f32 %v2211_v62, %v9163_v39  ;;  %v8375_v62 = vpack.c.bf16 %v175_v58, %v172_v36  ;;  %v170_v39 = vld [vmem:[#allocation10 + $0x30] sm:$0xff] }
 0x841   :  { %v7081_v15 = vpop.eup %7080  ;;  %v206_v58 = vld [vmem:[#allocation10 + $0x150] sm:$0xff] }
 0x842   :  { %v2212_v46 = vmul.f32 %v7081_v15, %v2210_v48  ;;  %7086 = vtanh.f32 %v2213_v26  ;;  %v7083_v41 = vpop.eup %7082  ;;  %v174_v48 = vld [vmem:[#allocation10 + $0x50] sm:$0xff]  ;;  %v173_v26 = vld [vmem:[#allocation10 + $0x48] sm:$0xff] }
 0x843   :  { %v7085_v30 = vpop.eup %7084  ;;  %v2217_v40 = vsub.f32 1.0, %v7083_v41  ;;  %v2221_v49 = vmul.f32 %v7083_v41, %v8205_v24  ;;  %v167_v24 = vld [vmem:[#allocation10 + $0x18] sm:$0xff]  ;;  %v8377_v15 = vpack.c.bf16 %v174_v48, %v171_v60  ;;  %v178_v41 = vld [vmem:[#allocation10 + $0x70] sm:$0xff]  ;;  %v209_v60 = vld [vmem:[#allocation10 + $0x168] sm:$0xff] }
 0x844   :  { %v2214_v0 = vadd.f32 %v2212_v46, %v9164_v47  ;;  %v2218_v63 = vsub.f32 1.0, %v7085_v30  ;;  %v2222_v16 = vmul.f32 %v7085_v30, %v8212_v31  ;;  %v8367_v31 = vpack.c.bf16 %v168_v5, %v165_v9  ;;  %v177_v47 = vld [vmem:[#allocation10 + $0x68] sm:$0xff]  ;;  %v207_v5 = vld [vmem:[#allocation10 + $0x158] sm:$0xff] }
 0x845   :  { %v8369_v10 = vpack.c.bf16 %v167_v24, %v164_v61  ;;  %v8379_v46 = vpack.c.bf16 %v173_v26, %v170_v39  ;;  %v210_v61 = vld [vmem:[#allocation10 + $0x170] sm:$0xff]  ;;  %v208_v24 = vld [vmem:[#allocation10 + $0x160] sm:$0xff]  ;;  %v211_v48 = vld [vmem:[#allocation10 + $0x178] sm:$0xff]  ;;  %v8437_v39 = vpack.c.bf16 %v209_v60, %v206_v58 }
 0x846   :  { %7088 = vtanh.f32 %v2214_v0  ;;  %v180_v0 = vld [vmem:[#allocation10 + $0x80] sm:$0xff]  ;;  %v8435_v36 = vpack.c.bf16 %v210_v61, %v207_v5  ;;  %v8439_v26 = vpack.c.bf16 %v211_v48, %v208_v24 }
 0x847   :  { %v8385_v30 = vpack.c.bf16 %v180_v0, %v177_v47  ;;  %v3076_v47 = vld [vmem:[%s9086_s2] sm:$0xff]  ;;  %v3077_v0 = vld [vmem:[%s9086_s2 + $0x8] sm:$0xff] }
 0x848   :  { %3080 = vperm.xlu0 %6900, %v3076_v47   ;;  %v9170_v24 = vld [vmem:[#allocation29_spill] sm:$0xff] }
 0x84c   :  { %v7087_v8 = vpop.eup %7086  ;;  %3085 = vperm.xlu0 %6900, %v3077_v0  }
 0x84d   :  { %v2219_v19 = vmul.f32 %v7087_v8, %v2217_v40  ;;  %v176_v40 = vld [vmem:[#allocation10 + $0x60] sm:$0xff]  ;;  %v179_v8 = vld [vmem:[#allocation10 + $0x78] sm:$0xff] }
 0x84f   :  { %v8269_v55 = vadd.f32 %v2221_v49, %v2219_v19  ;;  %v181_v19 = vld [vmem:[#allocation10 + $0x88] sm:$0xff]  ;;  %v8387_v49 = vpack.c.bf16 %v179_v8, %v176_v40  ;;  %v9166_v40 = vld [vmem:[#allocation45_spill] sm:$0xff] }
 0x850   :  { %v7089_v59 = vpop.eup %7088 }
 0x851   :  { %2298 = vmatmul.mubr.f32.vlgmr.msra.gmra.mrb[46].mxu1 %v8269_v55  ;;  %5539 = vmatprep.mubr.f32.mxu0 %v8269_v55  ;;  %v2220_v25 = vmul.f32 %v7089_v59, %v2218_v63  ;;  %v186_v63 = vld [vmem:[#allocation10 + $0xb0] sm:$0xff]  ;;  %v184_v59 = vld [vmem:[#allocation10 + $0xa0] sm:$0xff] }
 0x852   :  { %2617 = vmatpush1.bf16.msra.mxu1 %v6918_v29  ;;  %2303 = vmatprep.mubr.f32.mxu1 %v9142_v6  ;;  %v8389_v29 = vpack.c.bf16 %v181_v19, %v178_v41 }
 0x853   :  { %2618 = vmatprep.subr.bf16.mxu1 %v6923_v52  ;;  %v8281_v34 = vadd.f32 %v2222_v16, %v2220_v25  ;;  %v183_v52 = vld [vmem:[#allocation10 + $0x98] sm:$0xff]  ;;  %v182_v16 = vld [vmem:[#allocation10 + $0x90] sm:$0xff] }
 0x854   :  { %v8395_v25 = vpack.c.bf16 %v186_v63, %v183_v52  ;;  %v9167_v52 = vld [vmem:[#allocation46_spill] sm:$0xff] }
 0x855   :  { %2304 = vmatmul.mubr.f32.gmra.mrb[48].mxu1 %v8281_v34  ;;  %5540 = vmatmul.mubr.f32.vlgmr.msra.gmra.mrb[48].mxu0 %v8281_v34  ;;  %v2225_v14 = vpack.c.bf16 %v8281_v34, %v8269_v55 }
 0x856   :  { %2619 = vmatpush1.bf16.msra.mxu1 %v6921_v33  ;;  %5543 = vmatpush3.bf16.msra.mxu0 %v8252_v23  ;;  %v6936_v23 = vld [vmem:[%s9091_s7 + $0x50] ss:$12 sps:$4 sm:$0xff]  }
 0x857   :  { %5558 = vmatprep.mubr.bf16.mxu0 %v1001_v43  ;;  %2620 = vmatprep.subr.bf16.mxu1 %v6927_v35  ;;  %v185_v33 = vld [vmem:[#allocation10 + $0xa8] sm:$0xff]  ;;  %v187_v35 = vld [vmem:[#allocation10 + $0xb8] sm:$0xff] }
 0x858   :  { %5544 = vmatprep.subr.bf16.mxu0 %v6928_v42  ;;  %2648 = vmatprep.mubr.bf16.mxu1 %v9165_v57 }
 0x85a   :  { %2621 = vmatpush1.bf16.msra.mxu1 %v6925_v45  ;;  %5545 = vmatpush3.bf16.msra.mxu0 %v6928_v42  ;;  %v8397_v42 = vpack.c.bf16 %v185_v33, %v182_v16  ;;  %v189_v45 = vld [vmem:[#allocation10 + $0xc8] sm:$0xff] }
 0x85b   :  { %2622 = vmatprep.subr.bf16.mxu1 %v6931_v51  ;;  %5546 = vmatprep.subr.bf16.mxu0 %v6932_v53  ;;  %v192_v51 = vld [vmem:[#allocation10 + $0xe0] sm:$0xff] }
 0x85e   :  { %2623 = vmatpush1.bf16.msra.mxu1 %v6929_v1  ;;  %5547 = vmatpush3.bf16.msra.mxu0 %v6932_v53  ;;  %v190_v53 = vld [vmem:[#allocation10 + $0xd0] sm:$0xff]  ;;  %v188_v1 = vld [vmem:[#allocation10 + $0xc0] sm:$0xff] }
 0x85f   :  { %2624 = vmatprep.subr.bf16.mxu1 %v6935_v50  ;;  %5548 = vmatprep.subr.bf16.mxu0 %v6936_v23  ;;  %v191_v50 = vld [vmem:[#allocation10 + $0xd8] sm:$0xff] }
 0x862   :  { %2625 = vmatpush1.bf16.msra.mxu1 %v6933_v2  ;;  %5549 = vmatpush3.bf16.msra.mxu0 %v6936_v23  ;;  %v193_v23 = vld [vmem:[#allocation10 + $0xe8] sm:$0xff]  ;;  %v8407_v2 = vpack.c.bf16 %v191_v50, %v188_v1  ;;  %v9169_v1 = vld [vmem:[#allocation48_spill] sm:$0xff] }
 0x863   :  { %2626 = vmatprep.subr.bf16.mxu1 %v6939_v4  ;;  %5550 = vmatprep.subr.bf16.mxu0 %v6940_v7  ;;  %v8409_v4 = vpack.c.bf16 %v193_v23, %v190_v53 }
 0x866   :  { %2627 = vmatpush1.bf16.msra.mxu1 %v6937_v11  ;;  %5551 = vmatpush3.bf16.msra.mxu0 %v6940_v7  ;;  %v195_v7 = vld [vmem:[#allocation10 + $0xf8] sm:$0xff]  ;;  %v198_v11 = vld [vmem:[#allocation10 + $0x110] sm:$0xff] }
 0x867   :  { %2628 = vmatprep.subr.bf16.mxu1 %v6943_v12  ;;  %5552 = vmatprep.subr.bf16.mxu0 %v6944_v17  ;;  %v196_v12 = vld [vmem:[#allocation10 + $0x100] sm:$0xff] }
 0x86a   :  { %2629 = vmatpush1.bf16.msra.mxu1 %v6941_v20  ;;  %5553 = vmatpush3.bf16.msra.mxu0 %v6944_v17  ;;  %v8415_v17 = vpack.c.bf16 %v198_v11, %v195_v7  ;;  %v194_v20 = vld [vmem:[#allocation10 + $0xf0] sm:$0xff] }
 0x86b   :  { %2630 = vmatprep.subr.bf16.mxu1 %v6947_v21  ;;  %5554 = vmatprep.subr.bf16.mxu0 %v6948_v27  ;;  %v197_v21 = vld [vmem:[#allocation10 + $0x108] sm:$0xff] }
 0x86e   :  { %2631 = vmatpush1.bf16.msra.mxu1 %v6945_v28  ;;  %5555 = vmatpush3.bf16.msra.mxu0 %v6948_v27  ;;  %v199_v27 = vld [vmem:[#allocation10 + $0x118] sm:$0xff]  ;;  %v8417_v28 = vpack.c.bf16 %v197_v21, %v194_v20 }
 0x86f   :  { %5556 = vmatprep.subr.bf16.mxu0 %v6949_v32  ;;  %6407 = vmatprep.subr.bf16.mxu1 %v8365_v54 }
 0x871   :  { %2649 = vmatmul.mubr.bf16.vlgmr.msra.gmra.mrb[52].mxu1 %v1001_v43  ;;  %v8399_v43 = vpack.c.bf16 %v187_v35, %v184_v59  ;;  %v9168_v35 = vld [vmem:[#allocation47_spill] sm:$0xff] }
 0x872   :  { %5557 = vmatpush3.bf16.msra.mxu0 %v6949_v32  ;;  %2658 = vmatprep.mubr.bf16.mxu1 %v9165_v57  ;;  %v8419_v32 = vpack.c.bf16 %v199_v27, %v196_v12 }
 0x873   :  { %6409 = vmatpush3.bf16.msra.mxu1 %v8365_v54  ;;  %6375 = vmatprep.subr.bf16.mxu0 %v8367_v31 }
 0x874   :  { %6411 = vmatprep.subr.bf16.mxu1 %v8375_v62 }
 0x875   :  { %5559 = vmatmul.mubr.bf16.vlgmr.msra.gmra.mrb[52].mxu0 %v1205_v37 }
 0x876   :  { %5562 = vmatprep.mubr.bf16.mxu0 %v1409_v56  ;;  %6377 = vmatpush1.bf16.msra.mxu0 %v8369_v10 }
 0x877   :  { %6413 = vmatpush3.bf16.msra.mxu1 %v8375_v62  ;;  %6379 = vmatprep.subr.bf16.mxu0 %v8377_v15 }
 0x878   :  { %6415 = vmatprep.subr.bf16.mxu1 %v8389_v29 }
 0x879   :  { %2659 = vmatmul.mubr.bf16.gmra.mrb[56].mxu1 %v1205_v37  ;;  %v201_v37 = vld [vmem:[#allocation10 + $0x128] sm:$0xff] }
 0x87a   :  { %2668 = vmatprep.mubr.bf16.mxu1 %v9165_v57  ;;  %6381 = vmatpush1.bf16.msra.mxu0 %v8379_v46 }
 0x87b   :  { %6383 = vmatprep.subr.bf16.mxu0 %v8385_v30  ;;  %6417 = vmatpush3.bf16.msra.mxu1 %v8389_v29 }
 0x87c   :  { %6419 = vmatprep.subr.bf16.mxu1 %v8399_v43 }
 0x87d   :  { %5563 = vmatmul.mubr.bf16.gmra.mrb[56].mxu0 %v1613_v3 }
 0x87e   :  { %5566 = vmatprep.mubr.bf16.mxu0 %v1817_v44  ;;  %6385 = vmatpush1.bf16.msra.mxu0 %v8387_v49 }
 0x87f   :  { %6387 = vmatprep.subr.bf16.mxu0 %v8395_v25  ;;  %6421 = vmatpush3.bf16.msra.mxu1 %v8399_v43 }
 0x880   :  { %6423 = vmatprep.subr.bf16.mxu1 %v8409_v4 }
 0x881   :  { %2669 = vmatmul.mubr.bf16.gmra.mrb[60].mxu1 %v1409_v56  ;;  %v204_v56 = vld [vmem:[#allocation10 + $0x140] sm:$0xff] }
 0x882   :  { %2678 = vmatprep.mubr.bf16.mxu1 %v9165_v57  ;;  %6389 = vmatpush1.bf16.msra.mxu0 %v8397_v42 }
 0x883   :  { %6425 = vmatpush3.bf16.msra.mxu1 %v8409_v4 }
 0x884   :  { %6427 = vmatprep.subr.bf16.mxu1 %v8419_v32 }
 0x885   :  { %5567 = vmatmul.mubr.bf16.gmra.mrb[60].mxu0 %v2021_v38 }
 0x886   :  { %5570 = vmatprep.mubr.bf16.mxu0 %v2225_v14 }
 0x887   :  { %6429 = vmatpush3.bf16.msra.mxu1 %v8419_v32 }
 0x889   :  { %2679 = vmatmul.mubr.bf16.gmra.mrb[64].mxu1 %v1613_v3  ;;  %v202_v3 = vld [vmem:[#allocation10 + $0x130] sm:$0xff] }
 0x88a   :  { %2688 = vmatprep.mubr.bf16.mxu1 %v9165_v57  ;;  %v8429_v9 = vpack.c.bf16 %v205_v22, %v202_v3 }
 0x88c   :  { %6431 = vmatprep.subr.bf16.mxu1 %v8429_v9 }
 0x88d   :  { %6433 = vmatpush3.bf16.msra.mxu1 %v8429_v9 }
 0x88e   :  { %6435 = vmatprep.subr.bf16.mxu1 %v8439_v26 }
 0x891   :  { %2689 = vmatmul.mubr.bf16.gmra.mrb[68].mxu1 %v1817_v44  ;;  %v8425_v44 = vpack.c.bf16 %v204_v56, %v201_v37 }
 0x892   :  { %2698 = vmatprep.mubr.bf16.mxu1 %v9165_v57  ;;  %6437 = vmatpush3.bf16.msra.mxu1 %v8439_v26 }
 0x893   :  { %6471 = vmatprep.subr.bf16.mxu1 %v8365_v54 }
 0x899   :  { %2699 = vmatmul.mubr.bf16.gmra.mrb[72].mxu1 %v2021_v38  ;;  %v200_v38 = vld [vmem:[#allocation10 + $0x120] sm:$0xff] }
 0x89a   :  { %2708 = vmatprep.mubr.bf16.mxu1 %v9165_v57 }
 0x8a1   :  { %2709 = vmatmul.mubr.bf16.gmra.mrb[76].mxu1 %v2225_v14  ;;  %v203_v14 = vld [vmem:[#allocation10 + $0x138] sm:$0xff] }
 0x8a2   :  { %2718 = vmatprep.mubr.bf16.mxu1 %v9165_v57  ;;  %v8405_v57 = vpack.c.bf16 %v192_v51, %v189_v45  ;;  %v8427_v13 = vpack.c.bf16 %v203_v14, %v200_v38 }
 0x8a4   :  { %6391 = vmatprep.subr.bf16.mxu0 %v8405_v57 }
 0x8a5   :  { %6393 = vmatpush1.bf16.msra.mxu0 %v8407_v2 }
 0x8a6   :  { %6395 = vmatprep.subr.bf16.mxu0 %v8415_v17 }
 0x8a9   :  { %6397 = vmatpush1.bf16.msra.mxu0 %v8417_v28 }
 0x8aa   :  { %6399 = vmatprep.subr.bf16.mxu0 %v8425_v44 }
 0x8ad   :  { %6401 = vmatpush1.bf16.msra.mxu0 %v8427_v13 }
 0x8ae   :  { %6403 = vmatprep.subr.bf16.mxu0 %v8435_v36 }
 0x8b1   :  { %6405 = vmatpush1.bf16.msra.mxu0 %v8437_v39 }
 0x8b2   :  { %6439 = vmatprep.subr.bf16.mxu0 %v8367_v31 }
 0x924   :  { %v2299_v41 = vpop.f32.mrb[46].mxu1 }
 0x925   :  { %v2385_v8 = vadd.f32 %v2299_v41, %v9166_v40  ;;  %v2301_v19 = vpop.f32.mrb[47].mxu1  ;;  %v9171_v40 = vld [vmem:[#allocation32_spill] sm:$0xff] }
 0x926   :  { %v2399_v63 = vadd.f32 %v2301_v19, %v9167_v52 }
 0x927   :  { %v4767_v59 = vmul.f32 -1.442695, %v2385_v8 }
 0x928   :  { %v2305_v16 = vpop.f32.mrb[48].mxu1  ;;  %v5541_v33 = vpop.f32.mrb[48].mxu0  ;;  %v4769_v7 = vmul.f32 -1.442695, %v2399_v63 }
 0x929   :  { %7090 = vpow2.f32 %v4767_v59  ;;  %v2386_v45 = vadd.f32 %v2305_v16, %v9168_v35  ;;  %v2307_v51 = vpop.f32.mrb[49].mxu1  ;;  %v2376_v53 = vpop.f32.mrb[49].mxu0  ;;  %v2414_v61 = vadd.f32 %v8259_v18, %v5541_v33 }
 0x92a   :  { %v2400_v50 = vadd.f32 %v2307_v51, %v9169_v1  ;;  %v2413_v38 = vadd.f32 %v8259_v18, %v2376_v53 }
 0x92b   :  { %v4768_v23 = vmul.f32 -1.442695, %v2386_v45 }
 0x92c   :  { %v4770_v11 = vmul.f32 -1.442695, %v2400_v50 }
 0x92d   :  { %7092 = vpow2.f32 %v4768_v23 }
 0x92e   :  { %7094 = vpow2.f32 %v4769_v7 }
 0x92f   :  { %7096 = vpow2.f32 %v4770_v11 }
 0x933   :  { %v7091_v12 = vpop.eup %7090 }
 0x934   :  { %v2393_v20 = vadd.f32 1.0, %v7091_v12 }
 0x936   :  { %7098 = vrcp.f32 %v2393_v20 }
 0x937   :  { %v7093_v21 = vpop.eup %7092 }
 0x938   :  { %v2394_v27 = vadd.f32 1.0, %v7093_v21  ;;  %v7095_v37 = vpop.eup %7094 }
 0x939   :  { %v7097_v56 = vpop.eup %7096  ;;  %v2407_v3 = vadd.f32 1.0, %v7095_v37 }
 0x93a   :  { %7100 = vrcp.f32 %v2394_v27  ;;  %v2408_v22 = vadd.f32 1.0, %v7097_v56 }
 0x93b   :  { %7102 = vrcp.f32 %v2407_v3 }
 0x93c   :  { %7104 = vrcp.f32 %v2408_v22 }
 0x940   :  { %v7099_v14 = vpop.eup %7098 }
 0x941   :  { %v2415_v5 = vmul.f32 %v7099_v14, %v2413_v38 }
 0x943   :  { %v2417_v58 = vadd.f32 %v2415_v5, %v9170_v24 }
 0x944   :  { %v7101_v60 = vpop.eup %7100  ;;  %v8460_v48 = vpop.f32.mrb[52].mxu1 }
 0x945   :  { %v2416_v47 = vmul.f32 %v7101_v60, %v2414_v61  ;;  %7106 = vtanh.f32 %v2417_v58  ;;  %v8462_v0 = vpop.f32.mrb[53].mxu1  ;;  %v7103_v59 = vpop.eup %7102 }
 0x946   :  { %v8464_v41 = vpop.f32.mrb[54].mxu1  ;;  %v7105_v45 = vpop.eup %7104  ;;  %v2421_v53 = vsub.f32 1.0, %v7103_v59  ;;  %v2425_v11 = vmul.f32 %v7103_v59, %v8269_v55  ;;  %v4706_v55 = vld [vmem:[%s9098_s14] ss:$0 sm:$0xff] }
 0x947   :  { %v2418_v8 = vadd.f32 %v2416_v47, %v9171_v40  ;;  %v8467_v19 = vpop.f32.mrb[55].mxu1  ;;  %v2422_v21 = vsub.f32 1.0, %v7105_v45  ;;  %v2426_v14 = vmul.f32 %v7105_v45, %v8281_v34  ;;  %v9176_v47 = vld [vmem:[#allocation20_spill] sm:$0xff] }
 0x948   :  { %v8469_v52 = vpop.f32.mrb[52].mxu0  ;;  %v8509_v40 = vadd.f32 %v4706_v55, %v9176_v47 }
 0x949   :  { %7108 = vtanh.f32 %v2418_v8  ;;  %v8471_v18 = vpop.f32.mrb[53].mxu0 }
 0x94a   :  { %v8473_v63 = vpop.f32.mrb[54].mxu0 }
 0x94b   :  { %v8475_v16 = vpop.f32.mrb[55].mxu0 }
 0x94c   :  { %v8477_v33 = vpop.f32.mrb[56].mxu1 }
 0x94d   :  { %v8479_v35 = vpop.f32.mrb[57].mxu1 }
 0x94e   :  { %v8481_v51 = vpop.f32.mrb[58].mxu1 }
 0x94f   :  { %v7107_v1 = vpop.eup %7106  ;;  %v8483_v50 = vpop.f32.mrb[59].mxu1 }
 0x950   :  { %v8485_v23 = vpop.f32.mrb[56].mxu0  ;;  %v2423_v7 = vmul.f32 %v7107_v1, %v2421_v53 }
 0x951   :  { %9172 = vst [vmem:[#allocation27_spill] sm:$0xff] %v8485_v23  ;;  %v8488_v12 = vpop.f32.mrb[57].mxu0 }
 0x952   :  { %v8490_v20 = vpop.f32.mrb[58].mxu0  ;;  %v2427_v27 = vadd.f32 %v2425_v11, %v2423_v7  ;;  %v9184_v11 = vld [vmem:[#allocation19_spill] sm:$0xff] }
 0x953   :  { %9173 = vst [vmem:[#allocation28_spill] sm:$0xff] %v8490_v20  ;;  %v7109_v37 = vpop.eup %7108  ;;  %v8492_v56 = vpop.f32.mrb[59].mxu0 }
 0x954   :  { %9174 = vst [vmem:[#allocation21_spill] sm:$0xff] %v8492_v56  ;;  %v8494_v3 = vpop.f32.mrb[60].mxu1  ;;  %v2424_v38 = vmul.f32 %v7109_v37, %v2422_v21  ;;  %v8528_v21 = vadd.f32 %v9184_v11, %v4706_v55 }
 0x955   :  { %v8497_v22 = vpop.f32.mrb[61].mxu1 }
 0x956   :  { %v8502_v5 = vpop.f32.mrb[62].mxu1  ;;  %v2428_v61 = vadd.f32 %v2426_v14, %v2424_v38 }
 0x957   :  { %v8504_v24 = vpop.f32.mrb[63].mxu1 }
 0x958   :  { %v8506_v58 = vpop.f32.mrb[60].mxu0  ;;  %v2429_v60 = vpack.c.bf16 %v2428_v61, %v2427_v27 }
 0x959   :  { %9175 = vst [vmem:[#allocation22_spill] sm:$0xff] %v8506_v58  ;;  %v8511_v8 = vpop.f32.mrb[61].mxu0 }
 0x95a   :  { %9177 = vst [vmem:[#allocation31_spill] sm:$0xff] %v8511_v8  ;;  %v8513_v34 = vpop.f32.mrb[62].mxu0  ;;  %2719 = vmatmul.mubr.bf16.gmra.mrb[80].mxu1 %v2429_v60  ;;  %5571 = vmatmul.mubr.bf16.gmra.mrb[64].mxu0 %v2429_v60 }
 0x95b   :  { %9178 = vst [vmem:[#allocation33_spill] sm:$0xff] %v8513_v34  ;;  %v8515_v59 = vpop.f32.mrb[63].mxu0  ;;  %5606 = vmatprep.mubr.f32.mxu1 %v8509_v40  ;;  %2944 = vmatprep.mubr.f32.mxu0 %v9142_v6 }
 0x95c   :  { %9179 = vst [vmem:[#allocation35_spill] sm:$0xff] %v8515_v59  ;;  %v8519_v45 = vpop.f32.mrb[64].mxu1 }
 0x95d   :  { %9180 = vst [vmem:[#allocation36_spill] sm:$0xff] %v8519_v45  ;;  %v8521_v53 = vpop.f32.mrb[65].mxu1 }
 0x95e   :  { %9181 = vst [vmem:[#allocation24_spill] sm:$0xff] %v8521_v53  ;;  %v8523_v1 = vpop.f32.mrb[66].mxu1 }
 0x95f   :  { %9182 = vst [vmem:[#allocation26_spill] sm:$0xff] %v8523_v1  ;;  %v8525_v7 = vpop.f32.mrb[67].mxu1 }
 0x960   :  { %9183 = vst [vmem:[#allocation37_spill] sm:$0xff] %v8525_v7 }
 0x962   :  { %2945 = vmatmul.mubr.f32.vlgmr.msra.gmra.mrb[50].mxu0 %v8509_v40  ;;  %5607 = vmatmul.mubr.f32.vlgmr.msra.gmra.mrb[50].mxu1 %v8528_v21 }
 0x963   :  { %2950 = vmatprep.mubr.f32.mxu0 %v9142_v6  ;;  %6441 = vmatpush1.bf16.msra.mxu0 %v8369_v10 }
 0x964   :  { %v8534_v27 = vpop.f32.mrb[68].mxu1  ;;  %6443 = vmatprep.subr.bf16.mxu0 %v8377_v15  ;;  %6473 = vmatpush3.bf16.msra.mxu1 %v8365_v54 }
 0x965   :  { %9185 = vst [vmem:[#allocation38_spill] sm:$0xff] %v8534_v27  ;;  %v8538_v37 = vpop.f32.mrb[69].mxu1  ;;  %6475 = vmatprep.subr.bf16.mxu1 %v8375_v62 }
 0x966   :  { %9186 = vst [vmem:[#allocation39_spill] sm:$0xff] %v8538_v37  ;;  %v8541_v38 = vpop.f32.mrb[70].mxu1  ;;  %2951 = vmatmul.mubr.f32.gmra.mrb[68].mxu0 %v8528_v21 }
 0x967   :  { %9187 = vst [vmem:[#allocation40_spill] sm:$0xff] %v8541_v38  ;;  %v8544_v14 = vpop.f32.mrb[71].mxu1  ;;  %6445 = vmatpush1.bf16.msra.mxu0 %v8379_v46  ;;  %3170 = vmatprep.mubr.f32.mxu0 %v9142_v6 }
 0x968   :  { %9188 = vst [vmem:[#allocation23_spill] sm:$0xff] %v8544_v14  ;;  %6447 = vmatprep.subr.bf16.mxu0 %v8385_v30  ;;  %6477 = vmatpush3.bf16.msra.mxu1 %v8375_v62  ;;  %v9203_v14 = vld [vmem:[#allocation18_spill] sm:$0xff] }
 0x969   :  { %6479 = vmatprep.subr.bf16.mxu1 %v8389_v29 }
 0x96b   :  { %6449 = vmatpush1.bf16.msra.mxu0 %v8387_v49 }
 0x96c   :  { %v8552_v55 = vpop.f32.mrb[72].mxu1  ;;  %6451 = vmatprep.subr.bf16.mxu0 %v8395_v25  ;;  %6481 = vmatpush3.bf16.msra.mxu1 %v8389_v29 }
 0x96d   :  { %9189 = vst [vmem:[#allocation25_spill] sm:$0xff] %v8552_v55  ;;  %v8556_v61 = vpop.f32.mrb[73].mxu1  ;;  %6483 = vmatprep.subr.bf16.mxu1 %v8399_v43 }
 0x96e   :  { %9190 = vst [vmem:[#allocation41_spill] sm:$0xff] %v8556_v61  ;;  %v8559_v60 = vpop.f32.mrb[74].mxu1 }
 0x96f   :  { %9191 = vst [vmem:[#allocation42_spill] sm:$0xff] %v8559_v60  ;;  %v8561_v47 = vpop.f32.mrb[75].mxu1  ;;  %6453 = vmatpush1.bf16.msra.mxu0 %v8397_v42 }
 0x970   :  { %9192 = vst [vmem:[#allocation43_spill] sm:$0xff] %v8561_v47  ;;  %6455 = vmatprep.subr.bf16.mxu0 %v8405_v57  ;;  %6485 = vmatpush3.bf16.msra.mxu1 %v8399_v43 }
 0x971   :  { %6487 = vmatprep.subr.bf16.mxu1 %v8409_v4 }
 0x973   :  { %6457 = vmatpush1.bf16.msra.mxu0 %v8407_v2 }
 0x974   :  { %v8568_v11 = vpop.f32.mrb[76].mxu1  ;;  %6459 = vmatprep.subr.bf16.mxu0 %v8415_v17  ;;  %6489 = vmatpush3.bf16.msra.mxu1 %v8409_v4 }
 0x975   :  { %9193 = vst [vmem:[#allocation44_spill] sm:$0xff] %v8568_v11  ;;  %v8572_v34 = vpop.f32.mrb[77].mxu1  ;;  %6491 = vmatprep.subr.bf16.mxu1 %v8419_v32 }
 0x976   :  { %9194 = vst [vmem:[#allocation30_spill] sm:$0xff] %v8572_v34  ;;  %v8575_v58 = vpop.f32.mrb[78].mxu1  ;;  %v2471_v34 = vld [vmem:[#allocation12] sm:$0x7] }
 0x977   :  { %9195 = vst [vmem:[#allocation34_spill] sm:$0xff] %v8575_v58  ;;  %v8577_v47 = vpop.f32.mrb[79].mxu1  ;;  %6461 = vmatpush1.bf16.msra.mxu0 %v8417_v28  ;;  %v3303_v58 = vld [vmem:[%s9086_s2 + $0x18] sm:$0xff] }
 0x978   :  { %9196 = vst [vmem:[#allocation45_spill] sm:$0xff] %v8577_v47  ;;  %6463 = vmatprep.subr.bf16.mxu0 %v8425_v44  ;;  %6493 = vmatpush3.bf16.msra.mxu1 %v8419_v32  ;;  %v3302_v47 = vld [vmem:[%s9086_s2 + $0x10] sm:$0xff] }
 0x979   :  { %6495 = vmatprep.subr.bf16.mxu1 %v8429_v9  ;;  %3306 = vperm.xlu1 %6901, %v3302_v47   ;;  %v9204_v47 = vsub.s32 0, %v9203_v14 }
 0x97b   :  { %6465 = vmatpush1.bf16.msra.mxu0 %v8427_v13  ;;  %v8611_v38 = vrot.slane %v2471_v34, %v9204_v47 }
 0x97c   :  { %6467 = vmatprep.subr.bf16.mxu0 %v8435_v36  ;;  %6497 = vmatpush3.bf16.msra.mxu1 %v8429_v9 }
 0x97d   :  { %6499 = vmatprep.subr.bf16.mxu1 %v8439_v26  ;;  %3311 = vperm.xlu1 %6901, %v3303_v58  }
 0x97f   :  { %6469 = vmatpush1.bf16.msra.mxu0 %v8437_v39 }
 0x980   :  { %6501 = vmatpush3.bf16.msra.mxu1 %v8439_v26  ;;  %6503 = vmatprep.subr.bf16.mxu0 %v8367_v31 }
 0x981   :  { %6535 = vmatprep.subr.bf16.mxu1 %v8365_v54 }
 0xa2d   :  { %v8597_v11 = vpop.f32.mrb[80].mxu1  ;;  %v8599_v60 = vpop.f32.mrb[64].mxu0 }
 0xa2e   :  { %9197 = vst [vmem:[#allocation46_spill] sm:$0xff] %v8597_v11  ;;  %9198 = vst [vmem:[#allocation47_spill] sm:$0xff] %v8599_v60  ;;  %v8601_v61 = vpop.f32.mrb[81].mxu1  ;;  %v8603_v55 = vpop.f32.mrb[65].mxu0  ;;  %v9207_v11 = vsub.s32 1, %v9203_v14  ;;  %v2651_v60 = vadd.f32 %v8460_v48, %v8611_v38 }
 0xa2f   :  { %9199 = vst [vmem:[#allocation48_spill] sm:$0xff] %v8601_v61  ;;  %9200 = vst [vmem:[#allocation29_spill] sm:$0xff] %v8603_v55  ;;  %v8605_v59 = vpop.f32.mrb[82].mxu1  ;;  %v8607_v8 = vpop.f32.mrb[66].mxu0 }
 0xa30   :  { %9201 = vst [vmem:[#allocation32_spill] sm:$0xff] %v8605_v59  ;;  %9202 = vst [vmem:[#allocation20_spill] sm:$0xff] %v8607_v8  ;;  %v8613_v37 = vpop.f32.mrb[83].mxu1  ;;  %v8615_v58 = vpop.f32.mrb[67].mxu0  ;;  %v8619_v27 = vrot.slane %v2471_v34, %v9207_v11 }
 0xa31   :  { %9205 = vst [vmem:[#allocation19_spill] sm:$0xff] %v8613_v37  ;;  %9206 = vst [vmem:[#allocation18_spill] sm:$0xff] %v8615_v58  ;;  %v2655_v37 = vadd.f32 %v8464_v41, %v8611_v38 }
 0xa32   :  { %v2653_v59 = vadd.f32 %v8462_v0, %v8619_v27  ;;  %v2657_v11 = vadd.f32 %v8467_v19, %v8619_v27  ;;  %v8632_v19 = vld [vmem:[%s9094_s10] ss:$0 sm:$0xff] }
 0xa35   :  { %v2946_v61 = vpop.f32.mrb[50].mxu0  ;;  %v5608_v8 = vpop.f32.mrb[50].mxu1 }
 0xa36   :  { %v3032_v55 = vadd.f32 %v2946_v61, %v2651_v60  ;;  %v2948_v20 = vpop.f32.mrb[51].mxu0  ;;  %v3023_v47 = vpop.f32.mrb[51].mxu1 }
 0xa37   :  { %v3046_v23 = vadd.f32 %v2948_v20, %v2653_v59 }
 0xa38   :  { %v4795_v58 = vmul.f32 -1.442695, %v3032_v55 }
 0xa39   :  { %v2952_v7 = vpop.f32.mrb[68].mxu0  ;;  %v4797_v0 = vmul.f32 -1.442695, %v3046_v23 }
 0xa3a   :  { %7110 = vpow2.f32 %v4795_v58  ;;  %v3033_v1 = vadd.f32 %v2952_v7, %v2655_v37  ;;  %v2954_v48 = vpop.f32.mrb[69].mxu0 }
 0xa3b   :  { %v3047_v53 = vadd.f32 %v2954_v48, %v2657_v11  ;;  %v3061_v11 = vadd.f32 %v5608_v8, %v8632_v19 }
 0xa3c   :  { %v4796_v45 = vmul.f32 -1.442695, %v3033_v1  ;;  %v9208_v1 = vsub.s32 2, %v9203_v14 }
 0xa3d   :  { %v4798_v56 = vmul.f32 -1.442695, %v3047_v53  ;;  %v3060_v53 = vadd.f32 %v8632_v19, %v3023_v47 }
 0xa3e   :  { %7112 = vpow2.f32 %v4796_v45  ;;  %v8636_v23 = vrot.slane %v2471_v34, %v9208_v1 }
 0xa3f   :  { %7114 = vpow2.f32 %v4797_v0 }
 0xa40   :  { %7116 = vpow2.f32 %v4798_v56  ;;  %v2764_v60 = vadd.f32 %v8471_v18, %v8636_v23  ;;  %v2767_v14 = vadd.f32 %v8475_v16, %v8636_v23 }
 0xa44   :  { %v7111_v61 = vpop.eup %7110 }
 0xa45   :  { %v3040_v20 = vadd.f32 1.0, %v7111_v61 }
 0xa47   :  { %7118 = vrcp.f32 %v3040_v20 }
 0xa48   :  { %v7113_v59 = vpop.eup %7112 }
 0xa49   :  { %v3041_v41 = vadd.f32 1.0, %v7113_v59  ;;  %v7115_v55 = vpop.eup %7114 }
 0xa4a   :  { %v7117_v7 = vpop.eup %7116  ;;  %v3054_v45 = vadd.f32 1.0, %v7115_v55  ;;  %v3081_v55 = vpop.permute.xlu0 %3080 }
 0xa4b   :  { %7120 = vrcp.f32 %v3041_v41  ;;  %v3055_v37 = vadd.f32 1.0, %v7117_v7 }
 0xa4c   :  { %7122 = vrcp.f32 %v3054_v45 }
 0xa4d   :  { %7124 = vrcp.f32 %v3055_v37 }
 0xa51   :  { %v7119_v56 = vpop.eup %7118 }
 0xa52   :  { %v3062_v58 = vmul.f32 %v7119_v56, %v3060_v53  ;;  %v3086_v56 = vpop.permute.xlu0 %3085 }
 0xa54   :  { %v3064_v48 = vadd.f32 %v3062_v58, %v2764_v60  ;;  %v3528_v58 = vld [vmem:[%s9086_s2 + $0x20] sm:$0xff] }
 0xa55   :  { %v7121_v0 = vpop.eup %7120  ;;  %3532 = vperm.xlu0 %6900, %v3528_v58  }
 0xa56   :  { %7126 = vtanh.f32 %v3064_v48  ;;  %v3063_v34 = vmul.f32 %v7121_v0, %v3061_v11  ;;  %v7123_v47 = vpop.eup %7122  ;;  %v3529_v11 = vld [vmem:[%s9086_s2 + $0x28] sm:$0xff]  ;;  %v2661_v48 = vadd.f32 %v8477_v33, %v8611_v38  ;;  %v2663_v0 = vadd.f32 %v8479_v35, %v8619_v27 }
 0xa57   :  { %v7125_v20 = vpop.eup %7124  ;;  %v3068_v59 = vsub.f32 1.0, %v7123_v47  ;;  %v3072_v7 = vmul.f32 %v7123_v47, %v8509_v40  ;;  %3537 = vperm.xlu1 %6901, %v3529_v11  }
 0xa58   :  { %v3065_v61 = vadd.f32 %v3063_v34, %v2767_v14  ;;  %v3069_v8 = vsub.f32 1.0, %v7125_v20  ;;  %v3073_v53 = vmul.f32 %v7125_v20, %v8528_v21  ;;  %v2665_v20 = vadd.f32 %v8481_v51, %v8611_v38 }
 0xa5a   :  { %7128 = vtanh.f32 %v3065_v61 }
 0xa60   :  { %v7127_v41 = vpop.eup %7126 }
 0xa61   :  { %v3070_v18 = vmul.f32 %v7127_v41, %v3068_v59  ;;  %v2667_v41 = vadd.f32 %v8483_v50, %v8619_v27 }
 0xa63   :  { %v8645_v1 = vadd.f32 %v3072_v7, %v3070_v18 }
 0xa64   :  { %v7129_v45 = vpop.eup %7128 }
 0xa65   :  { %3171 = vmatmul.mubr.f32.vlgmr.msra.gmra.mrb[70].mxu0 %v8645_v1  ;;  %5641 = vmatprep.mubr.f32.mxu1 %v8645_v1  ;;  %v3071_v16 = vmul.f32 %v7129_v45, %v3069_v8  ;;  %v3088_v40 = vmul.f32 %v3081_v55, %v8645_v1 }
 0xa66   :  { %3176 = vmatprep.mubr.f32.mxu0 %v9142_v6  ;;  %6505 = vmatpush1.bf16.msra.mxu0 %v8369_v10 }
 0xa67   :  { %v8652_v37 = vadd.f32 %v3073_v53, %v3071_v16  ;;  %6507 = vmatprep.subr.bf16.mxu0 %v8377_v15 }
 0xa69   :  { %v3089_v60 = vmul.f32 %v3086_v56, %v8652_v37  ;;  %3177 = vmatmul.mubr.f32.gmra.mrb[72].mxu0 %v8652_v37  ;;  %5642 = vmatmul.mubr.f32.vlgmr.msra.gmra.mrb[84].mxu1 %v8652_v37 }
 0xa6a   :  { %6509 = vmatpush1.bf16.msra.mxu0 %v8379_v46  ;;  %6537 = vmatpush3.bf16.msra.mxu1 %v8365_v54 }
 0xa6b   :  { %v4862_v21 = vpack.c.bf16 %v3089_v60, %v3088_v40  ;;  %6511 = vmatprep.subr.bf16.mxu0 %v8385_v30  ;;  %6539 = vmatprep.subr.bf16.mxu1 %v8375_v62 }
 0xa6c   :  { %3396 = vmatprep.mubr.f32.mxu0 %v9142_v6 }
 0xa6d   :  { %4863 = vst [vmem:[#allocation13] sm:$0xff] %v4862_v21  }
 0xa6e   :  { %6513 = vmatpush1.bf16.msra.mxu0 %v8387_v49  ;;  %6541 = vmatpush3.bf16.msra.mxu1 %v8375_v62 }
 0xa6f   :  { %6515 = vmatprep.subr.bf16.mxu0 %v8395_v25  ;;  %6543 = vmatprep.subr.bf16.mxu1 %v8389_v29 }
 0xa72   :  { %6517 = vmatpush1.bf16.msra.mxu0 %v8397_v42  ;;  %6545 = vmatpush3.bf16.msra.mxu1 %v8389_v29 }
 0xa73   :  { %6519 = vmatprep.subr.bf16.mxu0 %v8405_v57  ;;  %6547 = vmatprep.subr.bf16.mxu1 %v8399_v43 }
 0xa76   :  { %6521 = vmatpush1.bf16.msra.mxu0 %v8407_v2  ;;  %6549 = vmatpush3.bf16.msra.mxu1 %v8399_v43 }
 0xa77   :  { %6523 = vmatprep.subr.bf16.mxu0 %v8415_v17  ;;  %6551 = vmatprep.subr.bf16.mxu1 %v8409_v4 }
 0xa7a   :  { %6525 = vmatpush1.bf16.msra.mxu0 %v8417_v28  ;;  %6553 = vmatpush3.bf16.msra.mxu1 %v8409_v4 }
 0xa7b   :  { %6527 = vmatprep.subr.bf16.mxu0 %v8425_v44  ;;  %6555 = vmatprep.subr.bf16.mxu1 %v8419_v32 }
 0xa7e   :  { %6529 = vmatpush1.bf16.msra.mxu0 %v8427_v13  ;;  %6557 = vmatpush3.bf16.msra.mxu1 %v8419_v32 }
 0xa7f   :  { %6531 = vmatprep.subr.bf16.mxu0 %v8435_v36  ;;  %6559 = vmatprep.subr.bf16.mxu1 %v8429_v9 }
 0xa82   :  { %6533 = vmatpush1.bf16.msra.mxu0 %v8437_v39  ;;  %6561 = vmatpush3.bf16.msra.mxu1 %v8429_v9 }
 0xa83   :  { %6563 = vmatprep.subr.bf16.mxu1 %v8439_v26  ;;  %6567 = vmatprep.subr.bf16.mxu0 %v8367_v31 }
 0xa86   :  { %6565 = vmatpush3.bf16.msra.mxu1 %v8439_v26 }
 0xa87   :  { %6599 = vmatprep.subr.bf16.mxu1 %v8365_v54 }
 0xb38   :  { %v3172_v14 = vpop.f32.mrb[70].mxu0 }
 0xb39   :  { %v3258_v34 = vadd.f32 %v3172_v14, %v2661_v48  ;;  %v3174_v61 = vpop.f32.mrb[71].mxu0  ;;  %v2772_v14 = vadd.f32 %v8469_v52, %v8636_v23 }
 0xb3a   :  { %v3272_v47 = vadd.f32 %v3174_v61, %v2663_v0 }
 0xb3b   :  { %v4801_v59 = vmul.f32 -1.442695, %v3258_v34 }
 0xb3c   :  { %v3178_v55 = vpop.f32.mrb[72].mxu0  ;;  %v5643_v18 = vpop.f32.mrb[84].mxu1  ;;  %v4803_v35 = vmul.f32 -1.442695, %v3272_v47 }
 0xb3d   :  { %7130 = vpow2.f32 %v4801_v59  ;;  %v3259_v7 = vadd.f32 %v3178_v55, %v2665_v20  ;;  %v3180_v8 = vpop.f32.mrb[73].mxu0  ;;  %v3249_v33 = vpop.f32.mrb[85].mxu1  ;;  %v3287_v61 = vadd.f32 %v5643_v18, %v8632_v19  ;;  %v2775_v59 = vadd.f32 %v8473_v63, %v8636_v23 }
 0xb3e   :  { %v3273_v45 = vadd.f32 %v3180_v8, %v2667_v41  ;;  %v3286_v11 = vadd.f32 %v8632_v19, %v3249_v33 }
 0xb3f   :  { %v4802_v16 = vmul.f32 -1.442695, %v3259_v7 }
 0xb40   :  { %v4804_v53 = vmul.f32 -1.442695, %v3273_v45 }
 0xb41   :  { %7132 = vpow2.f32 %v4802_v16  ;;  %v3307_v16 = vpop.permute.xlu1 %3306 }
 0xb42   :  { %7134 = vpow2.f32 %v4803_v35 }
 0xb43   :  { %7136 = vpow2.f32 %v4804_v53 }
 0xb47   :  { %v7131_v56 = vpop.eup %7130 }
 0xb48   :  { %v3266_v40 = vadd.f32 1.0, %v7131_v56 }
 0xb4a   :  { %7138 = vrcp.f32 %v3266_v40 }
 0xb4b   :  { %v7133_v51 = vpop.eup %7132 }
 0xb4c   :  { %v3267_v60 = vadd.f32 1.0, %v7133_v51  ;;  %v7135_v21 = vpop.eup %7134  ;;  %v3312_v51 = vpop.permute.xlu1 %3311 }
 0xb4d   :  { %v7137_v50 = vpop.eup %7136  ;;  %v3280_v58 = vadd.f32 1.0, %v7135_v21 }
 0xb4e   :  { %7140 = vrcp.f32 %v3267_v60  ;;  %v3281_v0 = vadd.f32 1.0, %v7137_v50  ;;  %v3754_v50 = vld [vmem:[%s9086_s2 + $0x30] sm:$0xff] }
 0xb4f   :  { %7142 = vrcp.f32 %v3280_v58  ;;  %v3755_v58 = vld [vmem:[%s9086_s2 + $0x38] sm:$0xff]  ;;  %3758 = vperm.xlu0 %6900, %v3754_v50  }
 0xb50   :  { %7144 = vrcp.f32 %v3281_v0  ;;  %3763 = vperm.xlu1 %6901, %v3755_v58  }
 0xb54   :  { %v7139_v48 = vpop.eup %7138 }
 0xb55   :  { %v3288_v34 = vmul.f32 %v7139_v48, %v3286_v11  ;;  %v2671_v11 = vadd.f32 %v8494_v3, %v8611_v38  ;;  %v2673_v48 = vadd.f32 %v8497_v22, %v8619_v27 }
 0xb57   :  { %v3290_v47 = vadd.f32 %v3288_v34, %v2772_v14 }
 0xb58   :  { %v7141_v20 = vpop.eup %7140 }
 0xb59   :  { %v3289_v41 = vmul.f32 %v7141_v20, %v3287_v61  ;;  %7146 = vtanh.f32 %v3290_v47  ;;  %v7143_v7 = vpop.eup %7142  ;;  %v2675_v47 = vadd.f32 %v8502_v5, %v8611_v38 }
 0xb5a   :  { %v7145_v8 = vpop.eup %7144  ;;  %v3294_v33 = vsub.f32 1.0, %v7143_v7  ;;  %v3298_v35 = vmul.f32 %v7143_v7, %v8645_v1 }
 0xb5b   :  { %v3291_v55 = vadd.f32 %v3289_v41, %v2775_v59  ;;  %v3295_v18 = vsub.f32 1.0, %v7145_v8  ;;  %v3299_v40 = vmul.f32 %v7145_v8, %v8652_v37  ;;  %v2677_v59 = vadd.f32 %v8504_v24, %v8619_v27 }
 0xb5d   :  { %7148 = vtanh.f32 %v3291_v55 }
 0xb63   :  { %v7147_v45 = vpop.eup %7146 }
 0xb64   :  { %v3296_v52 = vmul.f32 %v7147_v45, %v3294_v33 }
 0xb66   :  { %v8711_v53 = vadd.f32 %v3298_v35, %v3296_v52 }
 0xb67   :  { %v7149_v56 = vpop.eup %7148 }
 0xb68   :  { %3397 = vmatmul.mubr.f32.vlgmr.msra.gmra.mrb[74].mxu0 %v8711_v53  ;;  %5676 = vmatprep.mubr.f32.mxu1 %v8711_v53  ;;  %v3297_v63 = vmul.f32 %v7149_v56, %v3295_v18  ;;  %v3314_v1 = vmul.f32 %v3307_v16, %v8711_v53 }
 0xb69   :  { %3402 = vmatprep.mubr.f32.mxu0 %v9142_v6  ;;  %6569 = vmatpush1.bf16.msra.mxu0 %v8369_v10 }
 0xb6a   :  { %v8718_v60 = vadd.f32 %v3299_v40, %v3297_v63  ;;  %6571 = vmatprep.subr.bf16.mxu0 %v8377_v15 }
 0xb6c   :  { %v3315_v21 = vmul.f32 %v3312_v51, %v8718_v60  ;;  %3403 = vmatmul.mubr.f32.gmra.mrb[76].mxu0 %v8718_v60  ;;  %5677 = vmatmul.mubr.f32.vlgmr.msra.gmra.mrb[86].mxu1 %v8718_v60 }
 0xb6d   :  { %6573 = vmatpush1.bf16.msra.mxu0 %v8379_v46  ;;  %6601 = vmatpush3.bf16.msra.mxu1 %v8365_v54 }
 0xb6e   :  { %v4867_v37 = vpack.c.bf16 %v3315_v21, %v3314_v1  ;;  %6575 = vmatprep.subr.bf16.mxu0 %v8385_v30  ;;  %6603 = vmatprep.subr.bf16.mxu1 %v8375_v62  ;;  %v2780_v21 = vadd.f32 %v8488_v12, %v8636_v23 }
 0xb6f   :  { %3622 = vmatprep.mubr.f32.mxu0 %v9142_v6 }
 0xb70   :  { %4899 = vst [vmem:[#allocation13 + $0x8] sm:$0xff] %v4867_v37  }
 0xb71   :  { %6577 = vmatpush1.bf16.msra.mxu0 %v8387_v49  ;;  %6605 = vmatpush3.bf16.msra.mxu1 %v8375_v62 }
 0xb72   :  { %6579 = vmatprep.subr.bf16.mxu0 %v8395_v25  ;;  %6607 = vmatprep.subr.bf16.mxu1 %v8389_v29 }
 0xb75   :  { %6581 = vmatpush1.bf16.msra.mxu0 %v8397_v42  ;;  %6609 = vmatpush3.bf16.msra.mxu1 %v8389_v29 }
 0xb76   :  { %6583 = vmatprep.subr.bf16.mxu0 %v8405_v57  ;;  %6611 = vmatprep.subr.bf16.mxu1 %v8399_v43 }
 0xb79   :  { %6585 = vmatpush1.bf16.msra.mxu0 %v8407_v2  ;;  %6613 = vmatpush3.bf16.msra.mxu1 %v8399_v43 }
 0xb7a   :  { %6587 = vmatprep.subr.bf16.mxu0 %v8415_v17  ;;  %6615 = vmatprep.subr.bf16.mxu1 %v8409_v4 }
 0xb7d   :  { %6589 = vmatpush1.bf16.msra.mxu0 %v8417_v28  ;;  %6617 = vmatpush3.bf16.msra.mxu1 %v8409_v4 }
 0xb7e   :  { %6591 = vmatprep.subr.bf16.mxu0 %v8425_v44  ;;  %6619 = vmatprep.subr.bf16.mxu1 %v8419_v32 }
 0xb81   :  { %6593 = vmatpush1.bf16.msra.mxu0 %v8427_v13  ;;  %6621 = vmatpush3.bf16.msra.mxu1 %v8419_v32 }
 0xb82   :  { %6595 = vmatprep.subr.bf16.mxu0 %v8435_v36  ;;  %6623 = vmatprep.subr.bf16.mxu1 %v8429_v9 }
 0xb85   :  { %6597 = vmatpush1.bf16.msra.mxu0 %v8437_v39  ;;  %6625 = vmatpush3.bf16.msra.mxu1 %v8429_v9 }
 0xb86   :  { %6627 = vmatprep.subr.bf16.mxu1 %v8439_v26  ;;  %6631 = vmatprep.subr.bf16.mxu0 %v8367_v31 }
 0xb89   :  { %6629 = vmatpush3.bf16.msra.mxu1 %v8439_v26 }
 0xb8a   :  { %6663 = vmatprep.subr.bf16.mxu1 %v8365_v54 }
 0xc3b   :  { %v3398_v0 = vpop.f32.mrb[74].mxu0 }
 0xc3c   :  { %v3484_v14 = vadd.f32 %v3398_v0, %v2671_v11  ;;  %v3400_v34 = vpop.f32.mrb[75].mxu0 }
 0xc3d   :  { %v3498_v61 = vadd.f32 %v3400_v34, %v2673_v48  ;;  %v9209_v48 = vld [vmem:[#allocation21_spill] sm:$0xff] }
 0xc3e   :  { %v4807_v20 = vmul.f32 -1.442695, %v3484_v14  ;;  %v2783_v0 = vadd.f32 %v9209_v48, %v8636_v23 }
 0xc3f   :  { %v3404_v41 = vpop.f32.mrb[76].mxu0  ;;  %v5678_v55 = vpop.f32.mrb[86].mxu1  ;;  %v4809_v22 = vmul.f32 -1.442695, %v3498_v61 }
 0xc40   :  { %7150 = vpow2.f32 %v4807_v20  ;;  %v3485_v7 = vadd.f32 %v3404_v41, %v2675_v47  ;;  %v3406_v8 = vpop.f32.mrb[77].mxu0  ;;  %v3475_v3 = vpop.f32.mrb[87].mxu1  ;;  %v3513_v50 = vadd.f32 %v5678_v55, %v8632_v19 }
 0xc41   :  { %v3499_v33 = vadd.f32 %v3406_v8, %v2677_v59  ;;  %v3512_v40 = vadd.f32 %v8632_v19, %v3475_v3 }
 0xc42   :  { %v4808_v45 = vmul.f32 -1.442695, %v3485_v7 }
 0xc43   :  { %v4810_v16 = vmul.f32 -1.442695, %v3499_v33 }
 0xc44   :  { %7152 = vpow2.f32 %v4808_v45  ;;  %v3533_v45 = vpop.permute.xlu0 %3532 }
 0xc45   :  { %7154 = vpow2.f32 %v4809_v22  ;;  %v3538_v22 = vpop.permute.xlu1 %3537 }
 0xc46   :  { %7156 = vpow2.f32 %v4810_v16 }
 0xc4a   :  { %v7151_v52 = vpop.eup %7150 }
 0xc4b   :  { %v3492_v35 = vadd.f32 1.0, %v7151_v52 }
 0xc4d   :  { %7158 = vrcp.f32 %v3492_v35  ;;  %v3980_v35 = vld [vmem:[%s9086_s2 + $0x40] sm:$0xff] }
 0xc4e   :  { %v7153_v5 = vpop.eup %7152  ;;  %3984 = vperm.xlu0 %6900, %v3980_v35  }
 0xc4f   :  { %v3493_v18 = vadd.f32 1.0, %v7153_v5  ;;  %v7155_v56 = vpop.eup %7154  ;;  %v3981_v5 = vld [vmem:[%s9086_s2 + $0x48] sm:$0xff] }
 0xc50   :  { %v7157_v24 = vpop.eup %7156  ;;  %v3506_v63 = vadd.f32 1.0, %v7155_v56  ;;  %3989 = vperm.xlu1 %6901, %v3981_v5   ;;  %v9214_v5 = vld [vmem:[#allocation27_spill] sm:$0xff] }
 0xc51   :  { %7160 = vrcp.f32 %v3493_v18  ;;  %v3507_v1 = vadd.f32 1.0, %v7157_v24  ;;  %v9210_v18 = vld [vmem:[#allocation36_spill] sm:$0xff] }
 0xc52   :  { %7162 = vrcp.f32 %v3506_v63  ;;  %v2681_v56 = vadd.f32 %v9210_v18, %v8611_v38  ;;  %v9211_v24 = vld [vmem:[#allocation24_spill] sm:$0xff]  ;;  %v2788_v18 = vadd.f32 %v9214_v5, %v8636_v23 }
 0xc53   :  { %7164 = vrcp.f32 %v3507_v1  ;;  %v2683_v63 = vadd.f32 %v9211_v24, %v8619_v27 }
 0xc57   :  { %v7159_v51 = vpop.eup %7158 }
 0xc58   :  { %v3514_v37 = vmul.f32 %v7159_v51, %v3512_v40 }
 0xc5a   :  { %v3516_v58 = vadd.f32 %v3514_v37, %v2780_v21  ;;  %v9212_v37 = vld [vmem:[#allocation26_spill] sm:$0xff] }
 0xc5b   :  { %v7161_v11 = vpop.eup %7160 }
 0xc5c   :  { %v3515_v14 = vmul.f32 %v7161_v11, %v3513_v50  ;;  %7166 = vtanh.f32 %v3516_v58  ;;  %v7163_v61 = vpop.eup %7162  ;;  %v2685_v50 = vadd.f32 %v9212_v37, %v8611_v38  ;;  %v9213_v11 = vld [vmem:[#allocation37_spill] sm:$0xff] }
 0xc5d   :  { %v7165_v47 = vpop.eup %7164  ;;  %v3520_v20 = vsub.f32 1.0, %v7163_v61  ;;  %v3524_v12 = vmul.f32 %v7163_v61, %v8711_v53  ;;  %v2687_v48 = vadd.f32 %v9213_v11, %v8619_v27 }
 0xc5e   :  { %v3517_v34 = vadd.f32 %v3515_v14, %v2783_v0  ;;  %v3521_v55 = vsub.f32 1.0, %v7165_v47  ;;  %v3525_v33 = vmul.f32 %v7165_v47, %v8718_v60 }
 0xc60   :  { %7168 = vtanh.f32 %v3517_v34 }
 0xc66   :  { %v7167_v59 = vpop.eup %7166 }
 0xc67   :  { %v3522_v41 = vmul.f32 %v7167_v59, %v3520_v20 }
 0xc69   :  { %v8777_v7 = vadd.f32 %v3524_v12, %v3522_v41 }
 0xc6a   :  { %v7169_v8 = vpop.eup %7168 }
 0xc6b   :  { %3623 = vmatmul.mubr.f32.vlgmr.msra.gmra.mrb[78].mxu0 %v8777_v7  ;;  %5711 = vmatprep.mubr.f32.mxu1 %v8777_v7  ;;  %v3523_v3 = vmul.f32 %v7169_v8, %v3521_v55  ;;  %v3540_v53 = vmul.f32 %v3533_v45, %v8777_v7 }
 0xc6c   :  { %3628 = vmatprep.mubr.f32.mxu0 %v9142_v6  ;;  %6633 = vmatpush1.bf16.msra.mxu0 %v8369_v10 }
 0xc6d   :  { %v8784_v16 = vadd.f32 %v3525_v33, %v3523_v3  ;;  %6635 = vmatprep.subr.bf16.mxu0 %v8377_v15 }
 0xc6f   :  { %v3541_v52 = vmul.f32 %v3538_v22, %v8784_v16  ;;  %3629 = vmatmul.mubr.f32.gmra.mrb[80].mxu0 %v8784_v16  ;;  %5712 = vmatmul.mubr.f32.vlgmr.msra.gmra.mrb[88].mxu1 %v8784_v16 }
 0xc70   :  { %6637 = vmatpush1.bf16.msra.mxu0 %v8379_v46  ;;  %6665 = vmatpush3.bf16.msra.mxu1 %v8365_v54 }
 0xc71   :  { %v4872_v60 = vpack.c.bf16 %v3541_v52, %v3540_v53  ;;  %6639 = vmatprep.subr.bf16.mxu0 %v8385_v30  ;;  %6667 = vmatprep.subr.bf16.mxu1 %v8375_v62 }
 0xc72   :  { %3848 = vmatprep.mubr.f32.mxu0 %v9142_v6 }
 0xc73   :  { %4900 = vst [vmem:[#allocation13 + $0x10] sm:$0xff] %v4872_v60  }
 0xc74   :  { %6641 = vmatpush1.bf16.msra.mxu0 %v8387_v49  ;;  %6669 = vmatpush3.bf16.msra.mxu1 %v8375_v62 }
 0xc75   :  { %6643 = vmatprep.subr.bf16.mxu0 %v8395_v25  ;;  %6671 = vmatprep.subr.bf16.mxu1 %v8389_v29 }
 0xc78   :  { %6645 = vmatpush1.bf16.msra.mxu0 %v8397_v42  ;;  %6673 = vmatpush3.bf16.msra.mxu1 %v8389_v29 }
 0xc79   :  { %6647 = vmatprep.subr.bf16.mxu0 %v8405_v57  ;;  %6675 = vmatprep.subr.bf16.mxu1 %v8399_v43 }
 0xc7c   :  { %6649 = vmatpush1.bf16.msra.mxu0 %v8407_v2  ;;  %6677 = vmatpush3.bf16.msra.mxu1 %v8399_v43 }
 0xc7d   :  { %6651 = vmatprep.subr.bf16.mxu0 %v8415_v17  ;;  %6679 = vmatprep.subr.bf16.mxu1 %v8409_v4 }
 0xc80   :  { %6653 = vmatpush1.bf16.msra.mxu0 %v8417_v28  ;;  %6681 = vmatpush3.bf16.msra.mxu1 %v8409_v4 }
 0xc81   :  { %6655 = vmatprep.subr.bf16.mxu0 %v8425_v44  ;;  %6683 = vmatprep.subr.bf16.mxu1 %v8419_v32 }
 0xc84   :  { %6657 = vmatpush1.bf16.msra.mxu0 %v8427_v13  ;;  %6685 = vmatpush3.bf16.msra.mxu1 %v8419_v32 }
 0xc85   :  { %6659 = vmatprep.subr.bf16.mxu0 %v8435_v36  ;;  %6687 = vmatprep.subr.bf16.mxu1 %v8429_v9 }
 0xc88   :  { %6661 = vmatpush1.bf16.msra.mxu0 %v8437_v39  ;;  %6689 = vmatpush3.bf16.msra.mxu1 %v8429_v9 }
 0xc89   :  { %6691 = vmatprep.subr.bf16.mxu1 %v8439_v26  ;;  %6695 = vmatprep.subr.bf16.mxu0 %v8367_v31 }
 0xc8c   :  { %6693 = vmatpush3.bf16.msra.mxu1 %v8439_v26 }
 0xc8d   :  { %6727 = vmatprep.subr.bf16.mxu1 %v8365_v54 }
 0xd3e   :  { %v3624_v40 = vpop.f32.mrb[78].mxu0 }
 0xd3f   :  { %v3710_v51 = vadd.f32 %v3624_v40, %v2681_v56  ;;  %v3626_v1 = vpop.f32.mrb[79].mxu0 }
 0xd40   :  { %v3724_v21 = vadd.f32 %v3626_v1, %v2683_v63 }
 0xd41   :  { %v4813_v58 = vmul.f32 -1.442695, %v3710_v51  ;;  %v9215_v51 = vld [vmem:[#allocation28_spill] sm:$0xff] }
 0xd42   :  { %v3630_v0 = vpop.f32.mrb[80].mxu0  ;;  %v5713_v14 = vpop.f32.mrb[88].mxu1  ;;  %v4815_v41 = vmul.f32 -1.442695, %v3724_v21  ;;  %v2791_v1 = vadd.f32 %v9215_v51, %v8636_v23 }
 0xd43   :  { %7170 = vpow2.f32 %v4813_v58  ;;  %v3711_v34 = vadd.f32 %v3630_v0, %v2685_v50  ;;  %v3632_v61 = vpop.f32.mrb[81].mxu0  ;;  %v3701_v47 = vpop.f32.mrb[89].mxu1  ;;  %v3739_v24 = vadd.f32 %v5713_v14, %v8632_v19 }
 0xd44   :  { %v3725_v20 = vadd.f32 %v3632_v61, %v2687_v48  ;;  %v3738_v52 = vadd.f32 %v8632_v19, %v3701_v47 }
 0xd45   :  { %v4814_v59 = vmul.f32 -1.442695, %v3711_v34 }
 0xd46   :  { %v4816_v12 = vmul.f32 -1.442695, %v3725_v20 }
 0xd47   :  { %7172 = vpow2.f32 %v4814_v59 }
 0xd48   :  { %7174 = vpow2.f32 %v4815_v41  ;;  %v3759_v41 = vpop.permute.xlu0 %3758 }
 0xd49   :  { %7176 = vpow2.f32 %v4816_v12  ;;  %v3764_v12 = vpop.permute.xlu1 %3763 }
 0xd4d   :  { %v7171_v55 = vpop.eup %7170 }
 0xd4e   :  { %v3718_v8 = vadd.f32 1.0, %v7171_v55 }
 0xd50   :  { %7178 = vrcp.f32 %v3718_v8 }
 0xd51   :  { %v7173_v3 = vpop.eup %7172 }
 0xd52   :  { %v3719_v33 = vadd.f32 1.0, %v7173_v3  ;;  %v7175_v45 = vpop.eup %7174  ;;  %v4206_v3 = vld [vmem:[%s9086_s2 + $0x50] sm:$0xff] }
 0xd53   :  { %v7177_v22 = vpop.eup %7176  ;;  %v3732_v53 = vadd.f32 1.0, %v7175_v45  ;;  %4210 = vperm.xlu0 %6900, %v4206_v3   ;;  %v9216_v45 = vld [vmem:[#allocation38_spill] sm:$0xff] }
 0xd54   :  { %7180 = vrcp.f32 %v3719_v33  ;;  %v3733_v35 = vadd.f32 1.0, %v7177_v22  ;;  %v4207_v33 = vld [vmem:[%s9086_s2 + $0x58] sm:$0xff]  ;;  %v2691_v22 = vadd.f32 %v9216_v45, %v8611_v38 }
 0xd55   :  { %7182 = vrcp.f32 %v3732_v53  ;;  %4215 = vperm.xlu1 %6901, %v4207_v33   ;;  %v9217_v53 = vld [vmem:[#allocation39_spill] sm:$0xff] }
 0xd56   :  { %7184 = vrcp.f32 %v3733_v35  ;;  %v9220_v33 = vld [vmem:[#allocation31_spill] sm:$0xff] }
 0xd57   :  { %v2796_v45 = vadd.f32 %v9220_v33, %v8636_v23  ;;  %v9224_v33 = vld [vmem:[#allocation42_spill] sm:$0xff] }
 0xd5a   :  { %v7179_v60 = vpop.eup %7178 }
 0xd5b   :  { %v3740_v56 = vmul.f32 %v7179_v60, %v3738_v52  ;;  %v2693_v52 = vadd.f32 %v9217_v53, %v8619_v27 }
 0xd5d   :  { %v3742_v63 = vadd.f32 %v3740_v56, %v2788_v18  ;;  %v9218_v56 = vld [vmem:[#allocation40_spill] sm:$0xff] }
 0xd5e   :  { %v7181_v40 = vpop.eup %7180 }
 0xd5f   :  { %v3741_v21 = vmul.f32 %v7181_v40, %v3739_v24  ;;  %7186 = vtanh.f32 %v3742_v63  ;;  %v7183_v50 = vpop.eup %7182  ;;  %v2695_v24 = vadd.f32 %v9218_v56, %v8611_v38  ;;  %v9219_v40 = vld [vmem:[#allocation23_spill] sm:$0xff] }
 0xd60   :  { %v7185_v58 = vpop.eup %7184  ;;  %v3746_v11 = vsub.f32 1.0, %v7183_v50  ;;  %v3750_v34 = vmul.f32 %v7183_v50, %v8777_v7  ;;  %v2697_v51 = vadd.f32 %v9219_v40, %v8619_v27 }
 0xd61   :  { %v3743_v37 = vadd.f32 %v3741_v21, %v2791_v1  ;;  %v3747_v14 = vsub.f32 1.0, %v7185_v58  ;;  %v3751_v59 = vmul.f32 %v7185_v58, %v8784_v16 }
 0xd63   :  { %7188 = vtanh.f32 %v3743_v37 }
 0xd69   :  { %v7187_v48 = vpop.eup %7186 }
 0xd6a   :  { %v3748_v0 = vmul.f32 %v7187_v48, %v3746_v11 }
 0xd6c   :  { %v8843_v61 = vadd.f32 %v3750_v34, %v3748_v0 }
 0xd6d   :  { %v7189_v47 = vpop.eup %7188 }
 0xd6e   :  { %3849 = vmatmul.mubr.f32.vlgmr.msra.gmra.mrb[82].mxu0 %v8843_v61  ;;  %5746 = vmatprep.mubr.f32.mxu1 %v8843_v61  ;;  %v3749_v20 = vmul.f32 %v7189_v47, %v3747_v14  ;;  %v3766_v7 = vmul.f32 %v3759_v41, %v8843_v61 }
 0xd6f   :  { %3854 = vmatprep.mubr.f32.mxu0 %v9142_v6  ;;  %6697 = vmatpush1.bf16.msra.mxu0 %v8369_v10 }
 0xd70   :  { %v8850_v55 = vadd.f32 %v3751_v59, %v3749_v20  ;;  %6699 = vmatprep.subr.bf16.mxu0 %v8377_v15 }
 0xd72   :  { %v3767_v8 = vmul.f32 %v3764_v12, %v8850_v55  ;;  %3855 = vmatmul.mubr.f32.gmra.mrb[84].mxu0 %v8850_v55  ;;  %5747 = vmatmul.mubr.f32.vlgmr.msra.gmra.mrb[90].mxu1 %v8850_v55 }
 0xd73   :  { %6701 = vmatpush1.bf16.msra.mxu0 %v8379_v46  ;;  %6729 = vmatpush3.bf16.msra.mxu1 %v8365_v54 }
 0xd74   :  { %v4877_v16 = vpack.c.bf16 %v3767_v8, %v3766_v7  ;;  %6703 = vmatprep.subr.bf16.mxu0 %v8385_v30  ;;  %6731 = vmatprep.subr.bf16.mxu1 %v8375_v62 }
 0xd75   :  { %4074 = vmatprep.mubr.f32.mxu0 %v9142_v6 }
 0xd76   :  { %4901 = vst [vmem:[#allocation13 + $0x18] sm:$0xff] %v4877_v16  }
 0xd77   :  { %6705 = vmatpush1.bf16.msra.mxu0 %v8387_v49  ;;  %6733 = vmatpush3.bf16.msra.mxu1 %v8375_v62 }
 0xd78   :  { %6707 = vmatprep.subr.bf16.mxu0 %v8395_v25  ;;  %6735 = vmatprep.subr.bf16.mxu1 %v8389_v29 }
 0xd7b   :  { %6709 = vmatpush1.bf16.msra.mxu0 %v8397_v42  ;;  %6737 = vmatpush3.bf16.msra.mxu1 %v8389_v29 }
 0xd7c   :  { %6711 = vmatprep.subr.bf16.mxu0 %v8405_v57  ;;  %6739 = vmatprep.subr.bf16.mxu1 %v8399_v43 }
 0xd7f   :  { %6713 = vmatpush1.bf16.msra.mxu0 %v8407_v2  ;;  %6741 = vmatpush3.bf16.msra.mxu1 %v8399_v43 }
 0xd80   :  { %6715 = vmatprep.subr.bf16.mxu0 %v8415_v17  ;;  %6743 = vmatprep.subr.bf16.mxu1 %v8409_v4 }
 0xd83   :  { %6717 = vmatpush1.bf16.msra.mxu0 %v8417_v28  ;;  %6745 = vmatpush3.bf16.msra.mxu1 %v8409_v4 }
 0xd84   :  { %6719 = vmatprep.subr.bf16.mxu0 %v8425_v44  ;;  %6747 = vmatprep.subr.bf16.mxu1 %v8419_v32 }
 0xd87   :  { %6721 = vmatpush1.bf16.msra.mxu0 %v8427_v13  ;;  %6749 = vmatpush3.bf16.msra.mxu1 %v8419_v32 }
 0xd88   :  { %6723 = vmatprep.subr.bf16.mxu0 %v8435_v36  ;;  %6751 = vmatprep.subr.bf16.mxu1 %v8429_v9 }
 0xd8b   :  { %6725 = vmatpush1.bf16.msra.mxu0 %v8437_v39  ;;  %6753 = vmatpush3.bf16.msra.mxu1 %v8429_v9 }
 0xd8c   :  { %6755 = vmatprep.subr.bf16.mxu1 %v8439_v26  ;;  %6759 = vmatprep.subr.bf16.mxu0 %v8367_v31 }
 0xd8f   :  { %6757 = vmatpush3.bf16.msra.mxu1 %v8439_v26 }
 0xd90   :  { %6791 = vmatprep.subr.bf16.mxu1 %v8365_v54 }
 0xe41   :  { %v3850_v60 = vpop.f32.mrb[82].mxu0 }
 0xe42   :  { %v3936_v35 = vadd.f32 %v3850_v60, %v2691_v22  ;;  %v3852_v5 = vpop.f32.mrb[83].mxu0 }
 0xe43   :  { %v3950_v18 = vadd.f32 %v3852_v5, %v2693_v52 }
 0xe44   :  { %v4819_v63 = vmul.f32 -1.442695, %v3936_v35  ;;  %v9221_v35 = vld [vmem:[#allocation35_spill] sm:$0xff] }
 0xe45   :  { %v3856_v1 = vpop.f32.mrb[84].mxu0  ;;  %v5748_v21 = vpop.f32.mrb[90].mxu1  ;;  %v4821_v0 = vmul.f32 -1.442695, %v3950_v18  ;;  %v2799_v5 = vadd.f32 %v9221_v35, %v8636_v23 }
 0xe46   :  { %7190 = vpow2.f32 %v4819_v63  ;;  %v3937_v37 = vadd.f32 %v3856_v1, %v2695_v24  ;;  %v3858_v50 = vpop.f32.mrb[85].mxu0  ;;  %v3927_v58 = vpop.f32.mrb[91].mxu1  ;;  %v3965_v53 = vadd.f32 %v5748_v21, %v8632_v19 }
 0xe47   :  { %v3951_v11 = vadd.f32 %v3858_v50, %v2697_v51  ;;  %v3964_v8 = vadd.f32 %v8632_v19, %v3927_v58 }
 0xe48   :  { %v4820_v48 = vmul.f32 -1.442695, %v3937_v37 }
 0xe49   :  { %v4822_v34 = vmul.f32 -1.442695, %v3951_v11 }
 0xe4a   :  { %7192 = vpow2.f32 %v4820_v48  ;;  %v3985_v48 = vpop.permute.xlu0 %3984 }
 0xe4b   :  { %7194 = vpow2.f32 %v4821_v0  ;;  %v3990_v0 = vpop.permute.xlu1 %3989 }
 0xe4c   :  { %7196 = vpow2.f32 %v4822_v34 }
 0xe50   :  { %v7191_v14 = vpop.eup %7190 }
 0xe51   :  { %v3944_v47 = vadd.f32 1.0, %v7191_v14 }
 0xe53   :  { %7198 = vrcp.f32 %v3944_v47  ;;  %v4432_v47 = vld [vmem:[%s9086_s2 + $0x60] sm:$0xff] }
 0xe54   :  { %v7193_v20 = vpop.eup %7192  ;;  %4436 = vperm.xlu0 %6900, %v4432_v47   ;;  %v9226_v47 = vld [vmem:[#allocation22_spill] sm:$0xff] }
 0xe55   :  { %v3945_v59 = vadd.f32 1.0, %v7193_v20  ;;  %v7195_v41 = vpop.eup %7194  ;;  %v4433_v20 = vld [vmem:[%s9086_s2 + $0x68] sm:$0xff] }
 0xe56   :  { %v7197_v12 = vpop.eup %7196  ;;  %v3958_v7 = vadd.f32 1.0, %v7195_v41  ;;  %4441 = vperm.xlu1 %6901, %v4433_v20   ;;  %v2804_v20 = vadd.f32 %v9226_v47, %v8636_v23 }
 0xe57   :  { %7200 = vrcp.f32 %v3945_v59  ;;  %v3959_v3 = vadd.f32 1.0, %v7197_v12  ;;  %v9222_v59 = vld [vmem:[#allocation25_spill] sm:$0xff] }
 0xe58   :  { %7202 = vrcp.f32 %v3958_v7  ;;  %v2701_v41 = vadd.f32 %v9222_v59, %v8611_v38  ;;  %v9223_v12 = vld [vmem:[#allocation41_spill] sm:$0xff] }
 0xe59   :  { %7204 = vrcp.f32 %v3959_v3 }
 0xe5d   :  { %v7199_v16 = vpop.eup %7198 }
 0xe5e   :  { %v3966_v22 = vmul.f32 %v7199_v16, %v3964_v8 }
 0xe60   :  { %v3968_v52 = vadd.f32 %v3966_v22, %v2796_v45  ;;  %v2705_v45 = vadd.f32 %v9224_v33, %v8611_v38 }
 0xe61   :  { %v7201_v60 = vpop.eup %7200 }
 0xe62   :  { %v3967_v18 = vmul.f32 %v7201_v60, %v3965_v53  ;;  %7206 = vtanh.f32 %v3968_v52  ;;  %v7203_v24 = vpop.eup %7202  ;;  %v9225_v53 = vld [vmem:[#allocation43_spill] sm:$0xff] }
 0xe63   :  { %v7205_v63 = vpop.eup %7204  ;;  %v3972_v40 = vsub.f32 1.0, %v7203_v24  ;;  %v3976_v37 = vmul.f32 %v7203_v24, %v8843_v61  ;;  %v2707_v52 = vadd.f32 %v9225_v53, %v8619_v27 }
 0xe64   :  { %v3969_v56 = vadd.f32 %v3967_v18, %v2799_v5  ;;  %v3973_v19 = vsub.f32 1.0, %v7205_v63  ;;  %v3977_v11 = vmul.f32 %v7205_v63, %v8850_v55 }
 0xe66   :  { %7208 = vtanh.f32 %v3969_v56 }
 0xe6c   :  { %v7207_v51 = vpop.eup %7206 }
 0xe6d   :  { %v3974_v1 = vmul.f32 %v7207_v51, %v3972_v40 }
 0xe6f   :  { %v8909_v50 = vadd.f32 %v3976_v37, %v3974_v1 }
 0xe70   :  { %v7209_v21 = vpop.eup %7208 }
 0xe71   :  { %4075 = vmatmul.mubr.f32.vlgmr.msra.gmra.mrb[86].mxu0 %v8909_v50  ;;  %5781 = vmatprep.mubr.f32.mxu1 %v8909_v50  ;;  %v3975_v58 = vmul.f32 %v7209_v21, %v3973_v19  ;;  %v3992_v61 = vmul.f32 %v3985_v48, %v8909_v50 }
 0xe72   :  { %4080 = vmatprep.mubr.f32.mxu0 %v9142_v6  ;;  %6761 = vmatpush1.bf16.msra.mxu0 %v8369_v10 }
 0xe73   :  { %v8916_v34 = vadd.f32 %v3977_v11, %v3975_v58  ;;  %6763 = vmatprep.subr.bf16.mxu0 %v8377_v15 }
 0xe75   :  { %v3993_v14 = vmul.f32 %v3990_v0, %v8916_v34  ;;  %4081 = vmatmul.mubr.f32.gmra.mrb[88].mxu0 %v8916_v34  ;;  %5782 = vmatmul.mubr.f32.vlgmr.msra.gmra.mrb[92].mxu1 %v8916_v34  ;;  %v8971_v0 = vld [vmem:[%s9094_s10] ss:$0 sm:$0xff] }
 0xe76   :  { %6765 = vmatpush1.bf16.msra.mxu0 %v8379_v46  ;;  %6793 = vmatpush3.bf16.msra.mxu1 %v8365_v54 }
 0xe77   :  { %v4882_v55 = vpack.c.bf16 %v3993_v14, %v3992_v61  ;;  %6767 = vmatprep.subr.bf16.mxu0 %v8385_v30  ;;  %6795 = vmatprep.subr.bf16.mxu1 %v8375_v62 }
 0xe78   :  { %4300 = vmatprep.mubr.f32.mxu0 %v9142_v6 }
 0xe79   :  { %4902 = vst [vmem:[#allocation13 + $0x20] sm:$0xff] %v4882_v55  }
 0xe7a   :  { %6769 = vmatpush1.bf16.msra.mxu0 %v8387_v49  ;;  %6797 = vmatpush3.bf16.msra.mxu1 %v8375_v62 }
 0xe7b   :  { %6771 = vmatprep.subr.bf16.mxu0 %v8395_v25  ;;  %6799 = vmatprep.subr.bf16.mxu1 %v8389_v29 }
 0xe7e   :  { %6773 = vmatpush1.bf16.msra.mxu0 %v8397_v42  ;;  %6801 = vmatpush3.bf16.msra.mxu1 %v8389_v29 }
 0xe7f   :  { %6775 = vmatprep.subr.bf16.mxu0 %v8405_v57  ;;  %6803 = vmatprep.subr.bf16.mxu1 %v8399_v43 }
 0xe82   :  { %6777 = vmatpush1.bf16.msra.mxu0 %v8407_v2  ;;  %6805 = vmatpush3.bf16.msra.mxu1 %v8399_v43 }
 0xe83   :  { %6779 = vmatprep.subr.bf16.mxu0 %v8415_v17  ;;  %6807 = vmatprep.subr.bf16.mxu1 %v8409_v4 }
 0xe86   :  { %6781 = vmatpush1.bf16.msra.mxu0 %v8417_v28  ;;  %6809 = vmatpush3.bf16.msra.mxu1 %v8409_v4 }
 0xe87   :  { %6783 = vmatprep.subr.bf16.mxu0 %v8425_v44  ;;  %6811 = vmatprep.subr.bf16.mxu1 %v8419_v32 }
 0xe8a   :  { %6785 = vmatpush1.bf16.msra.mxu0 %v8427_v13  ;;  %6813 = vmatpush3.bf16.msra.mxu1 %v8419_v32 }
 0xe8b   :  { %6787 = vmatprep.subr.bf16.mxu0 %v8435_v36  ;;  %6815 = vmatprep.subr.bf16.mxu1 %v8429_v9 }
 0xe8e   :  { %6789 = vmatpush1.bf16.msra.mxu0 %v8437_v39  ;;  %6817 = vmatpush3.bf16.msra.mxu1 %v8429_v9 }
 0xe8f   :  { %6819 = vmatprep.subr.bf16.mxu1 %v8439_v26  ;;  %6823 = vmatprep.subr.bf16.mxu0 %v8367_v31  ;;  %v2703_v31 = vadd.f32 %v9223_v12, %v8619_v27 }
 0xe92   :  { %6821 = vmatpush3.bf16.msra.mxu1 %v8439_v26 }
 0xe93   :  { %6855 = vmatprep.subr.bf16.mxu1 %v8365_v54 }
 0xf44   :  { %v4076_v7 = vpop.f32.mrb[86].mxu0 }
 0xf45   :  { %v4162_v8 = vadd.f32 %v4076_v7, %v2701_v41  ;;  %v4078_v16 = vpop.f32.mrb[87].mxu0  ;;  %v9227_v7 = vld [vmem:[#allocation33_spill] sm:$0xff] }
 0xf46   :  { %v4176_v3 = vadd.f32 %v4078_v16, %v2703_v31 }
 0xf47   :  { %v4825_v22 = vmul.f32 -1.442695, %v4162_v8  ;;  %v2807_v8 = vadd.f32 %v9227_v7, %v8636_v23 }
 0xf48   :  { %v4082_v60 = vpop.f32.mrb[88].mxu0  ;;  %v5783_v35 = vpop.f32.mrb[92].mxu1  ;;  %v4827_v40 = vmul.f32 -1.442695, %v4176_v3 }
 0xf49   :  { %7210 = vpow2.f32 %v4825_v22  ;;  %v4163_v5 = vadd.f32 %v4082_v60, %v2705_v45  ;;  %v4084_v18 = vpop.f32.mrb[89].mxu0  ;;  %v4153_v56 = vpop.f32.mrb[93].mxu1  ;;  %v4191_v41 = vadd.f32 %v8971_v0, %v5783_v35 }
 0xf4a   :  { %v4177_v24 = vadd.f32 %v4084_v18, %v2707_v52  ;;  %v4190_v61 = vadd.f32 %v8971_v0, %v4153_v56 }
 0xf4b   :  { %v4826_v63 = vmul.f32 -1.442695, %v4163_v5 }
 0xf4c   :  { %v4828_v51 = vmul.f32 -1.442695, %v4177_v24 }
 0xf4d   :  { %7212 = vpow2.f32 %v4826_v63  ;;  %v4211_v63 = vpop.permute.xlu0 %4210 }
 0xf4e   :  { %7214 = vpow2.f32 %v4827_v40  ;;  %v4216_v40 = vpop.permute.xlu1 %4215 }
 0xf4f   :  { %7216 = vpow2.f32 %v4828_v51 }
 0xf53   :  { %v7211_v1 = vpop.eup %7210 }
 0xf54   :  { %v4170_v37 = vadd.f32 1.0, %v7211_v1 }
 0xf56   :  { %7218 = vrcp.f32 %v4170_v37 }
 0xf57   :  { %v7213_v19 = vpop.eup %7212 }
 0xf58   :  { %v4171_v21 = vadd.f32 1.0, %v7213_v19  ;;  %v7215_v58 = vpop.eup %7214 }
 0xf59   :  { %v7217_v11 = vpop.eup %7216  ;;  %v4184_v48 = vadd.f32 1.0, %v7215_v58 }
 0xf5a   :  { %7220 = vrcp.f32 %v4171_v21  ;;  %v4185_v55 = vadd.f32 1.0, %v7217_v11 }
 0xf5b   :  { %7222 = vrcp.f32 %v4184_v48 }
 0xf5c   :  { %7224 = vrcp.f32 %v4185_v55 }
 0xf60   :  { %v7219_v14 = vpop.eup %7218 }
 0xf61   :  { %v4192_v59 = vmul.f32 %v7219_v14, %v4190_v61 }
 0xf63   :  { %v4194_v12 = vadd.f32 %v4192_v59, %v2804_v20  ;;  %v9232_v59 = vld [vmem:[#allocation29_spill] sm:$0xff] }
 0xf64   :  { %v7221_v31 = vpop.eup %7220 }
 0xf65   :  { %v4193_v16 = vmul.f32 %v7221_v31, %v4191_v41  ;;  %7226 = vtanh.f32 %v4194_v12  ;;  %v7223_v33 = vpop.eup %7222  ;;  %v2812_v41 = vadd.f32 %v9232_v59, %v8636_v23 }
 0xf66   :  { %v7225_v45 = vpop.eup %7224  ;;  %v4198_v22 = vsub.f32 1.0, %v7223_v33  ;;  %v4202_v60 = vmul.f32 %v7223_v33, %v8909_v50 }
 0xf67   :  { %v4195_v3 = vadd.f32 %v4193_v16, %v2807_v8  ;;  %v4199_v35 = vsub.f32 1.0, %v7225_v45  ;;  %v4203_v24 = vmul.f32 %v7225_v45, %v8916_v34  ;;  %v9233_v16 = vld [vmem:[#allocation18_spill] sm:$0xff] }
 0xf69   :  { %7228 = vtanh.f32 %v4195_v3  ;;  %v2815_v3 = vadd.f32 %v9233_v16, %v8636_v23 }
 0xf6f   :  { %v7227_v53 = vpop.eup %7226 }
 0xf70   :  { %v4200_v52 = vmul.f32 %v7227_v53, %v4198_v22 }
 0xf72   :  { %v8980_v5 = vadd.f32 %v4202_v60, %v4200_v52 }
 0xf73   :  { %v7229_v18 = vpop.eup %7228 }
 0xf74   :  { %4301 = vmatmul.mubr.f32.vlgmr.msra.gmra.mrb[90].mxu0 %v8980_v5  ;;  %5816 = vmatprep.mubr.f32.mxu1 %v8980_v5  ;;  %v4201_v56 = vmul.f32 %v7229_v18, %v4199_v35  ;;  %v4218_v50 = vmul.f32 %v4211_v63, %v8980_v5 }
 0xf75   :  { %4306 = vmatprep.mubr.f32.mxu0 %v9142_v6  ;;  %6825 = vmatpush1.bf16.msra.mxu0 %v8369_v10  ;;  %v4658_v10 = vld [vmem:[%s9086_s2 + $0x70] sm:$0xff] }
 0xf76   :  { %v8987_v51 = vadd.f32 %v4203_v24, %v4201_v56  ;;  %6827 = vmatprep.subr.bf16.mxu0 %v8377_v15  ;;  %4662 = vperm.xlu0 %6900, %v4658_v10  }
 0xf78   :  { %v4219_v1 = vmul.f32 %v4216_v40, %v8987_v51  ;;  %4307 = vmatmul.mubr.f32.gmra.mrb[92].mxu0 %v8987_v51  ;;  %5817 = vmatmul.mubr.f32.vlgmr.msra.gmra.mrb[94].mxu1 %v8987_v51 }
 0xf79   :  { %6829 = vmatpush1.bf16.msra.mxu0 %v8379_v46  ;;  %6857 = vmatpush3.bf16.msra.mxu1 %v8365_v54  ;;  %v4659_v54 = vld [vmem:[%s9086_s2 + $0x78] sm:$0xff]  ;;  %v9229_v46 = vld [vmem:[#allocation30_spill] sm:$0xff]  ;;  %s7423_s2 = smov [#allocation13]  }
 0xf7a   :  { %v4887_v34 = vpack.c.bf16 %v4219_v1, %v4218_v50  ;;  %6831 = vmatprep.subr.bf16.mxu0 %v8385_v30  ;;  %6859 = vmatprep.subr.bf16.mxu1 %v8375_v62  ;;  %v2713_v30 = vadd.f32 %v9229_v46, %v8619_v27  ;;  %v4437_v1 = vpop.permute.xlu0 %4436  ;;  %s4687_s5 = sshll.u32 %s7423_s2, 4  ;;  %s4688_s5 = int_to_ptr.vmem [resolvable:$true] %s4687_s5 }
 0xf7b   :  { %4526 = vmatprep.mubr.f32.mxu0 %v9142_v6  ;;  %4667 = vperm.xlu1 %6901, %v4659_v54   ;;  %s7382_s3 = scalar_lea.vmem %s4688_s5, 1024  ;;  %p7387_p13 = scmp.lt.s32.totalorder %s4688_s5, %s4688_s5 }
 0xf7c   :  { %4903 = vst [vmem:[#allocation13 + $0x28] sm:$0xff] %v4887_v34   ;;  %v4442_v34 = vpop.permute.xlu1 %4441  ;;  %p7383_p12 = scmp.ne.s32.totalorder %s4688_s5, %s7382_s3  ;;  %p7388_p0 = scmp.lt.s32.totalorder %s7382_s3, %s7382_s3 }
 0xf7d   :  { %6833 = vmatpush1.bf16.msra.mxu0 %v8387_v49  ;;  %6861 = vmatpush3.bf16.msra.mxu1 %v8375_v62  ;;  %v9228_v62 = vld [vmem:[#allocation44_spill] sm:$0xff] }
 0xf7e   :  { %6835 = vmatprep.subr.bf16.mxu0 %v8395_v25  ;;  %6863 = vmatprep.subr.bf16.mxu1 %v8389_v29  ;;  %v2711_v15 = vadd.f32 %v9228_v62, %v8611_v38  ;;  %p7389_p1 = por %p7388_p0, %p7387_p13 }
 0xf80   :  { %p7390_p2 = pnand %p7389_p1, %p7383_p12 }
 0xf81   :  { %6837 = vmatpush1.bf16.msra.mxu0 %v8397_v42  ;;  %6865 = vmatpush3.bf16.msra.mxu1 %v8389_v29 }
 0xf82   :  { %6839 = vmatprep.subr.bf16.mxu0 %v8405_v57  ;;  %6867 = vmatprep.subr.bf16.mxu1 %v8399_v43 }
 0xf85   :  { %6841 = vmatpush1.bf16.msra.mxu0 %v8407_v2  ;;  %6869 = vmatpush3.bf16.msra.mxu1 %v8399_v43  ;;  %v9230_v43 = vld [vmem:[#allocation34_spill] sm:$0xff] }
 0xf86   :  { %6843 = vmatprep.subr.bf16.mxu0 %v8415_v17  ;;  %6871 = vmatprep.subr.bf16.mxu1 %v8409_v4  ;;  %v2715_v57 = vadd.f32 %v9230_v43, %v8611_v38 }
 0xf89   :  { %6845 = vmatpush1.bf16.msra.mxu0 %v8417_v28  ;;  %6873 = vmatpush3.bf16.msra.mxu1 %v8409_v4  ;;  %v9231_v4 = vld [vmem:[#allocation45_spill] sm:$0xff] }
 0xf8a   :  { %6847 = vmatprep.subr.bf16.mxu0 %v8425_v44  ;;  %6875 = vmatprep.subr.bf16.mxu1 %v8419_v32  ;;  %v2717_v17 = vadd.f32 %v9231_v4, %v8619_v27 }
 0xf8d   :  { %6849 = vmatpush1.bf16.msra.mxu0 %v8427_v13  ;;  %6877 = vmatpush3.bf16.msra.mxu1 %v8419_v32 }
 0xf8e   :  { %6851 = vmatprep.subr.bf16.mxu0 %v8435_v36  ;;  %6879 = vmatprep.subr.bf16.mxu1 %v8429_v9 }
 0xf91   :  { %6853 = vmatpush1.bf16.msra.mxu0 %v8437_v39  ;;  %6881 = vmatpush3.bf16.msra.mxu1 %v8429_v9 }
 0xf92   :  { %6883 = vmatprep.subr.bf16.mxu1 %v8439_v26 }
 0xf95   :  { %6885 = vmatpush3.bf16.msra.mxu1 %v8439_v26 }
0x1047   :  { %v4302_v49 = vpop.f32.mrb[90].mxu0 }
0x1048   :  { %v4388_v29 = vadd.f32 %v4302_v49, %v2711_v15  ;;  %v4304_v25 = vpop.f32.mrb[91].mxu0  ;;  %v9234_v15 = vld [vmem:[#allocation46_spill] sm:$0xff] }
0x1049   :  { %v4402_v42 = vadd.f32 %v4304_v25, %v2713_v30  ;;  %v2721_v46 = vadd.f32 %v9234_v15, %v8611_v38 }
0x104a   :  { %v4831_v2 = vmul.f32 -1.442695, %v4388_v29 }
0x104b   :  { %v4308_v28 = vpop.f32.mrb[92].mxu0  ;;  %v5818_v32 = vpop.f32.mrb[94].mxu1  ;;  %v4833_v26 = vmul.f32 -1.442695, %v4402_v42  ;;  %v9236_v42 = vld [vmem:[#allocation32_spill] sm:$0xff] }
0x104c   :  { %7230 = vpow2.f32 %v4831_v2  ;;  %v4389_v44 = vadd.f32 %v4308_v28, %v2715_v57  ;;  %v4310_v13 = vpop.f32.mrb[93].mxu0  ;;  %v4379_v9 = vpop.f32.mrb[95].mxu1  ;;  %v4417_v31 = vadd.f32 %v8971_v0, %v5818_v32  ;;  %v2725_v43 = vadd.f32 %v9236_v42, %v8611_v38  ;;  %v9237_v2 = vld [vmem:[#allocation19_spill] sm:$0xff] }
0x104d   :  { %v4403_v36 = vadd.f32 %v4310_v13, %v2717_v17  ;;  %v4416_v55 = vadd.f32 %v8971_v0, %v4379_v9  ;;  %v2727_v4 = vadd.f32 %v9237_v2, %v8619_v27 }
0x104e   :  { %v4832_v39 = vmul.f32 -1.442695, %v4389_v44 }
0x104f   :  { %v4834_v37 = vmul.f32 -1.442695, %v4403_v36 }
0x1050   :  { %7232 = vpow2.f32 %v4832_v39 }
0x1051   :  { %7234 = vpow2.f32 %v4833_v26 }
0x1052   :  { %7236 = vpow2.f32 %v4834_v37 }
0x1056   :  { %v7231_v19 = vpop.eup %7230 }
0x1057   :  { %v4396_v21 = vadd.f32 1.0, %v7231_v19 }
0x1059   :  { %7238 = vrcp.f32 %v4396_v21 }
0x105a   :  { %v7233_v58 = vpop.eup %7232 }
0x105b   :  { %v4397_v11 = vadd.f32 1.0, %v7233_v58  ;;  %v7235_v48 = vpop.eup %7234 }
0x105c   :  { %v7237_v61 = vpop.eup %7236  ;;  %v4410_v14 = vadd.f32 1.0, %v7235_v48 }
0x105d   :  { %7240 = vrcp.f32 %v4397_v11  ;;  %v4411_v20 = vadd.f32 1.0, %v7237_v61 }
0x105e   :  { %7242 = vrcp.f32 %v4410_v14 }
0x105f   :  { %7244 = vrcp.f32 %v4411_v20 }
0x1063   :  { %v7239_v47 = vpop.eup %7238 }
0x1064   :  { %v4418_v12 = vmul.f32 %v7239_v47, %v4416_v55  ;;  %v9238_v55 = vld [vmem:[#allocation47_spill] sm:$0xff] }
0x1065   :  { %v2820_v47 = vadd.f32 %v9238_v55, %v8636_v23 }
0x1066   :  { %v4420_v7 = vadd.f32 %v4418_v12, %v2812_v41 }
0x1067   :  { %v7241_v8 = vpop.eup %7240 }
0x1068   :  { %v4419_v33 = vmul.f32 %v7241_v8, %v4417_v31  ;;  %7246 = vtanh.f32 %v4420_v7  ;;  %v7243_v22 = vpop.eup %7242  ;;  %v9239_v31 = vld [vmem:[#allocation20_spill] sm:$0xff] }
0x1069   :  { %v7245_v53 = vpop.eup %7244  ;;  %v4424_v52 = vsub.f32 1.0, %v7243_v22  ;;  %v4428_v18 = vmul.f32 %v7243_v22, %v8980_v5  ;;  %v2823_v7 = vadd.f32 %v9239_v31, %v8636_v23  ;;  %v4663_v23 = vpop.permute.xlu0 %4662 }
0x106a   :  { %v4421_v45 = vadd.f32 %v4419_v33, %v2815_v3  ;;  %v4425_v24 = vsub.f32 1.0, %v7245_v53  ;;  %v4429_v50 = vmul.f32 %v7245_v53, %v8987_v51  ;;  %v9235_v51 = vld [vmem:[#allocation48_spill] sm:$0xff] }
0x106b   :  { %v2723_v30 = vadd.f32 %v9235_v51, %v8619_v27 }
0x106c   :  { %7248 = vtanh.f32 %v4421_v45 }
0x1072   :  { %v7247_v60 = vpop.eup %7246 }
0x1073   :  { %v4426_v35 = vmul.f32 %v7247_v60, %v4424_v52 }
0x1075   :  { %v9044_v56 = vadd.f32 %v4428_v18, %v4426_v35 }
0x1076   :  { %v7249_v63 = vpop.eup %7248 }
0x1077   :  { %4527 = vmatmul.mubr.f32.vlgmr.msra.gmra.mrb[94].mxu0 %v9044_v56  ;;  %5851 = vmatprep.mubr.f32.mxu1 %v9044_v56  ;;  %v4427_v40 = vmul.f32 %v7249_v63, %v4425_v24  ;;  %v4444_v10 = vmul.f32 %v4437_v1, %v9044_v56 }
0x1078   :  { %4532 = vmatprep.mubr.f32.mxu0 %v9142_v6 }
0x1079   :  { %v9050_v54 = vadd.f32 %v4429_v50, %v4427_v40  ;;  %v4668_v40 = vpop.permute.xlu1 %4667 }
0x107b   :  { %v4445_v5 = vmul.f32 %v4442_v34, %v9050_v54  ;;  %4533 = vmatmul.mubr.f32.gmra.mrb[96].mxu0 %v9050_v54  ;;  %5852 = vmatmul.mubr.f32.vlgmr.msra.gmra.mrb[96].mxu1 %v9050_v54 }
0x107d   :  { %v4892_v62 = vpack.c.bf16 %v4445_v5, %v4444_v10 }
0x107f   :  { %4904 = vst [vmem:[#allocation13 + $0x30] sm:$0xff] %v4892_v62  }
0x114a   :  { %v4528_v49 = vpop.f32.mrb[94].mxu0 }
0x114b   :  { %v4614_v6 = vadd.f32 %v4528_v49, %v2721_v46  ;;  %v4530_v29 = vpop.f32.mrb[95].mxu0 }
0x114c   :  { %v4628_v25 = vadd.f32 %v4530_v29, %v2723_v30 }
0x114d   :  { %v4837_v57 = vmul.f32 -1.442695, %v4614_v6 }
0x114e   :  { %v4534_v17 = vpop.f32.mrb[96].mxu0  ;;  %v5853_v28 = vpop.f32.mrb[96].mxu1  ;;  %v4839_v39 = vmul.f32 -1.442695, %v4628_v25 }
0x114f   :  { %7250 = vpow2.f32 %v4837_v57  ;;  %v4615_v32 = vadd.f32 %v4534_v17, %v2725_v43  ;;  %v4536_v44 = vpop.f32.mrb[97].mxu0  ;;  %v4605_v13 = vpop.f32.mrb[97].mxu1  ;;  %v4643_v59 = vadd.f32 %v8971_v0, %v5853_v28 }
0x1150   :  { %v4629_v9 = vadd.f32 %v4536_v44, %v2727_v4  ;;  %v4642_v48 = vadd.f32 %v8971_v0, %v4605_v13 }
0x1151   :  { %v4838_v36 = vmul.f32 -1.442695, %v4615_v32 }
0x1152   :  { %v4840_v26 = vmul.f32 -1.442695, %v4629_v9 }
0x1153   :  { %7252 = vpow2.f32 %v4838_v36 }
0x1154   :  { %7254 = vpow2.f32 %v4839_v39 }
0x1155   :  { %7256 = vpow2.f32 %v4840_v26 }
0x1159   :  { %v7251_v37 = vpop.eup %7250 }
0x115a   :  { %v4622_v19 = vadd.f32 1.0, %v7251_v37 }
0x115c   :  { %7258 = vrcp.f32 %v4622_v19 }
0x115d   :  { %v7253_v38 = vpop.eup %7252 }
0x115e   :  { %v4623_v21 = vadd.f32 1.0, %v7253_v38  ;;  %v7255_v58 = vpop.eup %7254 }
0x115f   :  { %v7257_v27 = vpop.eup %7256  ;;  %v4636_v11 = vadd.f32 1.0, %v7255_v58 }
0x1160   :  { %7260 = vrcp.f32 %v4623_v21  ;;  %v4637_v14 = vadd.f32 1.0, %v7257_v27 }
0x1161   :  { %7262 = vrcp.f32 %v4636_v11 }
0x1162   :  { %7264 = vrcp.f32 %v4637_v14 }
0x1166   :  { %v7259_v61 = vpop.eup %7258 }
0x1167   :  { %v4644_v20 = vmul.f32 %v7259_v61, %v4642_v48 }
0x1169   :  { %v4646_v41 = vadd.f32 %v4644_v20, %v2820_v47 }
0x116a   :  { %v7261_v12 = vpop.eup %7260 }
0x116b   :  { %v4645_v8 = vmul.f32 %v7261_v12, %v4643_v59  ;;  %7266 = vtanh.f32 %v4646_v41  ;;  %v7263_v3 = vpop.eup %7262 }
0x116c   :  { %v7265_v33 = vpop.eup %7264  ;;  %v4650_v45 = vsub.f32 1.0, %v7263_v3  ;;  %v4654_v52 = vmul.f32 %v7263_v3, %v9044_v56 }
0x116d   :  { %v4647_v16 = vadd.f32 %v4645_v8, %v2823_v7  ;;  %v4651_v60 = vsub.f32 1.0, %v7265_v33  ;;  %v4655_v24 = vmul.f32 %v7265_v33, %v9050_v54 }
0x116f   :  { %7268 = vtanh.f32 %v4647_v16 }
0x1175   :  { %v7267_v22 = vpop.eup %7266 }
0x1176   :  { %v4652_v53 = vmul.f32 %v7267_v22, %v4650_v45 }
0x1178   :  { %v4656_v35 = vadd.f32 %v4654_v52, %v4652_v53 }
0x1179   :  { %v7269_v0 = vpop.eup %7268 }
0x117a   :  { %v4653_v18 = vmul.f32 %v7269_v0, %v4651_v60  ;;  %v4670_v1 = vmul.f32 %v4663_v23, %v4656_v35 }
0x117c   :  { %v4657_v63 = vadd.f32 %v4655_v24, %v4653_v18 }
0x117e   :  { %v4671_v50 = vmul.f32 %v4668_v40, %v4657_v63 }
0x1180   :  { %v4897_v34 = vpack.c.bf16 %v4671_v50, %v4670_v1 }
0x1182   :  { %4905 = vst [vmem:[#allocation13 + $0x38] sm:$0xff] %v4897_v34  }
0x1183   :  { %7393 = shalt.err (!%p7390_p2)
}
0x1184   :  { %s9240_s24 = sld [smem:[#allocation49_spill]] }
0x118a   :  { %s7394_s25 = scalar_lea.hbm %s9240_s24, 1024 }
0x118b   :  { %p7395_p3 = scmp.ne.s32.totalorder %s9240_s24, %s7394_s25  ;;  %p7398_p4 = scmp.lt.u32.totalorder %s7394_s25, %s9240_s24 }
0x118d   :  { %p7400_p5 = pnand %p7398_p4, %p7395_p3 }
0x118f   :  { %7403 = shalt.err (!%p7400_p5)
}
0x1190   :  { %s7424_s29 = smov 64   ;;  %s7425_s18 = smov 4  }
0x1191   :  { %4693 = dma.vmem_to_hbm [thread:$0]  %s4688_s5, 1024, %s9240_s24, [#allocation6], %s7424_s29, %s7424_s29, %s7425_s18  }
0x1192   :  { %7410 = dma.done.wait [#allocation6], 1024  }
0x1193   :  { %7411 = vsyncadd [#allocation6], 4294966272 }
0x1194   :  { %4697 = vsyncpa [#allocation5], 1 }
0x1195   :  { %4698 = vsyncpa [#allocation8], 1 }
0x1196   :  { %4699 = vsyncpa [#allocation11], 1 }
0x1197   :  { %4700 = vsyncpa [#allocation6], 1 }

</bundles_post_ra>
